<compile_context>
chip_gen: v7x
topology: tpu7x:2x2x1
jax: 0.10.0
libtpu: 0.0.40
codegen_flags: <defaults>
</compile_context>

<pallas_src>
import math
import functools

import jax
import jax.numpy as jnp
from jax.experimental import pallas as pl
from jax.experimental.pallas import tpu as pltpu


_VMEM_LIMIT_BYTES = 48 * 1024 * 1024   # > 16/32 MiB scoped defaults, < 64 MiB v7x physical
_ROW_TILE_TARGET = 256                 # 256-512 rows ~ HBM roofline; 256 keeps the fused
                                       # FFN kernel comfortably inside v7x's 64 MiB VMEM


# ----------------------------- in-kernel helpers ----------------------------

def _mm(a, b):
    """MXU matmul: bf16 operands (weights pre-cast once), f32 accumulation."""
    return jnp.dot(a.astype(jnp.bfloat16), b, preferred_element_type=jnp.float32)


def _ln(x, g, b, eps=1e-5):
    """LayerNorm in f32 over the last (lane) dim."""
    x = x.astype(jnp.float32)
    mu = jnp.mean(x, axis=-1, keepdims=True)
    var = jnp.mean((x - mu) ** 2, axis=-1, keepdims=True)
    return (x - mu) * jax.lax.rsqrt(var + eps) * g + b


# ----------------------------- Pallas kernels ------------------------------

def _mlp2_kernel(x_ref, w1_ref, b1_ref, w2_ref, b2_ref, o_ref):
    """2-layer MLP with ReLU on the hidden layer (ref_point_head)."""
    h = jnp.maximum(_mm(x_ref[...], w1_ref[...]) + b1_ref[...], 0.0)
    o_ref[...] = (_mm(h, w2_ref[...]) + b2_ref[...]).astype(o_ref.dtype)


def _qkv_self_kernel(x_ref, qp_ref, wq_ref, bq_ref, wk_ref, bk_ref,
                     wv_ref, bv_ref, q_out, k_out, v_out):
    """Fused self-attention projections: q/k from (x + pos), v from x.
    Separate bf16 outputs (no XLA slice of a fused qk)."""
    x = x_ref[...]
    xq = x + qp_ref[...]
    q_out[...] = (_mm(xq, wq_ref[...]) + bq_ref[...]).astype(q_out.dtype)
    k_out[...] = (_mm(xq, wk_ref[...]) + bk_ref[...]).astype(k_out.dtype)
    v_out[...] = (_mm(x, wv_ref[...]) + bv_ref[...]).astype(v_out.dtype)


def _flash_attn_kernel(q_ref, k_ref, v_ref, o_ref, m_sc, l_sc, acc_sc):
    """Flash-style attention: grid = (bs*nhead, lk-tiles); online softmax.
    The 1/sqrt(dh) scale is pre-folded into the q projection."""
    kv = pl.program_id(1)

    @pl.when(kv == 0)
    def _():
        m_sc[...] = jnp.full(m_sc.shape, -jnp.inf, m_sc.dtype)
        l_sc[...] = jnp.zeros(l_sc.shape, l_sc.dtype)
        acc_sc[...] = jnp.zeros(acc_sc.shape, acc_sc.dtype)

    q = q_ref[...]                                     # (1, lq, dh) bf16
    k = k_ref[...]                                     # (1, tk, dh) bf16
    s = jnp.einsum("bqd,bkd->bqk", q, k, preferred_element_type=jnp.float32)
    m_prev = m_sc[...]
    m_new = jnp.maximum(m_prev, jnp.max(s, axis=-1, keepdims=True))
    alpha = jnp.exp(m_prev - m_new)
    p = jnp.exp(s - m_new)
    l_sc[...] = alpha * l_sc[...] + jnp.sum(p, axis=-1, keepdims=True)
    acc_sc[...] = alpha * acc_sc[...] + jnp.einsum(
        "bqk,bkd->bqd", p.astype(jnp.bfloat16), v_ref[...],
        preferred_element_type=jnp.float32)
    m_sc[...] = m_new

    @pl.when(kv == pl.num_programs(1) - 1)
    def _():
        o_ref[...] = (acc_sc[...] *
                      pl.reciprocal(l_sc[...], approx=True)).astype(o_ref.dtype)


def _self_epi_kernel(attn_ref, resid_ref, qp_ref, wo_ref, bo_ref, g_ref, b_ref,
                     wq_ref, bq_ref, x_out, q_out):
    """Self-attn out-proj + residual + LayerNorm, fused with the cross-attn
    query projection of the resulting tensor."""
    y = resid_ref[...] + _mm(attn_ref[...], wo_ref[...]) + bo_ref[...]
    x = _ln(y, g_ref[...], b_ref[...])
    x_out[...] = x.astype(x_out.dtype)
    q_out[...] = (_mm(x + qp_ref[...], wq_ref[...]) + bq_ref[...]).astype(q_out.dtype)


def _kv_kernel(mem_ref, pos_ref, wk_ref, bk_ref, wv_ref, bv_ref, k_out, v_out):
    """Cross-attention key/value projections over the memory (bf16 outputs)."""
    m = mem_ref[...]
    k_out[...] = (_mm(m + pos_ref[...], wk_ref[...]) + bk_ref[...]).astype(k_out.dtype)
    v_out[...] = (_mm(m, wv_ref[...]) + bv_ref[...]).astype(v_out.dtype)


def _cross_epi_ffn_kernel(attn_ref, resid_ref, wo_ref, bo_ref, g2_ref, b2_ref,
                          w1_ref, b1_ref, w2_ref, b2f_ref, g3_ref, b3_ref,
                          o_ref):
    """Cross-attn out-proj + residual + LN, then FFN + residual + LN."""
    y = _ln(resid_ref[...] + _mm(attn_ref[...], wo_ref[...]) + bo_ref[...],
            g2_ref[...], b2_ref[...])
    h = jnp.maximum(_mm(y, w1_ref[...]) + b1_ref[...], 0.0)
    o_ref[...] = _ln(y + _mm(h, w2_ref[...]) + b2f_ref[...],
                     g3_ref[...], b3_ref[...]).astype(o_ref.dtype)


def _head_kernel(out_ref, outd_ref, pcu_ref,
                 w1_ref, b1_ref, w2_ref, b2_ref, w3_ref, b3_ref,
                 wcT_ref, bc_ref, proj4_ref,
                 wr1_ref, br1_ref, wr2T_ref, br2_ref,
                 pc_out, dist_out, logit_out, *, k, bins):
    """Fused per-layer head stack:
       bbox_embed MLP + class linear + Integral + LQE (top-k stat + reg_conf).
       pred_corners are lane-dense (rows, 4*bins); per-corner softmax/topk use
       lane-index masks instead of lane slicing."""
    out = out_ref[...]                                  # (rows, d) f32
    x = out + outd_ref[...]                             # output + output_detach
    h = jnp.maximum(_mm(x, w1_ref[...]) + b1_ref[...], 0.0)
    h = jnp.maximum(_mm(h, w2_ref[...]) + b2_ref[...], 0.0)
    pc = _mm(h, w3_ref[...]) + b3_ref[...] + pcu_ref[...]   # (rows, 4*bins) f32
    pc_out[...] = pc.astype(pc_out.dtype)

    proj4 = proj4_ref[...]                               # (1, 4*bins) — W(n) tiled 4x
    lane = jax.lax.broadcasted_iota(jnp.int32, pc.shape, 1)

    dists, stats = [], []
    for c in range(4):                                   # 4 box sides
        in_seg = (lane >= c * bins) & (lane < (c + 1) * bins)
        z = jnp.where(in_seg, pc, -jnp.inf)
        z = z - jnp.max(z, axis=-1, keepdims=True)
        e = jnp.exp(z)                                   # 0 outside the segment
        p = e / jnp.sum(e, axis=-1, keepdims=True)       # per-corner softmax
        # Integral: VPU multiply + lane reduce (off-segment lanes contribute 0).
        dists.append(jnp.sum(p * proj4, axis=-1, keepdims=True))
        # LQE top-k via k in-vreg max/mask passes.
        cur = p
        vals = []
        for _ in range(k):
            m = jnp.max(cur, axis=-1, keepdims=True)
            vals.append(m)
            # TODO(synk): ties would differ from torch.topk; with softmax of
            # random floats the probability of an exact tie is ~0.
            cur = jnp.where(cur >= m, -jnp.inf, cur)
        topk = jnp.concatenate(vals, axis=-1)            # (rows, k)
        stats.append(jnp.concatenate(
            [topk, jnp.mean(topk, axis=-1, keepdims=True)], axis=-1))

    dist_out[...] = jnp.concatenate(dists, axis=-1)      # (rows, 4)

    stat = jnp.concatenate(stats, axis=-1)               # (rows, 4*(k+1))
    q1 = jnp.maximum(_mm(stat, wr1_ref[...]) + br1_ref[...], 0.0)
    # N=1 / N=2 projections as VPU multiply + lane reductions (no tiny matmuls).
    quality = jnp.sum(q1 * wr2T_ref[...], axis=-1, keepdims=True) + br2_ref[...]
    s0 = jnp.sum(out * wcT_ref[0:1, :], axis=-1, keepdims=True)
    s1 = jnp.sum(out * wcT_ref[1:2, :], axis=-1, keepdims=True)
    scores = jnp.concatenate([s0, s1], axis=-1) + bc_ref[...]
    logit_out[...] = scores + quality


# ----------------------------- pallas_call wrappers -------------------------

def _round_up(x, m):
    return ((x + m - 1) // m) * m


def _rowwise_call(kernel, row_in, full_in, outs, *, io_aliases=None):
    """Launch `kernel` over a padded 1-D row grid (target 256-row tiles).

    row_in : 2-D arrays tiled along rows (all share the same row count).
    full_in: arrays passed whole to every grid step (weights / biases).
    outs   : list of (feature_width, dtype) for the outputs.
    """
    m = row_in[0].shape[0]
    tile = min(_ROW_TILE_TARGET, _round_up(m, 8))
    m_pad = _round_up(m, tile)
    if m_pad != m:
        row_in = [jnp.pad(a, ((0, m_pad - m), (0, 0))) for a in row_in]
    grid = (m_pad // tile,)

    in_specs = ([pl.BlockSpec((tile, a.shape[1]), lambda i: (i, 0))
                 for a in row_in]
                + [pl.BlockSpec(a.shape, lambda i, _n=a.ndim: (0,) * _n)
                   for a in full_in])
    out_specs = [pl.BlockSpec((tile, f), lambda i: (i, 0)) for f, _ in outs]
    out_shape = [jax.ShapeDtypeStruct((m_pad, f), dt) for f, dt in outs]
    single = len(outs) == 1
    kwargs = {}
    if io_aliases:
        kwargs["input_output_aliases"] = io_aliases

    res = pl.pallas_call(
        kernel,
        grid=grid,
        in_specs=in_specs,
        out_specs=out_specs[0] if single else out_specs,
        out_shape=out_shape[0] if single else out_shape,
        compiler_params=pltpu.CompilerParams(
            dimension_semantics=("parallel",),
            vmem_limit_bytes=_VMEM_LIMIT_BYTES),
        **kwargs,
    )(*row_in, *full_in)

    res = (res,) if single else tuple(res)
    if m_pad != m:
        res = tuple(r[:m] for r in res)
    return res[0] if single else res


def _seq_tile(n, target=512):
    """Largest divisor of n that is <= target (preferring multiples of 16)."""
    if n <= target:
        return n
    for mult in (16, 8):
        start = target - (target % mult)
        for t in range(start, mult - 1, -mult):
            if n % t == 0:
                return t
    # TODO(synk): pad + mask the Lk tail instead of a single whole-Lk tile.
    return n


def pallas_attention(q, k, v):
    """Flash-style attention over (bs*nhead, L, Dh) bf16 tensors."""
    bh, lq, dh = q.shape
    lk = k.shape[1]
    tk = _seq_tile(lk)
    grid = (bh, lk // tk)
    return pl.pallas_call(
        _flash_attn_kernel,
        grid=grid,
        in_specs=[pl.BlockSpec((1, lq, dh), lambda b, j: (b, 0, 0)),
                  pl.BlockSpec((1, tk, dh), lambda b, j: (b, j, 0)),
                  pl.BlockSpec((1, tk, dh), lambda b, j: (b, j, 0))],
        out_specs=pl.BlockSpec((1, lq, dh), lambda b, j: (b, 0, 0)),
        out_shape=jax.ShapeDtypeStruct((bh, lq, dh), jnp.bfloat16),
        scratch_shapes=[pltpu.VMEM((1, lq, 1), jnp.float32),
                        pltpu.VMEM((1, lq, 1), jnp.float32),
                        pltpu.VMEM((1, lq, dh), jnp.float32)],
        compiler_params=pltpu.CompilerParams(
            dimension_semantics=("parallel", "arbitrary"),
            vmem_limit_bytes=_VMEM_LIMIT_BYTES),
    )(q, k, v)


# ----------------------------- plain-JAX glue -------------------------------

def sine_embedding(tensor, hidden_dim):
    hd = hidden_dim // 2
    scale = 2 * math.pi
    dim_t = jnp.arange(hd, dtype=jnp.float32)
    dim_t = 10000.0 ** (2.0 * jnp.floor(dim_t / 2.0) / hd)

    def emb(coord):  # (nq, bs)
        pos = coord[:, :, None] * scale / dim_t                 # (nq, bs, hd)
        s = jnp.sin(pos[:, :, 0::2])
        c = jnp.cos(pos[:, :, 1::2])
        return jnp.stack([s, c], axis=3).reshape(pos.shape[0], pos.shape[1], -1)

    pos_x = emb(tensor[:, :, 0])
    pos_y = emb(tensor[:, :, 1])
    pos_w = emb(tensor[:, :, 2])
    pos_h = emb(tensor[:, :, 3])
    return jnp.concatenate([pos_y, pos_x, pos_w, pos_h], axis=2)


def weighting_function(reg_max, up, reg_scale):
    # D-FINE weighting function W(n) (reference implementation, not in prompt).
    ub1 = abs(up) * abs(reg_scale)
    ub2 = ub1 * 2.0
    step = (ub1 + 1.0) ** (2.0 / (reg_max - 2))
    left = [-(step ** i) + 1.0 for i in range(reg_max // 2 - 1, 0, -1)]
    right = [step ** i - 1.0 for i in range(1, reg_max // 2)]
    values = [-ub2] + left + [0.0] + right + [ub2]
    return jnp.asarray(values, dtype=jnp.float32)


def distance2bbox(points, distance, reg_scale):
    # D-FINE distance->bbox (xyxy) then xyxy->cxcywh (reference impl).
    rs = abs(reg_scale)
    x1 = points[..., 0] - (0.5 * rs + distance[..., 0]) * (points[..., 2] / rs)
    y1 = points[..., 1] - (0.5 * rs + distance[..., 1]) * (points[..., 3] / rs)
    x2 = points[..., 0] + (0.5 * rs + distance[..., 2]) * (points[..., 2] / rs)
    y2 = points[..., 1] + (0.5 * rs + distance[..., 3]) * (points[..., 3] / rs)
    cx = (x1 + x2) * 0.5
    cy = (y1 + y2) * 0.5
    w = x2 - x1
    h = y2 - y1
    return jnp.stack([cx, cy, w, h], axis=-1)


# ----------------------------- decoder forward ------------------------------

def transformer_decoder_forward(params, cfg, tgt, memory, pos, refpoints_unsigmoid):
    d = cfg["d_model"]
    reg_max = cfg["reg_max"]
    nhead = cfg["nhead"]
    nq, bs, _ = tgt.shape
    hw = memory.shape[0]
    dh = d // nhead
    rows_q = nq * bs
    rows_m = hw * bs
    bins = reg_max + 1

    output2d = tgt.reshape(rows_q, d).astype(jnp.float32)
    mem2d = memory.reshape(rows_m, d).astype(jnp.float32)
    pos2d = pos.reshape(rows_m, d).astype(jnp.float32)

    output_detach2d = jnp.zeros_like(output2d)
    pcu = jnp.zeros((rows_q, 4 * bins), jnp.float32)            # pred_corners_undetach
    ref_points_detach = jax.nn.sigmoid(refpoints_unsigmoid)     # (nq, bs, 4)
    ref_points_initial = ref_points_detach
    proj_row = weighting_function(reg_max, cfg["up"], cfg["reg_scale"]).reshape(1, bins)
    proj4_row = jnp.tile(proj_row, (1, 4))                      # (1, 4*bins)

    rph = params["ref_point_head"]

    # TODO(synk): write q/k/v directly in (bs*nhead, L, dh) layout from the
    # projection kernels (head-indexed out BlockSpec) to drop these XLA
    # transposes entirely; they already run on half-width bf16 data.
    def heads_split(x2d, L):
        return (x2d.reshape(L, bs, nhead, dh)
                .transpose(1, 2, 0, 3)
                .reshape(bs * nhead, L, dh))

    def heads_merge(x, L):
        return (x.reshape(bs, nhead, L, dh)
                .transpose(2, 0, 1, 3)
                .reshape(L * bs, d))

    dec_out_bboxes, dec_out_logits = [], []
    for layer_id in range(cfg["num_layers"]):
        # TODO(synk): `decoder_layer` is constructor-injected and not defined in
        # the reference source; a standard DETR-style post-norm layer (self-attn
        # + cross-attn + FFN) is substituted here.
        lp = params["layers"][layer_id]
        hp = params["heads"][layer_id]

        # --- query position embedding: sine embed (XLA) + fused 2-layer MLP ---
        qsine = sine_embedding(ref_points_detach, d).reshape(rows_q, 2 * d)
        query_pos2d = _rowwise_call(
            _mlp2_kernel, [qsine],
            [rph["w1"], rph["b1"], rph["w2"], rph["b2"]],
            [(d, jnp.float32)])

        # --- self-attention: fused QKV, flash attention, fused epilogue -------
        q2d, k2d, v2d = _rowwise_call(
            _qkv_self_kernel, [output2d, query_pos2d],
            [lp["sa_wq"], lp["sa_bq"], lp["sa_wk"], lp["sa_bk"],
             lp["sa_wv"], lp["sa_bv"]],
            [(d, jnp.bfloat16)] * 3)
        sa = heads_merge(pallas_attention(heads_split(q2d, nq),
                                          heads_split(k2d, nq),
                                          heads_split(v2d, nq)), nq)
        # out-proj + residual + LN, fused with cross-attn q projection
        x2d, qc2d = _rowwise_call(
            _self_epi_kernel, [sa, output2d, query_pos2d],
            [lp["sa_wo"], lp["sa_bo"], lp["n1_g"], lp["n1_b"],
             lp["ca_wq"], lp["ca_bq"]],
            [(d, jnp.float32), (d, jnp.bfloat16)])

        # --- cross-attention over memory ---
        kc2d, vc2d = _rowwise_call(
            _kv_kernel, [mem2d, pos2d],
            [lp["ca_wk"], lp["ca_bk"], lp["ca_wv"], lp["ca_bv"]],
            [(d, jnp.bfloat16)] * 2)
        ca = heads_merge(pallas_attention(heads_split(qc2d, nq),
                                          heads_split(kc2d, hw),
                                          heads_split(vc2d, hw)), nq)
        # cross out-proj + residual + LN + FFN + residual + LN (one kernel)
        output2d = _rowwise_call(
            _cross_epi_ffn_kernel, [ca, x2d],
            [lp["ca_wo"], lp["ca_bo"], lp["n2_g"], lp["n2_b"],
             lp["ffn_w1"], lp["ffn_b1"], lp["ffn_w2"], lp["ffn_b2"],
             lp["n3_g"], lp["n3_b"]],
            [(d, jnp.float32)])

        # --- fused head stack: bbox MLP + class + integral + LQE -------------
        pc2d, dist2d, logits2d = _rowwise_call(
            functools.partial(_head_kernel, k=cfg["lqe_k"], bins=bins),
            [output2d, output_detach2d, pcu],
            [hp["bbox_w1"], hp["bbox_b1"], hp["bbox_w2"], hp["bbox_b2"],
             hp["bbox_w3"], hp["bbox_b3"],
             hp["class_wT"], hp["class_b"], proj4_row,
             hp["lqe_w1"], hp["lqe_b1"], hp["lqe_w2T"], hp["lqe_b2"]],
            [(4 * bins, jnp.float32), (4, jnp.float32), (2, jnp.float32)],
            io_aliases={2: 0})   # donate previous pred_corners into the new ones

        dist = dist2d.reshape(nq, bs, 4)
        inter_ref_bbox = distance2bbox(ref_points_initial, dist, cfg["reg_scale"])

        # training-mode semantics: append every layer (detach = identity in fwd)
        dec_out_logits.append(logits2d.reshape(nq, bs, 2))
        dec_out_bboxes.append(inter_ref_bbox)

        # state for next layer
        pcu = pc2d                           # pred_corners, lane-dense (rows, 4*bins)
        ref_points_detach = inter_ref_bbox
        output_detach2d = output2d

    bboxes = jnp.stack(dec_out_bboxes).transpose(0, 2, 1, 3)   # (L, bs, nq, 4)
    logits = jnp.stack(dec_out_logits).transpose(0, 2, 1, 3)   # (L, bs, nq, 2)
    return bboxes, logits


# ----------------------------- deterministic init ---------------------------

def _init_linear(key, fan_in, fan_out):
    kw, kb = jax.random.split(key)
    bound = 1.0 / math.sqrt(fan_in)
    w = jax.random.uniform(kw, (fan_in, fan_out), jnp.float32, -bound, bound)
    b = jax.random.uniform(kb, (1, fan_out), jnp.float32, -bound, bound)
    return w, b


def _init_decoder_layer(key, d, dff):
    ks = jax.random.split(key, 10)
    sa_wq, sa_bq = _init_linear(ks[0], d, d)
    sa_wk, sa_bk = _init_linear(ks[1], d, d)
    sa_wv, sa_bv = _init_linear(ks[2], d, d)
    sa_wo, sa_bo = _init_linear(ks[3], d, d)
    ca_wq, ca_bq = _init_linear(ks[4], d, d)
    ca_wk, ca_bk = _init_linear(ks[5], d, d)
    ca_wv, ca_bv = _init_linear(ks[6], d, d)
    ca_wo, ca_bo = _init_linear(ks[7], d, d)
    ffn_w1, ffn_b1 = _init_linear(ks[8], d, dff)
    ffn_w2, ffn_b2 = _init_linear(ks[9], dff, d)
    ones = jnp.ones((1, d), jnp.float32)
    zeros = jnp.zeros((1, d), jnp.float32)
    return {
        "sa_wq": sa_wq, "sa_bq": sa_bq, "sa_wk": sa_wk, "sa_bk": sa_bk,
        "sa_wv": sa_wv, "sa_bv": sa_bv, "sa_wo": sa_wo, "sa_bo": sa_bo,
        "ca_wq": ca_wq, "ca_bq": ca_bq, "ca_wk": ca_wk, "ca_bk": ca_bk,
        "ca_wv": ca_wv, "ca_bv": ca_bv, "ca_wo": ca_wo, "ca_bo": ca_bo,
        "ffn_w1": ffn_w1, "ffn_b1": ffn_b1, "ffn_w2": ffn_w2, "ffn_b2": ffn_b2,
        "n1_g": ones, "n1_b": zeros, "n2_g": ones, "n2_b": zeros,
        "n3_g": ones, "n3_b": zeros,
    }


def _init_heads(key, d, reg_max, lqe_k):
    bins = reg_max + 1
    ks = jax.random.split(key, 5)
    bw1, bb1 = _init_linear(ks[0], d, d)
    bw2, bb2 = _init_linear(ks[1], d, d)
    bw3, bb3 = _init_linear(ks[2], d, 4 * bins)   # lane-dense, corner-major columns
    cw, _ = _init_linear(ks[3], d, 2)
    prior_prob = 0.01
    bias_value = -math.log((1 - prior_prob) / prior_prob)
    cb = jnp.full((1, 2), bias_value, jnp.float32)
    lw1, lb1 = _init_linear(ks[4], 4 * (lqe_k + 1), 64)
    # LQE reg_conf last layer is zero-initialized (weight & bias) per reference.
    lw2T = jnp.zeros((1, 64), jnp.float32)
    lb2 = jnp.zeros((1, 1), jnp.float32)
    return {
        "bbox_w1": bw1, "bbox_b1": bb1, "bbox_w2": bw2, "bbox_b2": bb2,
        "bbox_w3": bw3, "bbox_b3": bb3,
        "class_wT": cw.T,                                  # (2, d)
        "class_b": cb,
        "lqe_w1": lw1, "lqe_b1": lb1,
        "lqe_w2T": lw2T, "lqe_b2": lb2,
    }


def init_params(key, cfg):
    d, reg_max, L = cfg["d_model"], cfg["reg_max"], cfg["num_layers"]
    keys = jax.random.split(key, 3)
    kr1, kr2 = jax.random.split(keys[0])
    rw1, rb1 = _init_linear(kr1, 2 * d, d)
    rw2, rb2 = _init_linear(kr2, d, d)
    # torch deepcopies one init -> identical init values across decoder layers
    layer0 = _init_decoder_layer(keys[1], d, cfg["dim_feedforward"])
    heads0 = _init_heads(keys[2], d, reg_max, cfg["lqe_k"])
    return {
        "ref_point_head": {"w1": rw1, "b1": rb1, "w2": rw2, "b2": rb2},
        "layers": [layer0 for _ in range(L)],
        "heads": [heads0 for _ in range(L)],
    }


def prepare_params(params, cfg):
    """One-time parameter prep: matmul weights -> bf16, fold 1/sqrt(dh) into
    the q projections. Biases, LN params and VPU-side vectors stay f32."""
    scale = 1.0 / math.sqrt(cfg["d_model"] // cfg["nhead"])
    bf = lambda x: x.astype(jnp.bfloat16)

    rph = params["ref_point_head"]
    out = {"ref_point_head": {"w1": bf(rph["w1"]), "b1": rph["b1"],
                              "w2": bf(rph["w2"]), "b2": rph["b2"]}}
    layers = []
    for lp in params["layers"]:
        layers.append({
            "sa_wq": bf(lp["sa_wq"] * scale), "sa_bq": lp["sa_bq"] * scale,
            "sa_wk": bf(lp["sa_wk"]), "sa_bk": lp["sa_bk"],
            "sa_wv": bf(lp["sa_wv"]), "sa_bv": lp["sa_bv"],
            "sa_wo": bf(lp["sa_wo"]), "sa_bo": lp["sa_bo"],
            "ca_wq": bf(lp["ca_wq"] * scale), "ca_bq": lp["ca_bq"] * scale,
            "ca_wk": bf(lp["ca_wk"]), "ca_bk": lp["ca_bk"],
            "ca_wv": bf(lp["ca_wv"]), "ca_bv": lp["ca_bv"],
            "ca_wo": bf(lp["ca_wo"]), "ca_bo": lp["ca_bo"],
            "ffn_w1": bf(lp["ffn_w1"]), "ffn_b1": lp["ffn_b1"],
            "ffn_w2": bf(lp["ffn_w2"]), "ffn_b2": lp["ffn_b2"],
            "n1_g": lp["n1_g"], "n1_b": lp["n1_b"],
            "n2_g": lp["n2_g"], "n2_b": lp["n2_b"],
            "n3_g": lp["n3_g"], "n3_b": lp["n3_b"],
        })
    heads = []
    for hp in params["heads"]:
        heads.append({
            "bbox_w1": bf(hp["bbox_w1"]), "bbox_b1": hp["bbox_b1"],
            "bbox_w2": bf(hp["bbox_w2"]), "bbox_b2": hp["bbox_b2"],
            "bbox_w3": bf(hp["bbox_w3"]), "bbox_b3": hp["bbox_b3"],
            "class_wT": hp["class_wT"], "class_b": hp["class_b"],
            "lqe_w1": bf(hp["lqe_w1"]), "lqe_b1": hp["lqe_b1"],
            "lqe_w2T": hp["lqe_w2T"], "lqe_b2": hp["lqe_b2"],
        })
    out["layers"] = layers
    out["heads"] = heads
    return out


# --------------------------------- main --------------------------------------

if __name__ == "__main__":
    cfg = dict(d_model=32, nhead=4, dim_feedforward=64, num_layers=2,
               reg_max=32, reg_scale=4.0, up=0.5, lqe_k=4)
    nq, bs, hw = 8, 2, 16

    key = jax.random.PRNGKey(0)
    k_param, k1, k2, k3, k4 = jax.random.split(key, 5)

    params = prepare_params(init_params(k_param, cfg), cfg)
    tgt = jax.random.normal(k1, (nq, bs, cfg["d_model"]), jnp.float32)
    memory = jax.random.normal(k2, (hw, bs, cfg["d_model"]), jnp.float32)
    pos = jax.random.normal(k3, (hw, bs, cfg["d_model"]), jnp.float32)
    refpoints_unsigmoid = jax.random.normal(k4, (nq, bs, 4), jnp.float32)

    fwd = jax.jit(lambda p, t, m, po, r: transformer_decoder_forward(p, cfg, t, m, po, r))
    bboxes, logits = fwd(params, tgt, memory, pos, refpoints_unsigmoid)
    jax.block_until_ready((bboxes, logits))

    assert bboxes.shape == (cfg["num_layers"], bs, nq, 4)
    assert logits.shape == (cfg["num_layers"], bs, nq, 2)
    print("KERNEL_OK")
</pallas_src>

<mosaic_0001>
module attributes {stable_mosaic.version = 11 : i64} {
  func.func @_mlp2_kernel(%arg0: i32, %arg1: memref<16x64xf32, #tpu.memory_space<vmem>>, %arg2: memref<64x32xbf16, #tpu.memory_space<vmem>>, %arg3: memref<1x32xf32, #tpu.memory_space<vmem>>, %arg4: memref<32x32xbf16, #tpu.memory_space<vmem>>, %arg5: memref<1x32xf32, #tpu.memory_space<vmem>>, %arg6: memref<16x32xf32, #tpu.memory_space<vmem>>) attributes {dimension_semantics = [#tpu.dimension_semantics<parallel>], iteration_bounds = array<i64: 1>, scalar_prefetch = 0 : i64, scratch_operands = 0 : i64, tpu.core_type = #tpu.core_type<tc>, window_params = [{transform_indices = @transform_0, window_bounds = array<i64: 16, 64>}, {pipeline_mode = #tpu.pipeline_mode<synchronous>, transform_indices = @transform_1, window_bounds = array<i64: 64, 32>}, {pipeline_mode = #tpu.pipeline_mode<synchronous>, transform_indices = @transform_2, window_bounds = array<i64: 1, 32>}, {pipeline_mode = #tpu.pipeline_mode<synchronous>, transform_indices = @transform_3, window_bounds = array<i64: 32, 32>}, {pipeline_mode = #tpu.pipeline_mode<synchronous>, transform_indices = @transform_4, window_bounds = array<i64: 1, 32>}, {transform_indices = @transform_5, window_bounds = array<i64: 16, 32>}]} {
    %c0 = arith.constant 0 : index
    %c0_0 = arith.constant 0 : index
    %0 = vector.load %arg1[%c0, %c0_0] : memref<16x64xf32, #tpu.memory_space<vmem>>, vector<16x64xf32>
    %c0_1 = arith.constant 0 : index
    %c0_2 = arith.constant 0 : index
    %1 = vector.load %arg2[%c0_1, %c0_2] : memref<64x32xbf16, #tpu.memory_space<vmem>>, vector<64x32xbf16>
    %2 = arith.truncf %0 : vector<16x64xf32> to vector<16x64xbf16>
    %cst = arith.constant dense<0.000000e+00> : vector<16x32xf32>
    %3 = tpu.matmul %2, %1, %cst {dimension_numbers = #tpu.dot_dimension_numbers<[1], [0], [0], [1], [0, 0, 1, 1], [], []>} : vector<16x64xbf16>, vector<64x32xbf16>, vector<16x32xf32> -> vector<16x32xf32>
    %c0_3 = arith.constant 0 : index
    %c0_4 = arith.constant 0 : index
    %4 = vector.load %arg3[%c0_3, %c0_4] : memref<1x32xf32, #tpu.memory_space<vmem>>, vector<1x32xf32>
    %5 = vector.broadcast %4 : vector<1x32xf32> to vector<16x32xf32>
    %6 = arith.addf %3, %5 : vector<16x32xf32>
    %cst_5 = arith.constant 0.000000e+00 : f32
    %7 = vector.broadcast %cst_5 : f32 to vector<16x32xf32>
    %8 = arith.maximumf %6, %7 : vector<16x32xf32>
    %c0_6 = arith.constant 0 : index
    %c0_7 = arith.constant 0 : index
    %9 = vector.load %arg4[%c0_6, %c0_7] : memref<32x32xbf16, #tpu.memory_space<vmem>>, vector<32x32xbf16>
    %10 = arith.truncf %8 : vector<16x32xf32> to vector<16x32xbf16>
    %cst_8 = arith.constant dense<0.000000e+00> : vector<16x32xf32>
    %11 = tpu.matmul %10, %9, %cst_8 {dimension_numbers = #tpu.dot_dimension_numbers<[1], [0], [0], [1], [0, 0, 1, 1], [], []>} : vector<16x32xbf16>, vector<32x32xbf16>, vector<16x32xf32> -> vector<16x32xf32>
    %c0_9 = arith.constant 0 : index
    %c0_10 = arith.constant 0 : index
    %12 = vector.load %arg5[%c0_9, %c0_10] : memref<1x32xf32, #tpu.memory_space<vmem>>, vector<1x32xf32>
    %13 = vector.broadcast %12 : vector<1x32xf32> to vector<16x32xf32>
    %14 = arith.addf %11, %13 : vector<16x32xf32>
    %c0_11 = arith.constant 0 : index
    %c0_12 = arith.constant 0 : index
    %15 = vector.load %arg6[%c0_11, %c0_12] : memref<16x32xf32, #tpu.memory_space<vmem>>, vector<16x32xf32>
    tpu.vector_store %arg6[%c0_11, %c0_12], %14 {strides = array<i32>} : memref<16x32xf32, #tpu.memory_space<vmem>>, vector<16x32xf32>,
    return
  }
  func.func @transform_0(%arg0: i32) -> (i32, i32) {
    %c0_i32 = arith.constant 0 : i32
    %c0_i32_0 = arith.constant 0 : i32
    return %arg0, %c0_i32 : i32, i32
  }
  func.func @transform_1(%arg0: i32) -> (i32, i32) {
    %c0_i32 = arith.constant 0 : i32
    %c0_i32_0 = arith.constant 0 : i32
    %c0_i32_1 = arith.constant 0 : i32
    return %c0_i32, %c0_i32_0 : i32, i32
  }
  func.func @transform_2(%arg0: i32) -> (i32, i32) {
    %c0_i32 = arith.constant 0 : i32
    %c0_i32_0 = arith.constant 0 : i32
    %c0_i32_1 = arith.constant 0 : i32
    return %c0_i32, %c0_i32_0 : i32, i32
  }
  func.func @transform_3(%arg0: i32) -> (i32, i32) {
    %c0_i32 = arith.constant 0 : i32
    %c0_i32_0 = arith.constant 0 : i32
    %c0_i32_1 = arith.constant 0 : i32
    return %c0_i32, %c0_i32_0 : i32, i32
  }
  func.func @transform_4(%arg0: i32) -> (i32, i32) {
    %c0_i32 = arith.constant 0 : i32
    %c0_i32_0 = arith.constant 0 : i32
    %c0_i32_1 = arith.constant 0 : i32
    return %c0_i32, %c0_i32_0 : i32, i32
  }
  func.func @transform_5(%arg0: i32) -> (i32, i32) {
    %c0_i32 = arith.constant 0 : i32
    %c0_i32_0 = arith.constant 0 : i32
    return %arg0, %c0_i32 : i32, i32
  }
}

module attributes {stable_mosaic.version = 11 : i64} {
  func.func @_qkv_self_kernel(%arg0: i32, %arg1: memref<16x32xf32, #tpu.memory_space<vmem>>, %arg2: memref<16x32xf32, #tpu.memory_space<vmem>>, %arg3: memref<32x32xbf16, #tpu.memory_space<vmem>>, %arg4: memref<1x32xf32, #tpu.memory_space<vmem>>, %arg5: memref<32x32xbf16, #tpu.memory_space<vmem>>, %arg6: memref<1x32xf32, #tpu.memory_space<vmem>>, %arg7: memref<32x32xbf16, #tpu.memory_space<vmem>>, %arg8: memref<1x32xf32, #tpu.memory_space<vmem>>, %arg9: memref<16x32xbf16, #tpu.memory_space<vmem>>, %arg10: memref<16x32xbf16, #tpu.memory_space<vmem>>, %arg11: memref<16x32xbf16, #tpu.memory_space<vmem>>) attributes {dimension_semantics = [#tpu.dimension_semantics<parallel>], iteration_bounds = array<i64: 1>, scalar_prefetch = 0 : i64, scratch_operands = 0 : i64, tpu.core_type = #tpu.core_type<tc>, window_params = [{transform_indices = @transform_0, window_bounds = array<i64: 16, 32>}, {transform_indices = @transform_1, window_bounds = array<i64: 16, 32>}, {pipeline_mode = #tpu.pipeline_mode<synchronous>, transform_indices = @transform_2, window_bounds = array<i64: 32, 32>}, {pipeline_mode = #tpu.pipeline_mode<synchronous>, transform_indices = @transform_3, window_bounds = array<i64: 1, 32>}, {pipeline_mode = #tpu.pipeline_mode<synchronous>, transform_indices = @transform_4, window_bounds = array<i64: 32, 32>}, {pipeline_mode = #tpu.pipeline_mode<synchronous>, transform_indices = @transform_5, window_bounds = array<i64: 1, 32>}, {pipeline_mode = #tpu.pipeline_mode<synchronous>, transform_indices = @transform_6, window_bounds = array<i64: 32, 32>}, {pipeline_mode = #tpu.pipeline_mode<synchronous>, transform_indices = @transform_7, window_bounds = array<i64: 1, 32>}, {transform_indices = @transform_8, window_bounds = array<i64: 16, 32>}, {transform_indices = @transform_9, window_bounds = array<i64: 16, 32>}, {transform_indices = @transform_10, window_bounds = array<i64: 16, 32>}]} {
    %c0 = arith.constant 0 : index
    %c0_0 = arith.constant 0 : index
    %0 = vector.load %arg1[%c0, %c0_0] : memref<16x32xf32, #tpu.memory_space<vmem>>, vector<16x32xf32>
    %c0_1 = arith.constant 0 : index
    %c0_2 = arith.constant 0 : index
    %1 = vector.load %arg2[%c0_1, %c0_2] : memref<16x32xf32, #tpu.memory_space<vmem>>, vector<16x32xf32>
    %2 = arith.addf %0, %1 : vector<16x32xf32>
    %c0_3 = arith.constant 0 : index
    %c0_4 = arith.constant 0 : index
    %3 = vector.load %arg3[%c0_3, %c0_4] : memref<32x32xbf16, #tpu.memory_space<vmem>>, vector<32x32xbf16>
    %4 = arith.truncf %2 : vector<16x32xf32> to vector<16x32xbf16>
    %cst = arith.constant dense<0.000000e+00> : vector<16x32xf32>
    %5 = tpu.matmul %4, %3, %cst {dimension_numbers = #tpu.dot_dimension_numbers<[1], [0], [0], [1], [0, 0, 1, 1], [], []>} : vector<16x32xbf16>, vector<32x32xbf16>, vector<16x32xf32> -> vector<16x32xf32>
    %c0_5 = arith.constant 0 : index
    %c0_6 = arith.constant 0 : index
    %6 = vector.load %arg4[%c0_5, %c0_6] : memref<1x32xf32, #tpu.memory_space<vmem>>, vector<1x32xf32>
    %7 = vector.broadcast %6 : vector<1x32xf32> to vector<16x32xf32>
    %8 = arith.addf %5, %7 : vector<16x32xf32>
    %9 = arith.truncf %8 : vector<16x32xf32> to vector<16x32xbf16>
    %c0_7 = arith.constant 0 : index
    %c0_8 = arith.constant 0 : index
    %10 = vector.load %arg9[%c0_7, %c0_8] : memref<16x32xbf16, #tpu.memory_space<vmem>>, vector<16x32xbf16>
    tpu.vector_store %arg9[%c0_7, %c0_8], %9 {strides = array<i32>} : memref<16x32xbf16, #tpu.memory_space<vmem>>, vector<16x32xbf16>,
    %c0_9 = arith.constant 0 : index
    %c0_10 = arith.constant 0 : index
    %11 = vector.load %arg5[%c0_9, %c0_10] : memref<32x32xbf16, #tpu.memory_space<vmem>>, vector<32x32xbf16>
    %12 = arith.truncf %2 : vector<16x32xf32> to vector<16x32xbf16>
    %cst_11 = arith.constant dense<0.000000e+00> : vector<16x32xf32>
    %13 = tpu.matmul %12, %11, %cst_11 {dimension_numbers = #tpu.dot_dimension_numbers<[1], [0], [0], [1], [0, 0, 1, 1], [], []>} : vector<16x32xbf16>, vector<32x32xbf16>, vector<16x32xf32> -> vector<16x32xf32>
    %c0_12 = arith.constant 0 : index
    %c0_13 = arith.constant 0 : index
    %14 = vector.load %arg6[%c0_12, %c0_13] : memref<1x32xf32, #tpu.memory_space<vmem>>, vector<1x32xf32>
    %15 = vector.broadcast %14 : vector<1x32xf32> to vector<16x32xf32>
    %16 = arith.addf %13, %15 : vector<16x32xf32>
    %17 = arith.truncf %16 : vector<16x32xf32> to vector<16x32xbf16>
    %c0_14 = arith.constant 0 : index
    %c0_15 = arith.constant 0 : index
    %18 = vector.load %arg10[%c0_14, %c0_15] : memref<16x32xbf16, #tpu.memory_space<vmem>>, vector<16x32xbf16>
    tpu.vector_store %arg10[%c0_14, %c0_15], %17 {strides = array<i32>} : memref<16x32xbf16, #tpu.memory_space<vmem>>, vector<16x32xbf16>,
    %c0_16 = arith.constant 0 : index
    %c0_17 = arith.constant 0 : index
    %19 = vector.load %arg7[%c0_16, %c0_17] : memref<32x32xbf16, #tpu.memory_space<vmem>>, vector<32x32xbf16>
    %20 = arith.truncf %0 : vector<16x32xf32> to vector<16x32xbf16>
    %cst_18 = arith.constant dense<0.000000e+00> : vector<16x32xf32>
    %21 = tpu.matmul %20, %19, %cst_18 {dimension_numbers = #tpu.dot_dimension_numbers<[1], [0], [0], [1], [0, 0, 1, 1], [], []>} : vector<16x32xbf16>, vector<32x32xbf16>, vector<16x32xf32> -> vector<16x32xf32>
    %c0_19 = arith.constant 0 : index
    %c0_20 = arith.constant 0 : index
    %22 = vector.load %arg8[%c0_19, %c0_20] : memref<1x32xf32, #tpu.memory_space<vmem>>, vector<1x32xf32>
    %23 = vector.broadcast %22 : vector<1x32xf32> to vector<16x32xf32>
    %24 = arith.addf %21, %23 : vector<16x32xf32>
    %25 = arith.truncf %24 : vector<16x32xf32> to vector<16x32xbf16>
    %c0_21 = arith.constant 0 : index
    %c0_22 = arith.constant 0 : index
    %26 = vector.load %arg11[%c0_21, %c0_22] : memref<16x32xbf16, #tpu.memory_space<vmem>>, vector<16x32xbf16>
    tpu.vector_store %arg11[%c0_21, %c0_22], %25 {strides = array<i32>} : memref<16x32xbf16, #tpu.memory_space<vmem>>, vector<16x32xbf16>,
    return
  }
  func.func @transform_0(%arg0: i32) -> (i32, i32) {
    %c0_i32 = arith.constant 0 : i32
    %c0_i32_0 = arith.constant 0 : i32
    return %arg0, %c0_i32 : i32, i32
  }
  func.func @transform_1(%arg0: i32) -> (i32, i32) {
    %c0_i32 = arith.constant 0 : i32
    %c0_i32_0 = arith.constant 0 : i32
    return %arg0, %c0_i32 : i32, i32
  }
  func.func @transform_2(%arg0: i32) -> (i32, i32) {
    %c0_i32 = arith.constant 0 : i32
    %c0_i32_0 = arith.constant 0 : i32
    %c0_i32_1 = arith.constant 0 : i32
    return %c0_i32, %c0_i32_0 : i32, i32
  }
  func.func @transform_3(%arg0: i32) -> (i32, i32) {
    %c0_i32 = arith.constant 0 : i32
    %c0_i32_0 = arith.constant 0 : i32
    %c0_i32_1 = arith.constant 0 : i32
    return %c0_i32, %c0_i32_0 : i32, i32
  }
  func.func @transform_4(%arg0: i32) -> (i32, i32) {
    %c0_i32 = arith.constant 0 : i32
    %c0_i32_0 = arith.constant 0 : i32
    %c0_i32_1 = arith.constant 0 : i32
    return %c0_i32, %c0_i32_0 : i32, i32
  }
  func.func @transform_5(%arg0: i32) -> (i32, i32) {
    %c0_i32 = arith.constant 0 : i32
    %c0_i32_0 = arith.constant 0 : i32
    %c0_i32_1 = arith.constant 0 : i32
    return %c0_i32, %c0_i32_0 : i32, i32
  }
  func.func @transform_6(%arg0: i32) -> (i32, i32) {
    %c0_i32 = arith.constant 0 : i32
    %c0_i32_0 = arith.constant 0 : i32
    %c0_i32_1 = arith.constant 0 : i32
    return %c0_i32, %c0_i32_0 : i32, i32
  }
  func.func @transform_7(%arg0: i32) -> (i32, i32) {
    %c0_i32 = arith.constant 0 : i32
    %c0_i32_0 = arith.constant 0 : i32
    %c0_i32_1 = arith.constant 0 : i32
    return %c0_i32, %c0_i32_0 : i32, i32
  }
  func.func @transform_8(%arg0: i32) -> (i32, i32) {
    %c0_i32 = arith.constant 0 : i32
    %c0_i32_0 = arith.constant 0 : i32
    return %arg0, %c0_i32 : i32, i32
  }
  func.func @transform_9(%arg0: i32) -> (i32, i32) {
    %c0_i32 = arith.constant 0 : i32
    %c0_i32_0 = arith.constant 0 : i32
    return %arg0, %c0_i32 : i32, i32
  }
  func.func @transform_10(%arg0: i32) -> (i32, i32) {
    %c0_i32 = arith.constant 0 : i32
    %c0_i32_0 = arith.constant 0 : i32
    return %arg0, %c0_i32 : i32, i32
  }
}

module attributes {stable_mosaic.version = 11 : i64} {
  func.func @_flash_attn_kernel(%arg0: i32, %arg1: i32, %arg2: memref<1x8x8xbf16, #tpu.memory_space<vmem>>, %arg3: memref<1x8x8xbf16, #tpu.memory_space<vmem>>, %arg4: memref<1x8x8xbf16, #tpu.memory_space<vmem>>, %arg5: memref<1x8x8xbf16, #tpu.memory_space<vmem>>, %arg6: memref<1x8x1xf32, #tpu.memory_space<vmem>>, %arg7: memref<1x8x1xf32, #tpu.memory_space<vmem>>, %arg8: memref<1x8x8xf32, #tpu.memory_space<vmem>>) attributes {dimension_semantics = [#tpu.dimension_semantics<parallel>, #tpu.dimension_semantics<arbitrary>], iteration_bounds = array<i64: 8, 1>, scalar_prefetch = 0 : i64, scratch_operands = 3 : i64, tpu.core_type = #tpu.core_type<tc>, window_params = [{transform_indices = @transform_0, window_bounds = array<i64: 1, 8, 8>}, {transform_indices = @transform_1, window_bounds = array<i64: 1, 8, 8>}, {transform_indices = @transform_2, window_bounds = array<i64: 1, 8, 8>}, {transform_indices = @transform_3, window_bounds = array<i64: 1, 8, 8>}]} {
    %c0_i32 = arith.constant 0 : i32
    %0 = arith.cmpi eq, %arg1, %c0_i32 : i32
    %1 = arith.extui %0 : i1 to i32
    %c0_i32_0 = arith.constant 0 : i32
    %2 = arith.cmpi ne, %1, %c0_i32_0 : i32
    scf.if %2 {
      %cst_32 = arith.constant 0xFF800000 : f32
      %33 = vector.broadcast %cst_32 : f32 to vector<1x8x1xf32>
      %c0_33 = arith.constant 0 : index
      %c0_34 = arith.constant 0 : index
      %c0_35 = arith.constant 0 : index
      %34 = vector.load %arg6[%c0_33, %c0_34, %c0_35] : memref<1x8x1xf32, #tpu.memory_space<vmem>>, vector<1x8x1xf32>
      tpu.vector_store %arg6[%c0_33, %c0_34, %c0_35], %33 {strides = array<i32>} : memref<1x8x1xf32, #tpu.memory_space<vmem>>, vector<1x8x1xf32>,
      %cst_36 = arith.constant 0.000000e+00 : f32
      %35 = vector.broadcast %cst_36 : f32 to vector<1x8x1xf32>
      %c0_37 = arith.constant 0 : index
      %c0_38 = arith.constant 0 : index
      %c0_39 = arith.constant 0 : index
      %36 = vector.load %arg7[%c0_37, %c0_38, %c0_39] : memref<1x8x1xf32, #tpu.memory_space<vmem>>, vector<1x8x1xf32>
      tpu.vector_store %arg7[%c0_37, %c0_38, %c0_39], %35 {strides = array<i32>} : memref<1x8x1xf32, #tpu.memory_space<vmem>>, vector<1x8x1xf32>,
      %cst_40 = arith.constant 0.000000e+00 : f32
      %37 = vector.broadcast %cst_40 : f32 to vector<1x8x8xf32>
      %c0_41 = arith.constant 0 : index
      %c0_42 = arith.constant 0 : index
      %c0_43 = arith.constant 0 : index
      %38 = vector.load %arg8[%c0_41, %c0_42, %c0_43] : memref<1x8x8xf32, #tpu.memory_space<vmem>>, vector<1x8x8xf32>
      tpu.vector_store %arg8[%c0_41, %c0_42, %c0_43], %37 {strides = array<i32>} : memref<1x8x8xf32, #tpu.memory_space<vmem>>, vector<1x8x8xf32>,
    } else {
    }
    %c0 = arith.constant 0 : index
    %c0_1 = arith.constant 0 : index
    %c0_2 = arith.constant 0 : index
    %3 = vector.load %arg2[%c0, %c0_1, %c0_2] : memref<1x8x8xbf16, #tpu.memory_space<vmem>>, vector<1x8x8xbf16>
    %c0_3 = arith.constant 0 : index
    %c0_4 = arith.constant 0 : index
    %c0_5 = arith.constant 0 : index
    %4 = vector.load %arg3[%c0_3, %c0_4, %c0_5] : memref<1x8x8xbf16, #tpu.memory_space<vmem>>, vector<1x8x8xbf16>
    "tpu.trace_start"() <{level = 10 : i32, message = "bqd,bkd->bqk"}> : () -> ()
    %cst = arith.constant dense<0.000000e+00> : vector<1x8x8xf32>
    %5 = tpu.matmul %3, %4, %cst {dimension_numbers = #tpu.dot_dimension_numbers<[2], [2], [1], [1], [0, 0, 0, 1, 1, 1], [0], [0]>} : vector<1x8x8xbf16>, vector<1x8x8xbf16>, vector<1x8x8xf32> -> vector<1x8x8xf32>
    "tpu.trace_stop"() : () -> ()
    %c0_6 = arith.constant 0 : index
    %c0_7 = arith.constant 0 : index
    %c0_8 = arith.constant 0 : index
    %6 = vector.load %arg6[%c0_6, %c0_7, %c0_8] : memref<1x8x1xf32, #tpu.memory_space<vmem>>, vector<1x8x1xf32>
    %cst_9 = arith.constant dense<0xFF800000> : vector<1x8xf32>
    %7 = vector.multi_reduction <maximumf>, %5, %cst_9 [2] : vector<1x8x8xf32> to vector<1x8xf32>
    %8 = vector.shape_cast %7 : vector<1x8xf32> to vector<1x8x1xf32>
    %9 = arith.maximumf %6, %8 : vector<1x8x1xf32>
    %10 = arith.subf %6, %9 : vector<1x8x1xf32>
    %11 = math.exp %10 : vector<1x8x1xf32>
    %12 = vector.broadcast %9 : vector<1x8x1xf32> to vector<1x8x8xf32>
    %13 = arith.subf %5, %12 : vector<1x8x8xf32>
    %14 = math.exp %13 : vector<1x8x8xf32>
    %c0_10 = arith.constant 0 : index
    %c0_11 = arith.constant 0 : index
    %c0_12 = arith.constant 0 : index
    %15 = vector.load %arg7[%c0_10, %c0_11, %c0_12] : memref<1x8x1xf32, #tpu.memory_space<vmem>>, vector<1x8x1xf32>
    %16 = arith.mulf %11, %15 : vector<1x8x1xf32>
    %cst_13 = arith.constant dense<0.000000e+00> : vector<1x8xf32>
    %17 = vector.multi_reduction <add>, %14, %cst_13 [2] : vector<1x8x8xf32> to vector<1x8xf32>
    %18 = vector.shape_cast %17 : vector<1x8xf32> to vector<1x8x1xf32>
    %19 = arith.addf %16, %18 : vector<1x8x1xf32>
    %c0_14 = arith.constant 0 : index
    %c0_15 = arith.constant 0 : index
    %c0_16 = arith.constant 0 : index
    %20 = vector.load %arg7[%c0_14, %c0_15, %c0_16] : memref<1x8x1xf32, #tpu.memory_space<vmem>>, vector<1x8x1xf32>
    tpu.vector_store %arg7[%c0_14, %c0_15, %c0_16], %19 {strides = array<i32>} : memref<1x8x1xf32, #tpu.memory_space<vmem>>, vector<1x8x1xf32>,
    %c0_17 = arith.constant 0 : index
    %c0_18 = arith.constant 0 : index
    %c0_19 = arith.constant 0 : index
    %21 = vector.load %arg8[%c0_17, %c0_18, %c0_19] : memref<1x8x8xf32, #tpu.memory_space<vmem>>, vector<1x8x8xf32>
    %22 = vector.broadcast %11 : vector<1x8x1xf32> to vector<1x8x8xf32>
    %23 = arith.mulf %22, %21 : vector<1x8x8xf32>
    %24 = arith.truncf %14 : vector<1x8x8xf32> to vector<1x8x8xbf16>
    %c0_20 = arith.constant 0 : index
    %c0_21 = arith.constant 0 : index
    %c0_22 = arith.constant 0 : index
    %25 = vector.load %arg4[%c0_20, %c0_21, %c0_22] : memref<1x8x8xbf16, #tpu.memory_space<vmem>>, vector<1x8x8xbf16>
    "tpu.trace_start"() <{level = 10 : i32, message = "bqk,bkd->bqd"}> : () -> ()
    %cst_23 = arith.constant dense<0.000000e+00> : vector<1x8x8xf32>
    %26 = tpu.matmul %24, %25, %cst_23 {dimension_numbers = #tpu.dot_dimension_numbers<[2], [1], [1], [2], [0, 0, 0, 1, 1, 2], [0], [0]>} : vector<1x8x8xbf16>, vector<1x8x8xbf16>, vector<1x8x8xf32> -> vector<1x8x8xf32>
    "tpu.trace_stop"() : () -> ()
    %27 = arith.addf %23, %26 : vector<1x8x8xf32>
    %c0_24 = arith.constant 0 : index
    %c0_25 = arith.constant 0 : index
    %c0_26 = arith.constant 0 : index
    %28 = vector.load %arg8[%c0_24, %c0_25, %c0_26] : memref<1x8x8xf32, #tpu.memory_space<vmem>>, vector<1x8x8xf32>
    tpu.vector_store %arg8[%c0_24, %c0_25, %c0_26], %27 {strides = array<i32>} : memref<1x8x8xf32, #tpu.memory_space<vmem>>, vector<1x8x8xf32>,
    %c0_27 = arith.constant 0 : index
    %c0_28 = arith.constant 0 : index
    %c0_29 = arith.constant 0 : index
    %29 = vector.load %arg6[%c0_27, %c0_28, %c0_29] : memref<1x8x1xf32, #tpu.memory_space<vmem>>, vector<1x8x1xf32>
    tpu.vector_store %arg6[%c0_27, %c0_28, %c0_29], %9 {strides = array<i32>} : memref<1x8x1xf32, #tpu.memory_space<vmem>>, vector<1x8x1xf32>,
    %c0_i32_30 = arith.constant 0 : i32
    %30 = arith.cmpi eq, %arg1, %c0_i32_30 : i32
    %31 = arith.extui %30 : i1 to i32
    %c0_i32_31 = arith.constant 0 : i32
    %32 = arith.cmpi ne, %31, %c0_i32_31 : i32
    scf.if %32 {
      %c0_32 = arith.constant 0 : index
      %c0_33 = arith.constant 0 : index
      %c0_34 = arith.constant 0 : index
      %33 = vector.load %arg8[%c0_32, %c0_33, %c0_34] : memref<1x8x8xf32, #tpu.memory_space<vmem>>, vector<1x8x8xf32>
      %c0_35 = arith.constant 0 : index
      %c0_36 = arith.constant 0 : index
      %c0_37 = arith.constant 0 : index
      %34 = vector.load %arg7[%c0_35, %c0_36, %c0_37] : memref<1x8x1xf32, #tpu.memory_space<vmem>>, vector<1x8x1xf32>
      %35 = tpu.reciprocal %34 {approx = true} : vector<1x8x1xf32> -> vector<1x8x1xf32>
      %36 = vector.broadcast %35 : vector<1x8x1xf32> to vector<1x8x8xf32>
      %37 = arith.mulf %33, %36 : vector<1x8x8xf32>
      %38 = arith.truncf %37 : vector<1x8x8xf32> to vector<1x8x8xbf16>
      %c0_38 = arith.constant 0 : index
      %c0_39 = arith.constant 0 : index
      %c0_40 = arith.constant 0 : index
      %39 = vector.load %arg5[%c0_38, %c0_39, %c0_40] : memref<1x8x8xbf16, #tpu.memory_space<vmem>>, vector<1x8x8xbf16>
      tpu.vector_store %arg5[%c0_38, %c0_39, %c0_40], %38 {strides = array<i32>} : memref<1x8x8xbf16, #tpu.memory_space<vmem>>, vector<1x8x8xbf16>,
    } else {
    }
    return
  }
  func.func @transform_0(%arg0: i32, %arg1: i32) -> (i32, i32, i32) {
    %c0_i32 = arith.constant 0 : i32
    %c0_i32_0 = arith.constant 0 : i32
    %c0_i32_1 = arith.constant 0 : i32
    return %arg0, %c0_i32, %c0_i32_0 : i32, i32, i32
  }
  func.func @transform_1(%arg0: i32, %arg1: i32) -> (i32, i32, i32) {
    %c0_i32 = arith.constant 0 : i32
    %c0_i32_0 = arith.constant 0 : i32
    return %arg0, %arg1, %c0_i32 : i32, i32, i32
  }
  func.func @transform_2(%arg0: i32, %arg1: i32) -> (i32, i32, i32) {
    %c0_i32 = arith.constant 0 : i32
    %c0_i32_0 = arith.constant 0 : i32
    return %arg0, %arg1, %c0_i32 : i32, i32, i32
  }
  func.func @transform_3(%arg0: i32, %arg1: i32) -> (i32, i32, i32) {
    %c0_i32 = arith.constant 0 : i32
    %c0_i32_0 = arith.constant 0 : i32
    %c0_i32_1 = arith.constant 0 : i32
    return %arg0, %c0_i32, %c0_i32_0 : i32, i32, i32
  }
}

module attributes {stable_mosaic.version = 11 : i64} {
  func.func @_self_epi_kernel(%arg0: i32, %arg1: memref<16x32xbf16, #tpu.memory_space<vmem>>, %arg2: memref<16x32xf32, #tpu.memory_space<vmem>>, %arg3: memref<16x32xf32, #tpu.memory_space<vmem>>, %arg4: memref<32x32xbf16, #tpu.memory_space<vmem>>, %arg5: memref<1x32xf32, #tpu.memory_space<vmem>>, %arg6: memref<1x32xf32, #tpu.memory_space<vmem>>, %arg7: memref<1x32xf32, #tpu.memory_space<vmem>>, %arg8: memref<32x32xbf16, #tpu.memory_space<vmem>>, %arg9: memref<1x32xf32, #tpu.memory_space<vmem>>, %arg10: memref<16x32xf32, #tpu.memory_space<vmem>>, %arg11: memref<16x32xbf16, #tpu.memory_space<vmem>>) attributes {dimension_semantics = [#tpu.dimension_semantics<parallel>], iteration_bounds = array<i64: 1>, scalar_prefetch = 0 : i64, scratch_operands = 0 : i64, tpu.core_type = #tpu.core_type<tc>, window_params = [{transform_indices = @transform_0, window_bounds = array<i64: 16, 32>}, {transform_indices = @transform_1, window_bounds = array<i64: 16, 32>}, {transform_indices = @transform_2, window_bounds = array<i64: 16, 32>}, {pipeline_mode = #tpu.pipeline_mode<synchronous>, transform_indices = @transform_3, window_bounds = array<i64: 32, 32>}, {pipeline_mode = #tpu.pipeline_mode<synchronous>, transform_indices = @transform_4, window_bounds = array<i64: 1, 32>}, {pipeline_mode = #tpu.pipeline_mode<synchronous>, transform_indices = @transform_5, window_bounds = array<i64: 1, 32>}, {pipeline_mode = #tpu.pipeline_mode<synchronous>, transform_indices = @transform_6, window_bounds = array<i64: 1, 32>}, {pipeline_mode = #tpu.pipeline_mode<synchronous>, transform_indices = @transform_7, window_bounds = array<i64: 32, 32>}, {pipeline_mode = #tpu.pipeline_mode<synchronous>, transform_indices = @transform_8, window_bounds = array<i64: 1, 32>}, {transform_indices = @transform_9, window_bounds = array<i64: 16, 32>}, {transform_indices = @transform_10, window_bounds = array<i64: 16, 32>}]} {
    %c0 = arith.constant 0 : index
    %c0_0 = arith.constant 0 : index
    %0 = vector.load %arg2[%c0, %c0_0] : memref<16x32xf32, #tpu.memory_space<vmem>>, vector<16x32xf32>
    %c0_1 = arith.constant 0 : index
    %c0_2 = arith.constant 0 : index
    %1 = vector.load %arg1[%c0_1, %c0_2] : memref<16x32xbf16, #tpu.memory_space<vmem>>, vector<16x32xbf16>
    %c0_3 = arith.constant 0 : index
    %c0_4 = arith.constant 0 : index
    %2 = vector.load %arg4[%c0_3, %c0_4] : memref<32x32xbf16, #tpu.memory_space<vmem>>, vector<32x32xbf16>
    %cst = arith.constant dense<0.000000e+00> : vector<16x32xf32>
    %3 = tpu.matmul %1, %2, %cst {dimension_numbers = #tpu.dot_dimension_numbers<[1], [0], [0], [1], [0, 0, 1, 1], [], []>} : vector<16x32xbf16>, vector<32x32xbf16>, vector<16x32xf32> -> vector<16x32xf32>
    %4 = arith.addf %0, %3 : vector<16x32xf32>
    %c0_5 = arith.constant 0 : index
    %c0_6 = arith.constant 0 : index
    %5 = vector.load %arg5[%c0_5, %c0_6] : memref<1x32xf32, #tpu.memory_space<vmem>>, vector<1x32xf32>
    %6 = vector.broadcast %5 : vector<1x32xf32> to vector<16x32xf32>
    %7 = arith.addf %4, %6 : vector<16x32xf32>
    %c0_7 = arith.constant 0 : index
    %c0_8 = arith.constant 0 : index
    %8 = vector.load %arg6[%c0_7, %c0_8] : memref<1x32xf32, #tpu.memory_space<vmem>>, vector<1x32xf32>
    %c0_9 = arith.constant 0 : index
    %c0_10 = arith.constant 0 : index
    %9 = vector.load %arg7[%c0_9, %c0_10] : memref<1x32xf32, #tpu.memory_space<vmem>>, vector<1x32xf32>
    %cst_11 = arith.constant dense<0.000000e+00> : vector<16xf32>
    %10 = vector.multi_reduction <add>, %7, %cst_11 [1] : vector<16x32xf32> to vector<16xf32>
    %11 = vector.shape_cast %10 : vector<16xf32> to vector<16x1xf32>
    %cst_12 = arith.constant 3.200000e+01 : f32
    %12 = vector.broadcast %cst_12 : f32 to vector<16x1xf32>
    %13 = arith.divf %11, %12 : vector<16x1xf32>
    %14 = vector.broadcast %13 : vector<16x1xf32> to vector<16x32xf32>
    %15 = arith.subf %7, %14 : vector<16x32xf32>
    %16 = arith.mulf %15, %15 : vector<16x32xf32>
    %cst_13 = arith.constant dense<0.000000e+00> : vector<16xf32>
    %17 = vector.multi_reduction <add>, %16, %cst_13 [1] : vector<16x32xf32> to vector<16xf32>
    %18 = vector.shape_cast %17 : vector<16xf32> to vector<16x1xf32>
    %cst_14 = arith.constant 3.200000e+01 : f32
    %19 = vector.broadcast %cst_14 : f32 to vector<16x1xf32>
    %20 = arith.divf %18, %19 : vector<16x1xf32>
    %21 = vector.broadcast %13 : vector<16x1xf32> to vector<16x32xf32>
    %22 = arith.subf %7, %21 : vector<16x32xf32>
    %cst_15 = arith.constant 9.99999974E-6 : f32
    %23 = vector.broadcast %cst_15 : f32 to vector<16x1xf32>
    %24 = arith.addf %20, %23 : vector<16x1xf32>
    %25 = math.rsqrt %24 : vector<16x1xf32>
    %26 = vector.broadcast %25 : vector<16x1xf32> to vector<16x32xf32>
    %27 = arith.mulf %22, %26 : vector<16x32xf32>
    %28 = vector.broadcast %8 : vector<1x32xf32> to vector<16x32xf32>
    %29 = arith.mulf %27, %28 : vector<16x32xf32>
    %30 = vector.broadcast %9 : vector<1x32xf32> to vector<16x32xf32>
    %31 = arith.addf %29, %30 : vector<16x32xf32>
    %c0_16 = arith.constant 0 : index
    %c0_17 = arith.constant 0 : index
    %32 = vector.load %arg10[%c0_16, %c0_17] : memref<16x32xf32, #tpu.memory_space<vmem>>, vector<16x32xf32>
    tpu.vector_store %arg10[%c0_16, %c0_17], %31 {strides = array<i32>} : memref<16x32xf32, #tpu.memory_space<vmem>>, vector<16x32xf32>,
    %c0_18 = arith.constant 0 : index
    %c0_19 = arith.constant 0 : index
    %33 = vector.load %arg3[%c0_18, %c0_19] : memref<16x32xf32, #tpu.memory_space<vmem>>, vector<16x32xf32>
    %34 = arith.addf %31, %33 : vector<16x32xf32>
    %c0_20 = arith.constant 0 : index
    %c0_21 = arith.constant 0 : index
    %35 = vector.load %arg8[%c0_20, %c0_21] : memref<32x32xbf16, #tpu.memory_space<vmem>>, vector<32x32xbf16>
    %36 = arith.truncf %34 : vector<16x32xf32> to vector<16x32xbf16>
    %cst_22 = arith.constant dense<0.000000e+00> : vector<16x32xf32>
    %37 = tpu.matmul %36, %35, %cst_22 {dimension_numbers = #tpu.dot_dimension_numbers<[1], [0], [0], [1], [0, 0, 1, 1], [], []>} : vector<16x32xbf16>, vector<32x32xbf16>, vector<16x32xf32> -> vector<16x32xf32>
    %c0_23 = arith.constant 0 : index
    %c0_24 = arith.constant 0 : index
    %38 = vector.load %arg9[%c0_23, %c0_24] : memref<1x32xf32, #tpu.memory_space<vmem>>, vector<1x32xf32>
    %39 = vector.broadcast %38 : vector<1x32xf32> to vector<16x32xf32>
    %40 = arith.addf %37, %39 : vector<16x32xf32>
    %41 = arith.truncf %40 : vector<16x32xf32> to vector<16x32xbf16>
    %c0_25 = arith.constant 0 : index
    %c0_26 = arith.constant 0 : index
    %42 = vector.load %arg11[%c0_25, %c0_26] : memref<16x32xbf16, #tpu.memory_space<vmem>>, vector<16x32xbf16>
    tpu.vector_store %arg11[%c0_25, %c0_26], %41 {strides = array<i32>} : memref<16x32xbf16, #tpu.memory_space<vmem>>, vector<16x32xbf16>,
    return
  }
  func.func @transform_0(%arg0: i32) -> (i32, i32) {
    %c0_i32 = arith.constant 0 : i32
    %c0_i32_0 = arith.constant 0 : i32
    return %arg0, %c0_i32 : i32, i32
  }
  func.func @transform_1(%arg0: i32) -> (i32, i32) {
    %c0_i32 = arith.constant 0 : i32
    %c0_i32_0 = arith.constant 0 : i32
    return %arg0, %c0_i32 : i32, i32
  }
  func.func @transform_2(%arg0: i32) -> (i32, i32) {
    %c0_i32 = arith.constant 0 : i32
    %c0_i32_0 = arith.constant 0 : i32
    return %arg0, %c0_i32 : i32, i32
  }
  func.func @transform_3(%arg0: i32) -> (i32, i32) {
    %c0_i32 = arith.constant 0 : i32
    %c0_i32_0 = arith.constant 0 : i32
    %c0_i32_1 = arith.constant 0 : i32
    return %c0_i32, %c0_i32_0 : i32, i32
  }
  func.func @transform_4(%arg0: i32) -> (i32, i32) {
    %c0_i32 = arith.constant 0 : i32
    %c0_i32_0 = arith.constant 0 : i32
    %c0_i32_1 = arith.constant 0 : i32
    return %c0_i32, %c0_i32_0 : i32, i32
  }
  func.func @transform_5(%arg0: i32) -> (i32, i32) {
    %c0_i32 = arith.constant 0 : i32
    %c0_i32_0 = arith.constant 0 : i32
    %c0_i32_1 = arith.constant 0 : i32
    return %c0_i32, %c0_i32_0 : i32, i32
  }
  func.func @transform_6(%arg0: i32) -> (i32, i32) {
    %c0_i32 = arith.constant 0 : i32
    %c0_i32_0 = arith.constant 0 : i32
    %c0_i32_1 = arith.constant 0 : i32
    return %c0_i32, %c0_i32_0 : i32, i32
  }
  func.func @transform_7(%arg0: i32) -> (i32, i32) {
    %c0_i32 = arith.constant 0 : i32
    %c0_i32_0 = arith.constant 0 : i32
    %c0_i32_1 = arith.constant 0 : i32
    return %c0_i32, %c0_i32_0 : i32, i32
  }
  func.func @transform_8(%arg0: i32) -> (i32, i32) {
    %c0_i32 = arith.constant 0 : i32
    %c0_i32_0 = arith.constant 0 : i32
    %c0_i32_1 = arith.constant 0 : i32
    return %c0_i32, %c0_i32_0 : i32, i32
  }
  func.func @transform_9(%arg0: i32) -> (i32, i32) {
    %c0_i32 = arith.constant 0 : i32
    %c0_i32_0 = arith.constant 0 : i32
    return %arg0, %c0_i32 : i32, i32
  }
  func.func @transform_10(%arg0: i32) -> (i32, i32) {
    %c0_i32 = arith.constant 0 : i32
    %c0_i32_0 = arith.constant 0 : i32
    return %arg0, %c0_i32 : i32, i32
  }
}

module attributes {stable_mosaic.version = 11 : i64} {
  func.func @_kv_kernel(%arg0: i32, %arg1: memref<32x32xf32, #tpu.memory_space<vmem>>, %arg2: memref<32x32xf32, #tpu.memory_space<vmem>>, %arg3: memref<32x32xbf16, #tpu.memory_space<vmem>>, %arg4: memref<1x32xf32, #tpu.memory_space<vmem>>, %arg5: memref<32x32xbf16, #tpu.memory_space<vmem>>, %arg6: memref<1x32xf32, #tpu.memory_space<vmem>>, %arg7: memref<32x32xbf16, #tpu.memory_space<vmem>>, %arg8: memref<32x32xbf16, #tpu.memory_space<vmem>>) attributes {dimension_semantics = [#tpu.dimension_semantics<parallel>], iteration_bounds = array<i64: 1>, scalar_prefetch = 0 : i64, scratch_operands = 0 : i64, tpu.core_type = #tpu.core_type<tc>, window_params = [{transform_indices = @transform_0, window_bounds = array<i64: 32, 32>}, {transform_indices = @transform_1, window_bounds = array<i64: 32, 32>}, {pipeline_mode = #tpu.pipeline_mode<synchronous>, transform_indices = @transform_2, window_bounds = array<i64: 32, 32>}, {pipeline_mode = #tpu.pipeline_mode<synchronous>, transform_indices = @transform_3, window_bounds = array<i64: 1, 32>}, {pipeline_mode = #tpu.pipeline_mode<synchronous>, transform_indices = @transform_4, window_bounds = array<i64: 32, 32>}, {pipeline_mode = #tpu.pipeline_mode<synchronous>, transform_indices = @transform_5, window_bounds = array<i64: 1, 32>}, {transform_indices = @transform_6, window_bounds = array<i64: 32, 32>}, {transform_indices = @transform_7, window_bounds = array<i64: 32, 32>}]} {
    %c0 = arith.constant 0 : index
    %c0_0 = arith.constant 0 : index
    %0 = vector.load %arg1[%c0, %c0_0] : memref<32x32xf32, #tpu.memory_space<vmem>>, vector<32x32xf32>
    %c0_1 = arith.constant 0 : index
    %c0_2 = arith.constant 0 : index
    %1 = vector.load %arg2[%c0_1, %c0_2] : memref<32x32xf32, #tpu.memory_space<vmem>>, vector<32x32xf32>
    %2 = arith.addf %0, %1 : vector<32x32xf32>
    %c0_3 = arith.constant 0 : index
    %c0_4 = arith.constant 0 : index
    %3 = vector.load %arg3[%c0_3, %c0_4] : memref<32x32xbf16, #tpu.memory_space<vmem>>, vector<32x32xbf16>
    %4 = arith.truncf %2 : vector<32x32xf32> to vector<32x32xbf16>
    %cst = arith.constant dense<0.000000e+00> : vector<32x32xf32>
    %5 = tpu.matmul %4, %3, %cst {dimension_numbers = #tpu.dot_dimension_numbers<[1], [0], [0], [1], [0, 0, 1, 1], [], []>} : vector<32x32xbf16>, vector<32x32xbf16>, vector<32x32xf32> -> vector<32x32xf32>
    %c0_5 = arith.constant 0 : index
    %c0_6 = arith.constant 0 : index
    %6 = vector.load %arg4[%c0_5, %c0_6] : memref<1x32xf32, #tpu.memory_space<vmem>>, vector<1x32xf32>
    %7 = vector.broadcast %6 : vector<1x32xf32> to vector<32x32xf32>
    %8 = arith.addf %5, %7 : vector<32x32xf32>
    %9 = arith.truncf %8 : vector<32x32xf32> to vector<32x32xbf16>
    %c0_7 = arith.constant 0 : index
    %c0_8 = arith.constant 0 : index
    %10 = vector.load %arg7[%c0_7, %c0_8] : memref<32x32xbf16, #tpu.memory_space<vmem>>, vector<32x32xbf16>
    tpu.vector_store %arg7[%c0_7, %c0_8], %9 {strides = array<i32>} : memref<32x32xbf16, #tpu.memory_space<vmem>>, vector<32x32xbf16>,
    %c0_9 = arith.constant 0 : index
    %c0_10 = arith.constant 0 : index
    %11 = vector.load %arg5[%c0_9, %c0_10] : memref<32x32xbf16, #tpu.memory_space<vmem>>, vector<32x32xbf16>
    %12 = arith.truncf %0 : vector<32x32xf32> to vector<32x32xbf16>
    %cst_11 = arith.constant dense<0.000000e+00> : vector<32x32xf32>
    %13 = tpu.matmul %12, %11, %cst_11 {dimension_numbers = #tpu.dot_dimension_numbers<[1], [0], [0], [1], [0, 0, 1, 1], [], []>} : vector<32x32xbf16>, vector<32x32xbf16>, vector<32x32xf32> -> vector<32x32xf32>
    %c0_12 = arith.constant 0 : index
    %c0_13 = arith.constant 0 : index
    %14 = vector.load %arg6[%c0_12, %c0_13] : memref<1x32xf32, #tpu.memory_space<vmem>>, vector<1x32xf32>
    %15 = vector.broadcast %14 : vector<1x32xf32> to vector<32x32xf32>
    %16 = arith.addf %13, %15 : vector<32x32xf32>
    %17 = arith.truncf %16 : vector<32x32xf32> to vector<32x32xbf16>
    %c0_14 = arith.constant 0 : index
    %c0_15 = arith.constant 0 : index
    %18 = vector.load %arg8[%c0_14, %c0_15] : memref<32x32xbf16, #tpu.memory_space<vmem>>, vector<32x32xbf16>
    tpu.vector_store %arg8[%c0_14, %c0_15], %17 {strides = array<i32>} : memref<32x32xbf16, #tpu.memory_space<vmem>>, vector<32x32xbf16>,
    return
  }
  func.func @transform_0(%arg0: i32) -> (i32, i32) {
    %c0_i32 = arith.constant 0 : i32
    %c0_i32_0 = arith.constant 0 : i32
    return %arg0, %c0_i32 : i32, i32
  }
  func.func @transform_1(%arg0: i32) -> (i32, i32) {
    %c0_i32 = arith.constant 0 : i32
    %c0_i32_0 = arith.constant 0 : i32
    return %arg0, %c0_i32 : i32, i32
  }
  func.func @transform_2(%arg0: i32) -> (i32, i32) {
    %c0_i32 = arith.constant 0 : i32
    %c0_i32_0 = arith.constant 0 : i32
    %c0_i32_1 = arith.constant 0 : i32
    return %c0_i32, %c0_i32_0 : i32, i32
  }
  func.func @transform_3(%arg0: i32) -> (i32, i32) {
    %c0_i32 = arith.constant 0 : i32
    %c0_i32_0 = arith.constant 0 : i32
    %c0_i32_1 = arith.constant 0 : i32
    return %c0_i32, %c0_i32_0 : i32, i32
  }
  func.func @transform_4(%arg0: i32) -> (i32, i32) {
    %c0_i32 = arith.constant 0 : i32
    %c0_i32_0 = arith.constant 0 : i32
    %c0_i32_1 = arith.constant 0 : i32
    return %c0_i32, %c0_i32_0 : i32, i32
  }
  func.func @transform_5(%arg0: i32) -> (i32, i32) {
    %c0_i32 = arith.constant 0 : i32
    %c0_i32_0 = arith.constant 0 : i32
    %c0_i32_1 = arith.constant 0 : i32
    return %c0_i32, %c0_i32_0 : i32, i32
  }
  func.func @transform_6(%arg0: i32) -> (i32, i32) {
    %c0_i32 = arith.constant 0 : i32
    %c0_i32_0 = arith.constant 0 : i32
    return %arg0, %c0_i32 : i32, i32
  }
  func.func @transform_7(%arg0: i32) -> (i32, i32) {
    %c0_i32 = arith.constant 0 : i32
    %c0_i32_0 = arith.constant 0 : i32
    return %arg0, %c0_i32 : i32, i32
  }
}

module attributes {stable_mosaic.version = 11 : i64} {
  func.func @_cross_epi_ffn_kernel(%arg0: i32, %arg1: memref<16x32xbf16, #tpu.memory_space<vmem>>, %arg2: memref<16x32xf32, #tpu.memory_space<vmem>>, %arg3: memref<32x32xbf16, #tpu.memory_space<vmem>>, %arg4: memref<1x32xf32, #tpu.memory_space<vmem>>, %arg5: memref<1x32xf32, #tpu.memory_space<vmem>>, %arg6: memref<1x32xf32, #tpu.memory_space<vmem>>, %arg7: memref<32x64xbf16, #tpu.memory_space<vmem>>, %arg8: memref<1x64xf32, #tpu.memory_space<vmem>>, %arg9: memref<64x32xbf16, #tpu.memory_space<vmem>>, %arg10: memref<1x32xf32, #tpu.memory_space<vmem>>, %arg11: memref<1x32xf32, #tpu.memory_space<vmem>>, %arg12: memref<1x32xf32, #tpu.memory_space<vmem>>, %arg13: memref<16x32xf32, #tpu.memory_space<vmem>>) attributes {dimension_semantics = [#tpu.dimension_semantics<parallel>], iteration_bounds = array<i64: 1>, scalar_prefetch = 0 : i64, scratch_operands = 0 : i64, tpu.core_type = #tpu.core_type<tc>, window_params = [{transform_indices = @transform_0, window_bounds = array<i64: 16, 32>}, {transform_indices = @transform_1, window_bounds = array<i64: 16, 32>}, {pipeline_mode = #tpu.pipeline_mode<synchronous>, transform_indices = @transform_2, window_bounds = array<i64: 32, 32>}, {pipeline_mode = #tpu.pipeline_mode<synchronous>, transform_indices = @transform_3, window_bounds = array<i64: 1, 32>}, {pipeline_mode = #tpu.pipeline_mode<synchronous>, transform_indices = @transform_4, window_bounds = array<i64: 1, 32>}, {pipeline_mode = #tpu.pipeline_mode<synchronous>, transform_indices = @transform_5, window_bounds = array<i64: 1, 32>}, {pipeline_mode = #tpu.pipeline_mode<synchronous>, transform_indices = @transform_6, window_bounds = array<i64: 32, 64>}, {pipeline_mode = #tpu.pipeline_mode<synchronous>, transform_indices = @transform_7, window_bounds = array<i64: 1, 64>}, {pipeline_mode = #tpu.pipeline_mode<synchronous>, transform_indices = @transform_8, window_bounds = array<i64: 64, 32>}, {pipeline_mode = #tpu.pipeline_mode<synchronous>, transform_indices = @transform_9, window_bounds = array<i64: 1, 32>}, {pipeline_mode = #tpu.pipeline_mode<synchronous>, transform_indices = @transform_10, window_bounds = array<i64: 1, 32>}, {pipeline_mode = #tpu.pipeline_mode<synchronous>, transform_indices = @transform_11, window_bounds = array<i64: 1, 32>}, {transform_indices = @transform_12, window_bounds = array<i64: 16, 32>}]} {
    %c0 = arith.constant 0 : index
    %c0_0 = arith.constant 0 : index
    %0 = vector.load %arg2[%c0, %c0_0] : memref<16x32xf32, #tpu.memory_space<vmem>>, vector<16x32xf32>
    %c0_1 = arith.constant 0 : index
    %c0_2 = arith.constant 0 : index
    %1 = vector.load %arg1[%c0_1, %c0_2] : memref<16x32xbf16, #tpu.memory_space<vmem>>, vector<16x32xbf16>
    %c0_3 = arith.constant 0 : index
    %c0_4 = arith.constant 0 : index
    %2 = vector.load %arg3[%c0_3, %c0_4] : memref<32x32xbf16, #tpu.memory_space<vmem>>, vector<32x32xbf16>
    %cst = arith.constant dense<0.000000e+00> : vector<16x32xf32>
    %3 = tpu.matmul %1, %2, %cst {dimension_numbers = #tpu.dot_dimension_numbers<[1], [0], [0], [1], [0, 0, 1, 1], [], []>} : vector<16x32xbf16>, vector<32x32xbf16>, vector<16x32xf32> -> vector<16x32xf32>
    %4 = arith.addf %0, %3 : vector<16x32xf32>
    %c0_5 = arith.constant 0 : index
    %c0_6 = arith.constant 0 : index
    %5 = vector.load %arg4[%c0_5, %c0_6] : memref<1x32xf32, #tpu.memory_space<vmem>>, vector<1x32xf32>
    %6 = vector.broadcast %5 : vector<1x32xf32> to vector<16x32xf32>
    %7 = arith.addf %4, %6 : vector<16x32xf32>
    %c0_7 = arith.constant 0 : index
    %c0_8 = arith.constant 0 : index
    %8 = vector.load %arg5[%c0_7, %c0_8] : memref<1x32xf32, #tpu.memory_space<vmem>>, vector<1x32xf32>
    %c0_9 = arith.constant 0 : index
    %c0_10 = arith.constant 0 : index
    %9 = vector.load %arg6[%c0_9, %c0_10] : memref<1x32xf32, #tpu.memory_space<vmem>>, vector<1x32xf32>
    %cst_11 = arith.constant dense<0.000000e+00> : vector<16xf32>
    %10 = vector.multi_reduction <add>, %7, %cst_11 [1] : vector<16x32xf32> to vector<16xf32>
    %11 = vector.shape_cast %10 : vector<16xf32> to vector<16x1xf32>
    %cst_12 = arith.constant 3.200000e+01 : f32
    %12 = vector.broadcast %cst_12 : f32 to vector<16x1xf32>
    %13 = arith.divf %11, %12 : vector<16x1xf32>
    %14 = vector.broadcast %13 : vector<16x1xf32> to vector<16x32xf32>
    %15 = arith.subf %7, %14 : vector<16x32xf32>
    %16 = arith.mulf %15, %15 : vector<16x32xf32>
    %cst_13 = arith.constant dense<0.000000e+00> : vector<16xf32>
    %17 = vector.multi_reduction <add>, %16, %cst_13 [1] : vector<16x32xf32> to vector<16xf32>
    %18 = vector.shape_cast %17 : vector<16xf32> to vector<16x1xf32>
    %cst_14 = arith.constant 3.200000e+01 : f32
    %19 = vector.broadcast %cst_14 : f32 to vector<16x1xf32>
    %20 = arith.divf %18, %19 : vector<16x1xf32>
    %21 = vector.broadcast %13 : vector<16x1xf32> to vector<16x32xf32>
    %22 = arith.subf %7, %21 : vector<16x32xf32>
    %cst_15 = arith.constant 9.99999974E-6 : f32
    %23 = vector.broadcast %cst_15 : f32 to vector<16x1xf32>
    %24 = arith.addf %20, %23 : vector<16x1xf32>
    %25 = math.rsqrt %24 : vector<16x1xf32>
    %26 = vector.broadcast %25 : vector<16x1xf32> to vector<16x32xf32>
    %27 = arith.mulf %22, %26 : vector<16x32xf32>
    %28 = vector.broadcast %8 : vector<1x32xf32> to vector<16x32xf32>
    %29 = arith.mulf %27, %28 : vector<16x32xf32>
    %30 = vector.broadcast %9 : vector<1x32xf32> to vector<16x32xf32>
    %31 = arith.addf %29, %30 : vector<16x32xf32>
    %c0_16 = arith.constant 0 : index
    %c0_17 = arith.constant 0 : index
    %32 = vector.load %arg7[%c0_16, %c0_17] : memref<32x64xbf16, #tpu.memory_space<vmem>>, vector<32x64xbf16>
    %33 = arith.truncf %31 : vector<16x32xf32> to vector<16x32xbf16>
    %cst_18 = arith.constant dense<0.000000e+00> : vector<16x64xf32>
    %34 = tpu.matmul %33, %32, %cst_18 {dimension_numbers = #tpu.dot_dimension_numbers<[1], [0], [0], [1], [0, 0, 1, 1], [], []>} : vector<16x32xbf16>, vector<32x64xbf16>, vector<16x64xf32> -> vector<16x64xf32>
    %c0_19 = arith.constant 0 : index
    %c0_20 = arith.constant 0 : index
    %35 = vector.load %arg8[%c0_19, %c0_20] : memref<1x64xf32, #tpu.memory_space<vmem>>, vector<1x64xf32>
    %36 = vector.broadcast %35 : vector<1x64xf32> to vector<16x64xf32>
    %37 = arith.addf %34, %36 : vector<16x64xf32>
    %cst_21 = arith.constant 0.000000e+00 : f32
    %38 = vector.broadcast %cst_21 : f32 to vector<16x64xf32>
    %39 = arith.maximumf %37, %38 : vector<16x64xf32>
    %c0_22 = arith.constant 0 : index
    %c0_23 = arith.constant 0 : index
    %40 = vector.load %arg9[%c0_22, %c0_23] : memref<64x32xbf16, #tpu.memory_space<vmem>>, vector<64x32xbf16>
    %41 = arith.truncf %39 : vector<16x64xf32> to vector<16x64xbf16>
    %cst_24 = arith.constant dense<0.000000e+00> : vector<16x32xf32>
    %42 = tpu.matmul %41, %40, %cst_24 {dimension_numbers = #tpu.dot_dimension_numbers<[1], [0], [0], [1], [0, 0, 1, 1], [], []>} : vector<16x64xbf16>, vector<64x32xbf16>, vector<16x32xf32> -> vector<16x32xf32>
    %43 = arith.addf %31, %42 : vector<16x32xf32>
    %c0_25 = arith.constant 0 : index
    %c0_26 = arith.constant 0 : index
    %44 = vector.load %arg10[%c0_25, %c0_26] : memref<1x32xf32, #tpu.memory_space<vmem>>, vector<1x32xf32>
    %45 = vector.broadcast %44 : vector<1x32xf32> to vector<16x32xf32>
    %46 = arith.addf %43, %45 : vector<16x32xf32>
    %c0_27 = arith.constant 0 : index
    %c0_28 = arith.constant 0 : index
    %47 = vector.load %arg11[%c0_27, %c0_28] : memref<1x32xf32, #tpu.memory_space<vmem>>, vector<1x32xf32>
    %c0_29 = arith.constant 0 : index
    %c0_30 = arith.constant 0 : index
    %48 = vector.load %arg12[%c0_29, %c0_30] : memref<1x32xf32, #tpu.memory_space<vmem>>, vector<1x32xf32>
    %cst_31 = arith.constant dense<0.000000e+00> : vector<16xf32>
    %49 = vector.multi_reduction <add>, %46, %cst_31 [1] : vector<16x32xf32> to vector<16xf32>
    %50 = vector.shape_cast %49 : vector<16xf32> to vector<16x1xf32>
    %cst_32 = arith.constant 3.200000e+01 : f32
    %51 = vector.broadcast %cst_32 : f32 to vector<16x1xf32>
    %52 = arith.divf %50, %51 : vector<16x1xf32>
    %53 = vector.broadcast %52 : vector<16x1xf32> to vector<16x32xf32>
    %54 = arith.subf %46, %53 : vector<16x32xf32>
    %55 = arith.mulf %54, %54 : vector<16x32xf32>
    %cst_33 = arith.constant dense<0.000000e+00> : vector<16xf32>
    %56 = vector.multi_reduction <add>, %55, %cst_33 [1] : vector<16x32xf32> to vector<16xf32>
    %57 = vector.shape_cast %56 : vector<16xf32> to vector<16x1xf32>
    %cst_34 = arith.constant 3.200000e+01 : f32
    %58 = vector.broadcast %cst_34 : f32 to vector<16x1xf32>
    %59 = arith.divf %57, %58 : vector<16x1xf32>
    %60 = vector.broadcast %52 : vector<16x1xf32> to vector<16x32xf32>
    %61 = arith.subf %46, %60 : vector<16x32xf32>
    %cst_35 = arith.constant 9.99999974E-6 : f32
    %62 = vector.broadcast %cst_35 : f32 to vector<16x1xf32>
    %63 = arith.addf %59, %62 : vector<16x1xf32>
    %64 = math.rsqrt %63 : vector<16x1xf32>
    %65 = vector.broadcast %64 : vector<16x1xf32> to vector<16x32xf32>
    %66 = arith.mulf %61, %65 : vector<16x32xf32>
    %67 = vector.broadcast %47 : vector<1x32xf32> to vector<16x32xf32>
    %68 = arith.mulf %66, %67 : vector<16x32xf32>
    %69 = vector.broadcast %48 : vector<1x32xf32> to vector<16x32xf32>
    %70 = arith.addf %68, %69 : vector<16x32xf32>
    %c0_36 = arith.constant 0 : index
    %c0_37 = arith.constant 0 : index
    %71 = vector.load %arg13[%c0_36, %c0_37] : memref<16x32xf32, #tpu.memory_space<vmem>>, vector<16x32xf32>
    tpu.vector_store %arg13[%c0_36, %c0_37], %70 {strides = array<i32>} : memref<16x32xf32, #tpu.memory_space<vmem>>, vector<16x32xf32>,
    return
  }
  func.func @transform_0(%arg0: i32) -> (i32, i32) {
    %c0_i32 = arith.constant 0 : i32
    %c0_i32_0 = arith.constant 0 : i32
    return %arg0, %c0_i32 : i32, i32
  }
  func.func @transform_1(%arg0: i32) -> (i32, i32) {
    %c0_i32 = arith.constant 0 : i32
    %c0_i32_0 = arith.constant 0 : i32
    return %arg0, %c0_i32 : i32, i32
  }
  func.func @transform_2(%arg0: i32) -> (i32, i32) {
    %c0_i32 = arith.constant 0 : i32
    %c0_i32_0 = arith.constant 0 : i32
    %c0_i32_1 = arith.constant 0 : i32
    return %c0_i32, %c0_i32_0 : i32, i32
  }
  func.func @transform_3(%arg0: i32) -> (i32, i32) {
    %c0_i32 = arith.constant 0 : i32
    %c0_i32_0 = arith.constant 0 : i32
    %c0_i32_1 = arith.constant 0 : i32
    return %c0_i32, %c0_i32_0 : i32, i32
  }
  func.func @transform_4(%arg0: i32) -> (i32, i32) {
    %c0_i32 = arith.constant 0 : i32
    %c0_i32_0 = arith.constant 0 : i32
    %c0_i32_1 = arith.constant 0 : i32
    return %c0_i32, %c0_i32_0 : i32, i32
  }
  func.func @transform_5(%arg0: i32) -> (i32, i32) {
    %c0_i32 = arith.constant 0 : i32
    %c0_i32_0 = arith.constant 0 : i32
    %c0_i32_1 = arith.constant 0 : i32
    return %c0_i32, %c0_i32_0 : i32, i32
  }
  func.func @transform_6(%arg0: i32) -> (i32, i32) {
    %c0_i32 = arith.constant 0 : i32
    %c0_i32_0 = arith.constant 0 : i32
    %c0_i32_1 = arith.constant 0 : i32
    return %c0_i32, %c0_i32_0 : i32, i32
  }
  func.func @transform_7(%arg0: i32) -> (i32, i32) {
    %c0_i32 = arith.constant 0 : i32
    %c0_i32_0 = arith.constant 0 : i32
    %c0_i32_1 = arith.constant 0 : i32
    return %c0_i32, %c0_i32_0 : i32, i32
  }
  func.func @transform_8(%arg0: i32) -> (i32, i32) {
    %c0_i32 = arith.constant 0 : i32
    %c0_i32_0 = arith.constant 0 : i32
    %c0_i32_1 = arith.constant 0 : i32
    return %c0_i32, %c0_i32_0 : i32, i32
  }
  func.func @transform_9(%arg0: i32) -> (i32, i32) {
    %c0_i32 = arith.constant 0 : i32
    %c0_i32_0 = arith.constant 0 : i32
    %c0_i32_1 = arith.constant 0 : i32
    return %c0_i32, %c0_i32_0 : i32, i32
  }
  func.func @transform_10(%arg0: i32) -> (i32, i32) {
    %c0_i32 = arith.constant 0 : i32
    %c0_i32_0 = arith.constant 0 : i32
    %c0_i32_1 = arith.constant 0 : i32
    return %c0_i32, %c0_i32_0 : i32, i32
  }
  func.func @transform_11(%arg0: i32) -> (i32, i32) {
    %c0_i32 = arith.constant 0 : i32
    %c0_i32_0 = arith.constant 0 : i32
    %c0_i32_1 = arith.constant 0 : i32
    return %c0_i32, %c0_i32_0 : i32, i32
  }
  func.func @transform_12(%arg0: i32) -> (i32, i32) {
    %c0_i32 = arith.constant 0 : i32
    %c0_i32_0 = arith.constant 0 : i32
    return %arg0, %c0_i32 : i32, i32
  }
}

module attributes {stable_mosaic.version = 11 : i64} {
  func.func @_flash_attn_kernel(%arg0: i32, %arg1: i32, %arg2: memref<1x8x8xbf16, #tpu.memory_space<vmem>>, %arg3: memref<1x16x8xbf16, #tpu.memory_space<vmem>>, %arg4: memref<1x16x8xbf16, #tpu.memory_space<vmem>>, %arg5: memref<1x8x8xbf16, #tpu.memory_space<vmem>>, %arg6: memref<1x8x1xf32, #tpu.memory_space<vmem>>, %arg7: memref<1x8x1xf32, #tpu.memory_space<vmem>>, %arg8: memref<1x8x8xf32, #tpu.memory_space<vmem>>) attributes {dimension_semantics = [#tpu.dimension_semantics<parallel>, #tpu.dimension_semantics<arbitrary>], iteration_bounds = array<i64: 8, 1>, scalar_prefetch = 0 : i64, scratch_operands = 3 : i64, tpu.core_type = #tpu.core_type<tc>, window_params = [{transform_indices = @transform_0, window_bounds = array<i64: 1, 8, 8>}, {transform_indices = @transform_1, window_bounds = array<i64: 1, 16, 8>}, {transform_indices = @transform_2, window_bounds = array<i64: 1, 16, 8>}, {transform_indices = @transform_3, window_bounds = array<i64: 1, 8, 8>}]} {
    %c0_i32 = arith.constant 0 : i32
    %0 = arith.cmpi eq, %arg1, %c0_i32 : i32
    %1 = arith.extui %0 : i1 to i32
    %c0_i32_0 = arith.constant 0 : i32
    %2 = arith.cmpi ne, %1, %c0_i32_0 : i32
    scf.if %2 {
      %cst_32 = arith.constant 0xFF800000 : f32
      %33 = vector.broadcast %cst_32 : f32 to vector<1x8x1xf32>
      %c0_33 = arith.constant 0 : index
      %c0_34 = arith.constant 0 : index
      %c0_35 = arith.constant 0 : index
      %34 = vector.load %arg6[%c0_33, %c0_34, %c0_35] : memref<1x8x1xf32, #tpu.memory_space<vmem>>, vector<1x8x1xf32>
      tpu.vector_store %arg6[%c0_33, %c0_34, %c0_35], %33 {strides = array<i32>} : memref<1x8x1xf32, #tpu.memory_space<vmem>>, vector<1x8x1xf32>,
      %cst_36 = arith.constant 0.000000e+00 : f32
      %35 = vector.broadcast %cst_36 : f32 to vector<1x8x1xf32>
      %c0_37 = arith.constant 0 : index
      %c0_38 = arith.constant 0 : index
      %c0_39 = arith.constant 0 : index
      %36 = vector.load %arg7[%c0_37, %c0_38, %c0_39] : memref<1x8x1xf32, #tpu.memory_space<vmem>>, vector<1x8x1xf32>
      tpu.vector_store %arg7[%c0_37, %c0_38, %c0_39], %35 {strides = array<i32>} : memref<1x8x1xf32, #tpu.memory_space<vmem>>, vector<1x8x1xf32>,
      %cst_40 = arith.constant 0.000000e+00 : f32
      %37 = vector.broadcast %cst_40 : f32 to vector<1x8x8xf32>
      %c0_41 = arith.constant 0 : index
      %c0_42 = arith.constant 0 : index
      %c0_43 = arith.constant 0 : index
      %38 = vector.load %arg8[%c0_41, %c0_42, %c0_43] : memref<1x8x8xf32, #tpu.memory_space<vmem>>, vector<1x8x8xf32>
      tpu.vector_store %arg8[%c0_41, %c0_42, %c0_43], %37 {strides = array<i32>} : memref<1x8x8xf32, #tpu.memory_space<vmem>>, vector<1x8x8xf32>,
    } else {
    }
    %c0 = arith.constant 0 : index
    %c0_1 = arith.constant 0 : index
    %c0_2 = arith.constant 0 : index
    %3 = vector.load %arg2[%c0, %c0_1, %c0_2] : memref<1x8x8xbf16, #tpu.memory_space<vmem>>, vector<1x8x8xbf16>
    %c0_3 = arith.constant 0 : index
    %c0_4 = arith.constant 0 : index
    %c0_5 = arith.constant 0 : index
    %4 = vector.load %arg3[%c0_3, %c0_4, %c0_5] : memref<1x16x8xbf16, #tpu.memory_space<vmem>>, vector<1x16x8xbf16>
    "tpu.trace_start"() <{level = 10 : i32, message = "bqd,bkd->bqk"}> : () -> ()
    %cst = arith.constant dense<0.000000e+00> : vector<1x8x16xf32>
    %5 = tpu.matmul %3, %4, %cst {dimension_numbers = #tpu.dot_dimension_numbers<[2], [2], [1], [1], [0, 0, 0, 1, 1, 1], [0], [0]>} : vector<1x8x8xbf16>, vector<1x16x8xbf16>, vector<1x8x16xf32> -> vector<1x8x16xf32>
    "tpu.trace_stop"() : () -> ()
    %c0_6 = arith.constant 0 : index
    %c0_7 = arith.constant 0 : index
    %c0_8 = arith.constant 0 : index
    %6 = vector.load %arg6[%c0_6, %c0_7, %c0_8] : memref<1x8x1xf32, #tpu.memory_space<vmem>>, vector<1x8x1xf32>
    %cst_9 = arith.constant dense<0xFF800000> : vector<1x8xf32>
    %7 = vector.multi_reduction <maximumf>, %5, %cst_9 [2] : vector<1x8x16xf32> to vector<1x8xf32>
    %8 = vector.shape_cast %7 : vector<1x8xf32> to vector<1x8x1xf32>
    %9 = arith.maximumf %6, %8 : vector<1x8x1xf32>
    %10 = arith.subf %6, %9 : vector<1x8x1xf32>
    %11 = math.exp %10 : vector<1x8x1xf32>
    %12 = vector.broadcast %9 : vector<1x8x1xf32> to vector<1x8x16xf32>
    %13 = arith.subf %5, %12 : vector<1x8x16xf32>
    %14 = math.exp %13 : vector<1x8x16xf32>
    %c0_10 = arith.constant 0 : index
    %c0_11 = arith.constant 0 : index
    %c0_12 = arith.constant 0 : index
    %15 = vector.load %arg7[%c0_10, %c0_11, %c0_12] : memref<1x8x1xf32, #tpu.memory_space<vmem>>, vector<1x8x1xf32>
    %16 = arith.mulf %11, %15 : vector<1x8x1xf32>
    %cst_13 = arith.constant dense<0.000000e+00> : vector<1x8xf32>
    %17 = vector.multi_reduction <add>, %14, %cst_13 [2] : vector<1x8x16xf32> to vector<1x8xf32>
    %18 = vector.shape_cast %17 : vector<1x8xf32> to vector<1x8x1xf32>
    %19 = arith.addf %16, %18 : vector<1x8x1xf32>
    %c0_14 = arith.constant 0 : index
    %c0_15 = arith.constant 0 : index
    %c0_16 = arith.constant 0 : index
    %20 = vector.load %arg7[%c0_14, %c0_15, %c0_16] : memref<1x8x1xf32, #tpu.memory_space<vmem>>, vector<1x8x1xf32>
    tpu.vector_store %arg7[%c0_14, %c0_15, %c0_16], %19 {strides = array<i32>} : memref<1x8x1xf32, #tpu.memory_space<vmem>>, vector<1x8x1xf32>,
    %c0_17 = arith.constant 0 : index
    %c0_18 = arith.constant 0 : index
    %c0_19 = arith.constant 0 : index
    %21 = vector.load %arg8[%c0_17, %c0_18, %c0_19] : memref<1x8x8xf32, #tpu.memory_space<vmem>>, vector<1x8x8xf32>
    %22 = vector.broadcast %11 : vector<1x8x1xf32> to vector<1x8x8xf32>
    %23 = arith.mulf %22, %21 : vector<1x8x8xf32>
    %24 = arith.truncf %14 : vector<1x8x16xf32> to vector<1x8x16xbf16>
    %c0_20 = arith.constant 0 : index
    %c0_21 = arith.constant 0 : index
    %c0_22 = arith.constant 0 : index
    %25 = vector.load %arg4[%c0_20, %c0_21, %c0_22] : memref<1x16x8xbf16, #tpu.memory_space<vmem>>, vector<1x16x8xbf16>
    "tpu.trace_start"() <{level = 10 : i32, message = "bqk,bkd->bqd"}> : () -> ()
    %cst_23 = arith.constant dense<0.000000e+00> : vector<1x8x8xf32>
    %26 = tpu.matmul %24, %25, %cst_23 {dimension_numbers = #tpu.dot_dimension_numbers<[2], [1], [1], [2], [0, 0, 0, 1, 1, 2], [0], [0]>} : vector<1x8x16xbf16>, vector<1x16x8xbf16>, vector<1x8x8xf32> -> vector<1x8x8xf32>
    "tpu.trace_stop"() : () -> ()
    %27 = arith.addf %23, %26 : vector<1x8x8xf32>
    %c0_24 = arith.constant 0 : index
    %c0_25 = arith.constant 0 : index
    %c0_26 = arith.constant 0 : index
    %28 = vector.load %arg8[%c0_24, %c0_25, %c0_26] : memref<1x8x8xf32, #tpu.memory_space<vmem>>, vector<1x8x8xf32>
    tpu.vector_store %arg8[%c0_24, %c0_25, %c0_26], %27 {strides = array<i32>} : memref<1x8x8xf32, #tpu.memory_space<vmem>>, vector<1x8x8xf32>,
    %c0_27 = arith.constant 0 : index
    %c0_28 = arith.constant 0 : index
    %c0_29 = arith.constant 0 : index
    %29 = vector.load %arg6[%c0_27, %c0_28, %c0_29] : memref<1x8x1xf32, #tpu.memory_space<vmem>>, vector<1x8x1xf32>
    tpu.vector_store %arg6[%c0_27, %c0_28, %c0_29], %9 {strides = array<i32>} : memref<1x8x1xf32, #tpu.memory_space<vmem>>, vector<1x8x1xf32>,
    %c0_i32_30 = arith.constant 0 : i32
    %30 = arith.cmpi eq, %arg1, %c0_i32_30 : i32
    %31 = arith.extui %30 : i1 to i32
    %c0_i32_31 = arith.constant 0 : i32
    %32 = arith.cmpi ne, %31, %c0_i32_31 : i32
    scf.if %32 {
      %c0_32 = arith.constant 0 : index
      %c0_33 = arith.constant 0 : index
      %c0_34 = arith.constant 0 : index
      %33 = vector.load %arg8[%c0_32, %c0_33, %c0_34] : memref<1x8x8xf32, #tpu.memory_space<vmem>>, vector<1x8x8xf32>
      %c0_35 = arith.constant 0 : index
      %c0_36 = arith.constant 0 : index
      %c0_37 = arith.constant 0 : index
      %34 = vector.load %arg7[%c0_35, %c0_36, %c0_37] : memref<1x8x1xf32, #tpu.memory_space<vmem>>, vector<1x8x1xf32>
      %35 = tpu.reciprocal %34 {approx = true} : vector<1x8x1xf32> -> vector<1x8x1xf32>
      %36 = vector.broadcast %35 : vector<1x8x1xf32> to vector<1x8x8xf32>
      %37 = arith.mulf %33, %36 : vector<1x8x8xf32>
      %38 = arith.truncf %37 : vector<1x8x8xf32> to vector<1x8x8xbf16>
      %c0_38 = arith.constant 0 : index
      %c0_39 = arith.constant 0 : index
      %c0_40 = arith.constant 0 : index
      %39 = vector.load %arg5[%c0_38, %c0_39, %c0_40] : memref<1x8x8xbf16, #tpu.memory_space<vmem>>, vector<1x8x8xbf16>
      tpu.vector_store %arg5[%c0_38, %c0_39, %c0_40], %38 {strides = array<i32>} : memref<1x8x8xbf16, #tpu.memory_space<vmem>>, vector<1x8x8xbf16>,
    } else {
    }
    return
  }
  func.func @transform_0(%arg0: i32, %arg1: i32) -> (i32, i32, i32) {
    %c0_i32 = arith.constant 0 : i32
    %c0_i32_0 = arith.constant 0 : i32
    %c0_i32_1 = arith.constant 0 : i32
    return %arg0, %c0_i32, %c0_i32_0 : i32, i32, i32
  }
  func.func @transform_1(%arg0: i32, %arg1: i32) -> (i32, i32, i32) {
    %c0_i32 = arith.constant 0 : i32
    %c0_i32_0 = arith.constant 0 : i32
    return %arg0, %arg1, %c0_i32 : i32, i32, i32
  }
  func.func @transform_2(%arg0: i32, %arg1: i32) -> (i32, i32, i32) {
    %c0_i32 = arith.constant 0 : i32
    %c0_i32_0 = arith.constant 0 : i32
    return %arg0, %arg1, %c0_i32 : i32, i32, i32
  }
  func.func @transform_3(%arg0: i32, %arg1: i32) -> (i32, i32, i32) {
    %c0_i32 = arith.constant 0 : i32
    %c0_i32_0 = arith.constant 0 : i32
    %c0_i32_1 = arith.constant 0 : i32
    return %arg0, %c0_i32, %c0_i32_0 : i32, i32, i32
  }
}

module attributes {stable_mosaic.version = 11 : i64} {
  func.func @_head_kernel(%arg0: i32, %arg1: memref<16x32xf32, #tpu.memory_space<vmem>>, %arg2: memref<16x32xf32, #tpu.memory_space<vmem>>, %arg3: memref<16x132xf32, #tpu.memory_space<vmem>>, %arg4: memref<32x32xbf16, #tpu.memory_space<vmem>>, %arg5: memref<1x32xf32, #tpu.memory_space<vmem>>, %arg6: memref<32x32xbf16, #tpu.memory_space<vmem>>, %arg7: memref<1x32xf32, #tpu.memory_space<vmem>>, %arg8: memref<32x132xbf16, #tpu.memory_space<vmem>>, %arg9: memref<1x132xf32, #tpu.memory_space<vmem>>, %arg10: memref<2x32xf32, #tpu.memory_space<vmem>>, %arg11: memref<1x2xf32, #tpu.memory_space<vmem>>, %arg12: memref<1x132xf32, #tpu.memory_space<vmem>>, %arg13: memref<20x64xbf16, #tpu.memory_space<vmem>>, %arg14: memref<1x64xf32, #tpu.memory_space<vmem>>, %arg15: memref<1x64xf32, #tpu.memory_space<vmem>>, %arg16: memref<1x1xf32, #tpu.memory_space<vmem>>, %arg17: memref<16x132xf32, #tpu.memory_space<vmem>>, %arg18: memref<16x4xf32, #tpu.memory_space<vmem>>, %arg19: memref<16x2xf32, #tpu.memory_space<vmem>>) attributes {dimension_semantics = [#tpu.dimension_semantics<parallel>], iteration_bounds = array<i64: 1>, scalar_prefetch = 0 : i64, scratch_operands = 0 : i64, tpu.core_type = #tpu.core_type<tc>, window_params = [{transform_indices = @transform_0, window_bounds = array<i64: 16, 32>}, {transform_indices = @transform_1, window_bounds = array<i64: 16, 32>}, {transform_indices = @transform_2, window_bounds = array<i64: 16, 132>}, {pipeline_mode = #tpu.pipeline_mode<synchronous>, transform_indices = @transform_3, window_bounds = array<i64: 32, 32>}, {pipeline_mode = #tpu.pipeline_mode<synchronous>, transform_indices = @transform_4, window_bounds = array<i64: 1, 32>}, {pipeline_mode = #tpu.pipeline_mode<synchronous>, transform_indices = @transform_5, window_bounds = array<i64: 32, 32>}, {pipeline_mode = #tpu.pipeline_mode<synchronous>, transform_indices = @transform_6, window_bounds = array<i64: 1, 32>}, {pipeline_mode = #tpu.pipeline_mode<synchronous>, transform_indices = @transform_7, window_bounds = array<i64: 32, 132>}, {pipeline_mode = #tpu.pipeline_mode<synchronous>, transform_indices = @transform_8, window_bounds = array<i64: 1, 132>}, {pipeline_mode = #tpu.pipeline_mode<synchronous>, transform_indices = @transform_9, window_bounds = array<i64: 2, 32>}, {pipeline_mode = #tpu.pipeline_mode<synchronous>, transform_indices = @transform_10, window_bounds = array<i64: 1, 2>}, {pipeline_mode = #tpu.pipeline_mode<synchronous>, transform_indices = @transform_11, window_bounds = array<i64: 1, 132>}, {pipeline_mode = #tpu.pipeline_mode<synchronous>, transform_indices = @transform_12, window_bounds = array<i64: 20, 64>}, {pipeline_mode = #tpu.pipeline_mode<synchronous>, transform_indices = @transform_13, window_bounds = array<i64: 1, 64>}, {pipeline_mode = #tpu.pipeline_mode<synchronous>, transform_indices = @transform_14, window_bounds = array<i64: 1, 64>}, {pipeline_mode = #tpu.pipeline_mode<synchronous>, transform_indices = @transform_15, window_bounds = array<i64: 1, 1>}, {transform_indices = @transform_16, window_bounds = array<i64: 16, 132>}, {transform_indices = @transform_17, window_bounds = array<i64: 16, 4>}, {transform_indices = @transform_18, window_bounds = array<i64: 16, 2>}]} {
    %c0 = arith.constant 0 : index
    %c0_0 = arith.constant 0 : index
    %0 = vector.load %arg1[%c0, %c0_0] : memref<16x32xf32, #tpu.memory_space<vmem>>, vector<16x32xf32>
    %c0_1 = arith.constant 0 : index
    %c0_2 = arith.constant 0 : index
    %1 = vector.load %arg2[%c0_1, %c0_2] : memref<16x32xf32, #tpu.memory_space<vmem>>, vector<16x32xf32>
    %2 = arith.addf %0, %1 : vector<16x32xf32>
    %c0_3 = arith.constant 0 : index
    %c0_4 = arith.constant 0 : index
    %3 = vector.load %arg4[%c0_3, %c0_4] : memref<32x32xbf16, #tpu.memory_space<vmem>>, vector<32x32xbf16>
    %4 = arith.truncf %2 : vector<16x32xf32> to vector<16x32xbf16>
    %cst = arith.constant dense<0.000000e+00> : vector<16x32xf32>
    %5 = tpu.matmul %4, %3, %cst {dimension_numbers = #tpu.dot_dimension_numbers<[1], [0], [0], [1], [0, 0, 1, 1], [], []>} : vector<16x32xbf16>, vector<32x32xbf16>, vector<16x32xf32> -> vector<16x32xf32>
    %c0_5 = arith.constant 0 : index
    %c0_6 = arith.constant 0 : index
    %6 = vector.load %arg5[%c0_5, %c0_6] : memref<1x32xf32, #tpu.memory_space<vmem>>, vector<1x32xf32>
    %7 = vector.broadcast %6 : vector<1x32xf32> to vector<16x32xf32>
    %8 = arith.addf %5, %7 : vector<16x32xf32>
    %cst_7 = arith.constant 0.000000e+00 : f32
    %9 = vector.broadcast %cst_7 : f32 to vector<16x32xf32>
    %10 = arith.maximumf %8, %9 : vector<16x32xf32>
    %c0_8 = arith.constant 0 : index
    %c0_9 = arith.constant 0 : index
    %11 = vector.load %arg6[%c0_8, %c0_9] : memref<32x32xbf16, #tpu.memory_space<vmem>>, vector<32x32xbf16>
    %12 = arith.truncf %10 : vector<16x32xf32> to vector<16x32xbf16>
    %cst_10 = arith.constant dense<0.000000e+00> : vector<16x32xf32>
    %13 = tpu.matmul %12, %11, %cst_10 {dimension_numbers = #tpu.dot_dimension_numbers<[1], [0], [0], [1], [0, 0, 1, 1], [], []>} : vector<16x32xbf16>, vector<32x32xbf16>, vector<16x32xf32> -> vector<16x32xf32>
    %c0_11 = arith.constant 0 : index
    %c0_12 = arith.constant 0 : index
    %14 = vector.load %arg7[%c0_11, %c0_12] : memref<1x32xf32, #tpu.memory_space<vmem>>, vector<1x32xf32>
    %15 = vector.broadcast %14 : vector<1x32xf32> to vector<16x32xf32>
    %16 = arith.addf %13, %15 : vector<16x32xf32>
    %cst_13 = arith.constant 0.000000e+00 : f32
    %17 = vector.broadcast %cst_13 : f32 to vector<16x32xf32>
    %18 = arith.maximumf %16, %17 : vector<16x32xf32>
    %c0_14 = arith.constant 0 : index
    %c0_15 = arith.constant 0 : index
    %19 = vector.load %arg8[%c0_14, %c0_15] : memref<32x132xbf16, #tpu.memory_space<vmem>>, vector<32x132xbf16>
    %20 = arith.truncf %18 : vector<16x32xf32> to vector<16x32xbf16>
    %cst_16 = arith.constant dense<0.000000e+00> : vector<16x132xf32>
    %21 = tpu.matmul %20, %19, %cst_16 {dimension_numbers = #tpu.dot_dimension_numbers<[1], [0], [0], [1], [0, 0, 1, 1], [], []>} : vector<16x32xbf16>, vector<32x132xbf16>, vector<16x132xf32> -> vector<16x132xf32>
    %c0_17 = arith.constant 0 : index
    %c0_18 = arith.constant 0 : index
    %22 = vector.load %arg9[%c0_17, %c0_18] : memref<1x132xf32, #tpu.memory_space<vmem>>, vector<1x132xf32>
    %23 = vector.broadcast %22 : vector<1x132xf32> to vector<16x132xf32>
    %24 = arith.addf %21, %23 : vector<16x132xf32>
    %c0_19 = arith.constant 0 : index
    %c0_20 = arith.constant 0 : index
    %25 = vector.load %arg3[%c0_19, %c0_20] : memref<16x132xf32, #tpu.memory_space<vmem>>, vector<16x132xf32>
    %26 = arith.addf %24, %25 : vector<16x132xf32>
    %c0_21 = arith.constant 0 : index
    %c0_22 = arith.constant 0 : index
    %27 = vector.load %arg17[%c0_21, %c0_22] : memref<16x132xf32, #tpu.memory_space<vmem>>, vector<16x132xf32>
    tpu.vector_store %arg17[%c0_21, %c0_22], %26 {strides = array<i32>} : memref<16x132xf32, #tpu.memory_space<vmem>>, vector<16x132xf32>,
    %c0_23 = arith.constant 0 : index
    %c0_24 = arith.constant 0 : index
    %28 = vector.load %arg12[%c0_23, %c0_24] : memref<1x132xf32, #tpu.memory_space<vmem>>, vector<1x132xf32>
    %29 = tpu.iota {dimensions = array<i32: 1>} : vector<16x132xi32>
    %c0_i32 = arith.constant 0 : i32
    %30 = vector.broadcast %c0_i32 : i32 to vector<16x132xi32>
    %31 = arith.cmpi sge, %29, %30 : vector<16x132xi32>
    %c33_i32 = arith.constant 33 : i32
    %32 = vector.broadcast %c33_i32 : i32 to vector<16x132xi32>
    %33 = arith.cmpi slt, %29, %32 : vector<16x132xi32>
    %34 = arith.andi %31, %33 : vector<16x132xi1>
    %cst_25 = arith.constant 0xFF800000 : f32
    %35 = vector.broadcast %cst_25 : f32 to vector<16x132xf32>
    %36 = arith.select %34, %26, %35 : vector<16x132xi1>, vector<16x132xf32>
    %cst_26 = arith.constant dense<0xFF800000> : vector<16xf32>
    %37 = vector.multi_reduction <maximumf>, %36, %cst_26 [1] : vector<16x132xf32> to vector<16xf32>
    %38 = vector.shape_cast %37 : vector<16xf32> to vector<16x1xf32>
    %39 = vector.broadcast %38 : vector<16x1xf32> to vector<16x132xf32>
    %40 = arith.subf %36, %39 : vector<16x132xf32>
    %41 = math.exp %40 : vector<16x132xf32>
    %cst_27 = arith.constant dense<0.000000e+00> : vector<16xf32>
    %42 = vector.multi_reduction <add>, %41, %cst_27 [1] : vector<16x132xf32> to vector<16xf32>
    %43 = vector.shape_cast %42 : vector<16xf32> to vector<16x1xf32>
    %44 = vector.broadcast %43 : vector<16x1xf32> to vector<16x132xf32>
    %45 = arith.divf %41, %44 : vector<16x132xf32>
    %46 = vector.broadcast %28 : vector<1x132xf32> to vector<16x132xf32>
    %47 = arith.mulf %45, %46 : vector<16x132xf32>
    %cst_28 = arith.constant dense<0.000000e+00> : vector<16xf32>
    %48 = vector.multi_reduction <add>, %47, %cst_28 [1] : vector<16x132xf32> to vector<16xf32>
    %49 = vector.shape_cast %48 : vector<16xf32> to vector<16x1xf32>
    %cst_29 = arith.constant dense<0xFF800000> : vector<16xf32>
    %50 = vector.multi_reduction <maximumf>, %45, %cst_29 [1] : vector<16x132xf32> to vector<16xf32>
    %51 = vector.shape_cast %50 : vector<16xf32> to vector<16x1xf32>
    %52 = vector.broadcast %51 : vector<16x1xf32> to vector<16x132xf32>
    %53 = arith.cmpf oge, %45, %52 : vector<16x132xf32>
    %cst_30 = arith.constant 0xFF800000 : f32
    %54 = vector.broadcast %cst_30 : f32 to vector<16x132xf32>
    %55 = arith.select %53, %54, %45 : vector<16x132xi1>, vector<16x132xf32>
    %cst_31 = arith.constant dense<0xFF800000> : vector<16xf32>
    %56 = vector.multi_reduction <maximumf>, %55, %cst_31 [1] : vector<16x132xf32> to vector<16xf32>
    %57 = vector.shape_cast %56 : vector<16xf32> to vector<16x1xf32>
    %58 = vector.broadcast %57 : vector<16x1xf32> to vector<16x132xf32>
    %59 = arith.cmpf oge, %55, %58 : vector<16x132xf32>
    %cst_32 = arith.constant 0xFF800000 : f32
    %60 = vector.broadcast %cst_32 : f32 to vector<16x132xf32>
    %61 = arith.select %59, %60, %55 : vector<16x132xi1>, vector<16x132xf32>
    %cst_33 = arith.constant dense<0xFF800000> : vector<16xf32>
    %62 = vector.multi_reduction <maximumf>, %61, %cst_33 [1] : vector<16x132xf32> to vector<16xf32>
    %63 = vector.shape_cast %62 : vector<16xf32> to vector<16x1xf32>
    %64 = vector.broadcast %63 : vector<16x1xf32> to vector<16x132xf32>
    %65 = arith.cmpf oge, %61, %64 : vector<16x132xf32>
    %cst_34 = arith.constant 0xFF800000 : f32
    %66 = vector.broadcast %cst_34 : f32 to vector<16x132xf32>
    %67 = arith.select %65, %66, %61 : vector<16x132xi1>, vector<16x132xf32>
    %cst_35 = arith.constant dense<0xFF800000> : vector<16xf32>
    %68 = vector.multi_reduction <maximumf>, %67, %cst_35 [1] : vector<16x132xf32> to vector<16xf32>
    %69 = vector.shape_cast %68 : vector<16xf32> to vector<16x1xf32>
    %70 = tpu.concatenate %51, %57, %63, %69 in 1 : vector<16x1xf32>, vector<16x1xf32>, vector<16x1xf32>, vector<16x1xf32> -> vector<16x4xf32>
    %cst_36 = arith.constant dense<0.000000e+00> : vector<16xf32>
    %71 = vector.multi_reduction <add>, %70, %cst_36 [1] : vector<16x4xf32> to vector<16xf32>
    %72 = vector.shape_cast %71 : vector<16xf32> to vector<16x1xf32>
    %cst_37 = arith.constant 4.000000e+00 : f32
    %73 = vector.broadcast %cst_37 : f32 to vector<16x1xf32>
    %74 = arith.divf %72, %73 : vector<16x1xf32>
    %75 = tpu.concatenate %70, %74 in 1 : vector<16x4xf32>, vector<16x1xf32> -> vector<16x5xf32>
    %c33_i32_38 = arith.constant 33 : i32
    %76 = vector.broadcast %c33_i32_38 : i32 to vector<16x132xi32>
    %77 = arith.cmpi sge, %29, %76 : vector<16x132xi32>
    %c66_i32 = arith.constant 66 : i32
    %78 = vector.broadcast %c66_i32 : i32 to vector<16x132xi32>
    %79 = arith.cmpi slt, %29, %78 : vector<16x132xi32>
    %80 = arith.andi %77, %79 : vector<16x132xi1>
    %cst_39 = arith.constant 0xFF800000 : f32
    %81 = vector.broadcast %cst_39 : f32 to vector<16x132xf32>
    %82 = arith.select %80, %26, %81 : vector<16x132xi1>, vector<16x132xf32>
    %cst_40 = arith.constant dense<0xFF800000> : vector<16xf32>
    %83 = vector.multi_reduction <maximumf>, %82, %cst_40 [1] : vector<16x132xf32> to vector<16xf32>
    %84 = vector.shape_cast %83 : vector<16xf32> to vector<16x1xf32>
    %85 = vector.broadcast %84 : vector<16x1xf32> to vector<16x132xf32>
    %86 = arith.subf %82, %85 : vector<16x132xf32>
    %87 = math.exp %86 : vector<16x132xf32>
    %cst_41 = arith.constant dense<0.000000e+00> : vector<16xf32>
    %88 = vector.multi_reduction <add>, %87, %cst_41 [1] : vector<16x132xf32> to vector<16xf32>
    %89 = vector.shape_cast %88 : vector<16xf32> to vector<16x1xf32>
    %90 = vector.broadcast %89 : vector<16x1xf32> to vector<16x132xf32>
    %91 = arith.divf %87, %90 : vector<16x132xf32>
    %92 = vector.broadcast %28 : vector<1x132xf32> to vector<16x132xf32>
    %93 = arith.mulf %91, %92 : vector<16x132xf32>
    %cst_42 = arith.constant dense<0.000000e+00> : vector<16xf32>
    %94 = vector.multi_reduction <add>, %93, %cst_42 [1] : vector<16x132xf32> to vector<16xf32>
    %95 = vector.shape_cast %94 : vector<16xf32> to vector<16x1xf32>
    %cst_43 = arith.constant dense<0xFF800000> : vector<16xf32>
    %96 = vector.multi_reduction <maximumf>, %91, %cst_43 [1] : vector<16x132xf32> to vector<16xf32>
    %97 = vector.shape_cast %96 : vector<16xf32> to vector<16x1xf32>
    %98 = vector.broadcast %97 : vector<16x1xf32> to vector<16x132xf32>
    %99 = arith.cmpf oge, %91, %98 : vector<16x132xf32>
    %cst_44 = arith.constant 0xFF800000 : f32
    %100 = vector.broadcast %cst_44 : f32 to vector<16x132xf32>
    %101 = arith.select %99, %100, %91 : vector<16x132xi1>, vector<16x132xf32>
    %cst_45 = arith.constant dense<0xFF800000> : vector<16xf32>
    %102 = vector.multi_reduction <maximumf>, %101, %cst_45 [1] : vector<16x132xf32> to vector<16xf32>
    %103 = vector.shape_cast %102 : vector<16xf32> to vector<16x1xf32>
    %104 = vector.broadcast %103 : vector<16x1xf32> to vector<16x132xf32>
    %105 = arith.cmpf oge, %101, %104 : vector<16x132xf32>
    %cst_46 = arith.constant 0xFF800000 : f32
    %106 = vector.broadcast %cst_46 : f32 to vector<16x132xf32>
    %107 = arith.select %105, %106, %101 : vector<16x132xi1>, vector<16x132xf32>
    %cst_47 = arith.constant dense<0xFF800000> : vector<16xf32>
    %108 = vector.multi_reduction <maximumf>, %107, %cst_47 [1] : vector<16x132xf32> to vector<16xf32>
    %109 = vector.shape_cast %108 : vector<16xf32> to vector<16x1xf32>
    %110 = vector.broadcast %109 : vector<16x1xf32> to vector<16x132xf32>
    %111 = arith.cmpf oge, %107, %110 : vector<16x132xf32>
    %cst_48 = arith.constant 0xFF800000 : f32
    %112 = vector.broadcast %cst_48 : f32 to vector<16x132xf32>
    %113 = arith.select %111, %112, %107 : vector<16x132xi1>, vector<16x132xf32>
    %cst_49 = arith.constant dense<0xFF800000> : vector<16xf32>
    %114 = vector.multi_reduction <maximumf>, %113, %cst_49 [1] : vector<16x132xf32> to vector<16xf32>
    %115 = vector.shape_cast %114 : vector<16xf32> to vector<16x1xf32>
    %116 = tpu.concatenate %97, %103, %109, %115 in 1 : vector<16x1xf32>, vector<16x1xf32>, vector<16x1xf32>, vector<16x1xf32> -> vector<16x4xf32>
    %cst_50 = arith.constant dense<0.000000e+00> : vector<16xf32>
    %117 = vector.multi_reduction <add>, %116, %cst_50 [1] : vector<16x4xf32> to vector<16xf32>
    %118 = vector.shape_cast %117 : vector<16xf32> to vector<16x1xf32>
    %cst_51 = arith.constant 4.000000e+00 : f32
    %119 = vector.broadcast %cst_51 : f32 to vector<16x1xf32>
    %120 = arith.divf %118, %119 : vector<16x1xf32>
    %121 = tpu.concatenate %116, %120 in 1 : vector<16x4xf32>, vector<16x1xf32> -> vector<16x5xf32>
    %c66_i32_52 = arith.constant 66 : i32
    %122 = vector.broadcast %c66_i32_52 : i32 to vector<16x132xi32>
    %123 = arith.cmpi sge, %29, %122 : vector<16x132xi32>
    %c99_i32 = arith.constant 99 : i32
    %124 = vector.broadcast %c99_i32 : i32 to vector<16x132xi32>
    %125 = arith.cmpi slt, %29, %124 : vector<16x132xi32>
    %126 = arith.andi %123, %125 : vector<16x132xi1>
    %cst_53 = arith.constant 0xFF800000 : f32
    %127 = vector.broadcast %cst_53 : f32 to vector<16x132xf32>
    %128 = arith.select %126, %26, %127 : vector<16x132xi1>, vector<16x132xf32>
    %cst_54 = arith.constant dense<0xFF800000> : vector<16xf32>
    %129 = vector.multi_reduction <maximumf>, %128, %cst_54 [1] : vector<16x132xf32> to vector<16xf32>
    %130 = vector.shape_cast %129 : vector<16xf32> to vector<16x1xf32>
    %131 = vector.broadcast %130 : vector<16x1xf32> to vector<16x132xf32>
    %132 = arith.subf %128, %131 : vector<16x132xf32>
    %133 = math.exp %132 : vector<16x132xf32>
    %cst_55 = arith.constant dense<0.000000e+00> : vector<16xf32>
    %134 = vector.multi_reduction <add>, %133, %cst_55 [1] : vector<16x132xf32> to vector<16xf32>
    %135 = vector.shape_cast %134 : vector<16xf32> to vector<16x1xf32>
    %136 = vector.broadcast %135 : vector<16x1xf32> to vector<16x132xf32>
    %137 = arith.divf %133, %136 : vector<16x132xf32>
    %138 = vector.broadcast %28 : vector<1x132xf32> to vector<16x132xf32>
    %139 = arith.mulf %137, %138 : vector<16x132xf32>
    %cst_56 = arith.constant dense<0.000000e+00> : vector<16xf32>
    %140 = vector.multi_reduction <add>, %139, %cst_56 [1] : vector<16x132xf32> to vector<16xf32>
    %141 = vector.shape_cast %140 : vector<16xf32> to vector<16x1xf32>
    %cst_57 = arith.constant dense<0xFF800000> : vector<16xf32>
    %142 = vector.multi_reduction <maximumf>, %137, %cst_57 [1] : vector<16x132xf32> to vector<16xf32>
    %143 = vector.shape_cast %142 : vector<16xf32> to vector<16x1xf32>
    %144 = vector.broadcast %143 : vector<16x1xf32> to vector<16x132xf32>
    %145 = arith.cmpf oge, %137, %144 : vector<16x132xf32>
    %cst_58 = arith.constant 0xFF800000 : f32
    %146 = vector.broadcast %cst_58 : f32 to vector<16x132xf32>
    %147 = arith.select %145, %146, %137 : vector<16x132xi1>, vector<16x132xf32>
    %cst_59 = arith.constant dense<0xFF800000> : vector<16xf32>
    %148 = vector.multi_reduction <maximumf>, %147, %cst_59 [1] : vector<16x132xf32> to vector<16xf32>
    %149 = vector.shape_cast %148 : vector<16xf32> to vector<16x1xf32>
    %150 = vector.broadcast %149 : vector<16x1xf32> to vector<16x132xf32>
    %151 = arith.cmpf oge, %147, %150 : vector<16x132xf32>
    %cst_60 = arith.constant 0xFF800000 : f32
    %152 = vector.broadcast %cst_60 : f32 to vector<16x132xf32>
    %153 = arith.select %151, %152, %147 : vector<16x132xi1>, vector<16x132xf32>
    %cst_61 = arith.constant dense<0xFF800000> : vector<16xf32>
    %154 = vector.multi_reduction <maximumf>, %153, %cst_61 [1] : vector<16x132xf32> to vector<16xf32>
    %155 = vector.shape_cast %154 : vector<16xf32> to vector<16x1xf32>
    %156 = vector.broadcast %155 : vector<16x1xf32> to vector<16x132xf32>
    %157 = arith.cmpf oge, %153, %156 : vector<16x132xf32>
    %cst_62 = arith.constant 0xFF800000 : f32
    %158 = vector.broadcast %cst_62 : f32 to vector<16x132xf32>
    %159 = arith.select %157, %158, %153 : vector<16x132xi1>, vector<16x132xf32>
    %cst_63 = arith.constant dense<0xFF800000> : vector<16xf32>
    %160 = vector.multi_reduction <maximumf>, %159, %cst_63 [1] : vector<16x132xf32> to vector<16xf32>
    %161 = vector.shape_cast %160 : vector<16xf32> to vector<16x1xf32>
    %162 = tpu.concatenate %143, %149, %155, %161 in 1 : vector<16x1xf32>, vector<16x1xf32>, vector<16x1xf32>, vector<16x1xf32> -> vector<16x4xf32>
    %cst_64 = arith.constant dense<0.000000e+00> : vector<16xf32>
    %163 = vector.multi_reduction <add>, %162, %cst_64 [1] : vector<16x4xf32> to vector<16xf32>
    %164 = vector.shape_cast %163 : vector<16xf32> to vector<16x1xf32>
    %cst_65 = arith.constant 4.000000e+00 : f32
    %165 = vector.broadcast %cst_65 : f32 to vector<16x1xf32>
    %166 = arith.divf %164, %165 : vector<16x1xf32>
    %167 = tpu.concatenate %162, %166 in 1 : vector<16x4xf32>, vector<16x1xf32> -> vector<16x5xf32>
    %c99_i32_66 = arith.constant 99 : i32
    %168 = vector.broadcast %c99_i32_66 : i32 to vector<16x132xi32>
    %169 = arith.cmpi sge, %29, %168 : vector<16x132xi32>
    %c132_i32 = arith.constant 132 : i32
    %170 = vector.broadcast %c132_i32 : i32 to vector<16x132xi32>
    %171 = arith.cmpi slt, %29, %170 : vector<16x132xi32>
    %172 = arith.andi %169, %171 : vector<16x132xi1>
    %cst_67 = arith.constant 0xFF800000 : f32
    %173 = vector.broadcast %cst_67 : f32 to vector<16x132xf32>
    %174 = arith.select %172, %26, %173 : vector<16x132xi1>, vector<16x132xf32>
    %cst_68 = arith.constant dense<0xFF800000> : vector<16xf32>
    %175 = vector.multi_reduction <maximumf>, %174, %cst_68 [1] : vector<16x132xf32> to vector<16xf32>
    %176 = vector.shape_cast %175 : vector<16xf32> to vector<16x1xf32>
    %177 = vector.broadcast %176 : vector<16x1xf32> to vector<16x132xf32>
    %178 = arith.subf %174, %177 : vector<16x132xf32>
    %179 = math.exp %178 : vector<16x132xf32>
    %cst_69 = arith.constant dense<0.000000e+00> : vector<16xf32>
    %180 = vector.multi_reduction <add>, %179, %cst_69 [1] : vector<16x132xf32> to vector<16xf32>
    %181 = vector.shape_cast %180 : vector<16xf32> to vector<16x1xf32>
    %182 = vector.broadcast %181 : vector<16x1xf32> to vector<16x132xf32>
    %183 = arith.divf %179, %182 : vector<16x132xf32>
    %184 = vector.broadcast %28 : vector<1x132xf32> to vector<16x132xf32>
    %185 = arith.mulf %183, %184 : vector<16x132xf32>
    %cst_70 = arith.constant dense<0.000000e+00> : vector<16xf32>
    %186 = vector.multi_reduction <add>, %185, %cst_70 [1] : vector<16x132xf32> to vector<16xf32>
    %187 = vector.shape_cast %186 : vector<16xf32> to vector<16x1xf32>
    %cst_71 = arith.constant dense<0xFF800000> : vector<16xf32>
    %188 = vector.multi_reduction <maximumf>, %183, %cst_71 [1] : vector<16x132xf32> to vector<16xf32>
    %189 = vector.shape_cast %188 : vector<16xf32> to vector<16x1xf32>
    %190 = vector.broadcast %189 : vector<16x1xf32> to vector<16x132xf32>
    %191 = arith.cmpf oge, %183, %190 : vector<16x132xf32>
    %cst_72 = arith.constant 0xFF800000 : f32
    %192 = vector.broadcast %cst_72 : f32 to vector<16x132xf32>
    %193 = arith.select %191, %192, %183 : vector<16x132xi1>, vector<16x132xf32>
    %cst_73 = arith.constant dense<0xFF800000> : vector<16xf32>
    %194 = vector.multi_reduction <maximumf>, %193, %cst_73 [1] : vector<16x132xf32> to vector<16xf32>
    %195 = vector.shape_cast %194 : vector<16xf32> to vector<16x1xf32>
    %196 = vector.broadcast %195 : vector<16x1xf32> to vector<16x132xf32>
    %197 = arith.cmpf oge, %193, %196 : vector<16x132xf32>
    %cst_74 = arith.constant 0xFF800000 : f32
    %198 = vector.broadcast %cst_74 : f32 to vector<16x132xf32>
    %199 = arith.select %197, %198, %193 : vector<16x132xi1>, vector<16x132xf32>
    %cst_75 = arith.constant dense<0xFF800000> : vector<16xf32>
    %200 = vector.multi_reduction <maximumf>, %199, %cst_75 [1] : vector<16x132xf32> to vector<16xf32>
    %201 = vector.shape_cast %200 : vector<16xf32> to vector<16x1xf32>
    %202 = vector.broadcast %201 : vector<16x1xf32> to vector<16x132xf32>
    %203 = arith.cmpf oge, %199, %202 : vector<16x132xf32>
    %cst_76 = arith.constant 0xFF800000 : f32
    %204 = vector.broadcast %cst_76 : f32 to vector<16x132xf32>
    %205 = arith.select %203, %204, %199 : vector<16x132xi1>, vector<16x132xf32>
    %cst_77 = arith.constant dense<0xFF800000> : vector<16xf32>
    %206 = vector.multi_reduction <maximumf>, %205, %cst_77 [1] : vector<16x132xf32> to vector<16xf32>
    %207 = vector.shape_cast %206 : vector<16xf32> to vector<16x1xf32>
    %208 = tpu.concatenate %189, %195, %201, %207 in 1 : vector<16x1xf32>, vector<16x1xf32>, vector<16x1xf32>, vector<16x1xf32> -> vector<16x4xf32>
    %cst_78 = arith.constant dense<0.000000e+00> : vector<16xf32>
    %209 = vector.multi_reduction <add>, %208, %cst_78 [1] : vector<16x4xf32> to vector<16xf32>
    %210 = vector.shape_cast %209 : vector<16xf32> to vector<16x1xf32>
    %cst_79 = arith.constant 4.000000e+00 : f32
    %211 = vector.broadcast %cst_79 : f32 to vector<16x1xf32>
    %212 = arith.divf %210, %211 : vector<16x1xf32>
    %213 = tpu.concatenate %208, %212 in 1 : vector<16x4xf32>, vector<16x1xf32> -> vector<16x5xf32>
    %214 = tpu.concatenate %49, %95, %141, %187 in 1 : vector<16x1xf32>, vector<16x1xf32>, vector<16x1xf32>, vector<16x1xf32> -> vector<16x4xf32>
    %c0_80 = arith.constant 0 : index
    %c0_81 = arith.constant 0 : index
    %215 = vector.load %arg18[%c0_80, %c0_81] : memref<16x4xf32, #tpu.memory_space<vmem>>, vector<16x4xf32>
    tpu.vector_store %arg18[%c0_80, %c0_81], %214 {strides = array<i32>} : memref<16x4xf32, #tpu.memory_space<vmem>>, vector<16x4xf32>,
    %216 = tpu.concatenate %75, %121, %167, %213 in 1 : vector<16x5xf32>, vector<16x5xf32>, vector<16x5xf32>, vector<16x5xf32> -> vector<16x20xf32>
    %c0_82 = arith.constant 0 : index
    %c0_83 = arith.constant 0 : index
    %217 = vector.load %arg13[%c0_82, %c0_83] : memref<20x64xbf16, #tpu.memory_space<vmem>>, vector<20x64xbf16>
    %218 = arith.truncf %216 : vector<16x20xf32> to vector<16x20xbf16>
    %cst_84 = arith.constant dense<0.000000e+00> : vector<16x64xf32>
    %219 = tpu.matmul %218, %217, %cst_84 {dimension_numbers = #tpu.dot_dimension_numbers<[1], [0], [0], [1], [0, 0, 1, 1], [], []>} : vector<16x20xbf16>, vector<20x64xbf16>, vector<16x64xf32> -> vector<16x64xf32>
    %c0_85 = arith.constant 0 : index
    %c0_86 = arith.constant 0 : index
    %220 = vector.load %arg14[%c0_85, %c0_86] : memref<1x64xf32, #tpu.memory_space<vmem>>, vector<1x64xf32>
    %221 = vector.broadcast %220 : vector<1x64xf32> to vector<16x64xf32>
    %222 = arith.addf %219, %221 : vector<16x64xf32>
    %cst_87 = arith.constant 0.000000e+00 : f32
    %223 = vector.broadcast %cst_87 : f32 to vector<16x64xf32>
    %224 = arith.maximumf %222, %223 : vector<16x64xf32>
    %c0_88 = arith.constant 0 : index
    %c0_89 = arith.constant 0 : index
    %225 = vector.load %arg15[%c0_88, %c0_89] : memref<1x64xf32, #tpu.memory_space<vmem>>, vector<1x64xf32>
    %226 = vector.broadcast %225 : vector<1x64xf32> to vector<16x64xf32>
    %227 = arith.mulf %224, %226 : vector<16x64xf32>
    %cst_90 = arith.constant dense<0.000000e+00> : vector<16xf32>
    %228 = vector.multi_reduction <add>, %227, %cst_90 [1] : vector<16x64xf32> to vector<16xf32>
    %229 = vector.shape_cast %228 : vector<16xf32> to vector<16x1xf32>
    %c0_91 = arith.constant 0 : index
    %c0_92 = arith.constant 0 : index
    %230 = vector.load %arg16[%c0_91, %c0_92] : memref<1x1xf32, #tpu.memory_space<vmem>>, vector<1x1xf32>
    %231 = vector.broadcast %230 : vector<1x1xf32> to vector<16x1xf32>
    %232 = arith.addf %229, %231 : vector<16x1xf32>
    %c0_93 = arith.constant 0 : index
    %c0_94 = arith.constant 0 : index
    %233 = vector.load %arg10[%c0_93, %c0_94] : memref<2x32xf32, #tpu.memory_space<vmem>>, vector<1x32xf32>
    %234 = vector.broadcast %233 : vector<1x32xf32> to vector<16x32xf32>
    %235 = arith.mulf %0, %234 : vector<16x32xf32>
    %cst_95 = arith.constant dense<0.000000e+00> : vector<16xf32>
    %236 = vector.multi_reduction <add>, %235, %cst_95 [1] : vector<16x32xf32> to vector<16xf32>
    %237 = vector.shape_cast %236 : vector<16xf32> to vector<16x1xf32>
    %c1 = arith.constant 1 : index
    %c0_96 = arith.constant 0 : index
    %238 = vector.load %arg10[%c1, %c0_96] : memref<2x32xf32, #tpu.memory_space<vmem>>, vector<1x32xf32>
    %239 = vector.broadcast %238 : vector<1x32xf32> to vector<16x32xf32>
    %240 = arith.mulf %0, %239 : vector<16x32xf32>
    %cst_97 = arith.constant dense<0.000000e+00> : vector<16xf32>
    %241 = vector.multi_reduction <add>, %240, %cst_97 [1] : vector<16x32xf32> to vector<16xf32>
    %242 = vector.shape_cast %241 : vector<16xf32> to vector<16x1xf32>
    %243 = tpu.concatenate %237, %242 in 1 : vector<16x1xf32>, vector<16x1xf32> -> vector<16x2xf32>
    %c0_98 = arith.constant 0 : index
    %c0_99 = arith.constant 0 : index
    %244 = vector.load %arg11[%c0_98, %c0_99] : memref<1x2xf32, #tpu.memory_space<vmem>>, vector<1x2xf32>
    %245 = vector.broadcast %244 : vector<1x2xf32> to vector<16x2xf32>
    %246 = arith.addf %243, %245 : vector<16x2xf32>
    %247 = vector.broadcast %232 : vector<16x1xf32> to vector<16x2xf32>
    %248 = arith.addf %246, %247 : vector<16x2xf32>
    %c0_100 = arith.constant 0 : index
    %c0_101 = arith.constant 0 : index
    %249 = vector.load %arg19[%c0_100, %c0_101] : memref<16x2xf32, #tpu.memory_space<vmem>>, vector<16x2xf32>
    tpu.vector_store %arg19[%c0_100, %c0_101], %248 {strides = array<i32>} : memref<16x2xf32, #tpu.memory_space<vmem>>, vector<16x2xf32>,
    return
  }
  func.func @transform_0(%arg0: i32) -> (i32, i32) {
    %c0_i32 = arith.constant 0 : i32
    %c0_i32_0 = arith.constant 0 : i32
    return %arg0, %c0_i32 : i32, i32
  }
  func.func @transform_1(%arg0: i32) -> (i32, i32) {
    %c0_i32 = arith.constant 0 : i32
    %c0_i32_0 = arith.constant 0 : i32
    return %arg0, %c0_i32 : i32, i32
  }
  func.func @transform_2(%arg0: i32) -> (i32, i32) {
    %c0_i32 = arith.constant 0 : i32
    %c0_i32_0 = arith.constant 0 : i32
    return %arg0, %c0_i32 : i32, i32
  }
  func.func @transform_3(%arg0: i32) -> (i32, i32) {
    %c0_i32 = arith.constant 0 : i32
    %c0_i32_0 = arith.constant 0 : i32
    %c0_i32_1 = arith.constant 0 : i32
    return %c0_i32, %c0_i32_0 : i32, i32
  }
  func.func @transform_4(%arg0: i32) -> (i32, i32) {
    %c0_i32 = arith.constant 0 : i32
    %c0_i32_0 = arith.constant 0 : i32
    %c0_i32_1 = arith.constant 0 : i32
    return %c0_i32, %c0_i32_0 : i32, i32
  }
  func.func @transform_5(%arg0: i32) -> (i32, i32) {
    %c0_i32 = arith.constant 0 : i32
    %c0_i32_0 = arith.constant 0 : i32
    %c0_i32_1 = arith.constant 0 : i32
    return %c0_i32, %c0_i32_0 : i32, i32
  }
  func.func @transform_6(%arg0: i32) -> (i32, i32) {
    %c0_i32 = arith.constant 0 : i32
    %c0_i32_0 = arith.constant 0 : i32
    %c0_i32_1 = arith.constant 0 : i32
    return %c0_i32, %c0_i32_0 : i32, i32
  }
  func.func @transform_7(%arg0: i32) -> (i32, i32) {
    %c0_i32 = arith.constant 0 : i32
    %c0_i32_0 = arith.constant 0 : i32
    %c0_i32_1 = arith.constant 0 : i32
    return %c0_i32, %c0_i32_0 : i32, i32
  }
  func.func @transform_8(%arg0: i32) -> (i32, i32) {
    %c0_i32 = arith.constant 0 : i32
    %c0_i32_0 = arith.constant 0 : i32
    %c0_i32_1 = arith.constant 0 : i32
    return %c0_i32, %c0_i32_0 : i32, i32
  }
  func.func @transform_9(%arg0: i32) -> (i32, i32) {
    %c0_i32 = arith.constant 0 : i32
    %c0_i32_0 = arith.constant 0 : i32
    %c0_i32_1 = arith.constant 0 : i32
    return %c0_i32, %c0_i32_0 : i32, i32
  }
  func.func @transform_10(%arg0: i32) -> (i32, i32) {
    %c0_i32 = arith.constant 0 : i32
    %c0_i32_0 = arith.constant 0 : i32
    %c0_i32_1 = arith.constant 0 : i32
    return %c0_i32, %c0_i32_0 : i32, i32
  }
  func.func @transform_11(%arg0: i32) -> (i32, i32) {
    %c0_i32 = arith.constant 0 : i32
    %c0_i32_0 = arith.constant 0 : i32
    %c0_i32_1 = arith.constant 0 : i32
    return %c0_i32, %c0_i32_0 : i32, i32
  }
  func.func @transform_12(%arg0: i32) -> (i32, i32) {
    %c0_i32 = arith.constant 0 : i32
    %c0_i32_0 = arith.constant 0 : i32
    %c0_i32_1 = arith.constant 0 : i32
    return %c0_i32, %c0_i32_0 : i32, i32
  }
  func.func @transform_13(%arg0: i32) -> (i32, i32) {
    %c0_i32 = arith.constant 0 : i32
    %c0_i32_0 = arith.constant 0 : i32
    %c0_i32_1 = arith.constant 0 : i32
    return %c0_i32, %c0_i32_0 : i32, i32
  }
  func.func @transform_14(%arg0: i32) -> (i32, i32) {
    %c0_i32 = arith.constant 0 : i32
    %c0_i32_0 = arith.constant 0 : i32
    %c0_i32_1 = arith.constant 0 : i32
    return %c0_i32, %c0_i32_0 : i32, i32
  }
  func.func @transform_15(%arg0: i32) -> (i32, i32) {
    %c0_i32 = arith.constant 0 : i32
    %c0_i32_0 = arith.constant 0 : i32
    %c0_i32_1 = arith.constant 0 : i32
    return %c0_i32, %c0_i32_0 : i32, i32
  }
  func.func @transform_16(%arg0: i32) -> (i32, i32) {
    %c0_i32 = arith.constant 0 : i32
    %c0_i32_0 = arith.constant 0 : i32
    return %arg0, %c0_i32 : i32, i32
  }
  func.func @transform_17(%arg0: i32) -> (i32, i32) {
    %c0_i32 = arith.constant 0 : i32
    %c0_i32_0 = arith.constant 0 : i32
    return %arg0, %c0_i32 : i32, i32
  }
  func.func @transform_18(%arg0: i32) -> (i32, i32) {
    %c0_i32 = arith.constant 0 : i32
    %c0_i32_0 = arith.constant 0 : i32
    return %arg0, %c0_i32 : i32, i32
  }
}

</mosaic_0001>

<bundles_post_ra>
// kernel: _lambda_.16
= control target key start
LH: loop header
LB: loop body
LE: loop exit
PB: predicated region body
PF: predicated region fallthrough
CT: control target
= control target key end

     0   :  { %v231_v0 = vmov 0.0   ;;  %vm232_vm0 = vmmov 0   ;;  %vm63_vm1 = vcmask 523264   ;;  %vm134_vm2 = vcmask 261120   ;;  %s299_s1 = inlined_call_operand.vmem [shape: bf16[64,32], index: 1, kind: input, shape index: {}]   ;;  %s300_s0 = inlined_call_operand.vmem [shape: f32[16,64], index: 0, kind: input, shape index: {}]   ;;  %s301_s3 = inlined_call_operand.vmem [shape: bf16[32,32], index: 3, kind: input, shape index: {}]   ;;  %s302_s2 = inlined_call_operand.vmem [shape: f32[1,32], index: 2, kind: input, shape index: {}]   ;;  %s303_s4 = inlined_call_operand.vmem [shape: f32[1,32], index: 4, kind: input, shape index: {}]   ;;  %s304_s5 = inlined_call_operand.vmem [shape: f32[16,32], index: 5, kind: output, shape index: {}]  }
   0x1   :  { %203 = vmatprep.subr.bf16.mxu0 %v231_v0  ;;  %v225_v1 = vld [vmem:[%s299_s1] sm:$0xff]   ;;  %211 = vmatprep.mubr.msk.bf16.mxu0 %vm232_vm0, %v231_v0  ;;  %v226_v2 = vld [vmem:[%s299_s1 + $0x8] sm:$0xff]   ;;  %v227_v3 = vld [vmem:[%s299_s1 + $0x10] sm:$0xff]  }
   0x2   :  { %215 = vmatprep.subr.bf16.mxu1 %v231_v0  ;;  %219 = vmatprep.mubr.msk.bf16.mxu1 %vm232_vm0, %v231_v0  ;;  %v228_v4 = vld [vmem:[%s299_s1 + $0x18] sm:$0xff]   ;;  %v21_v5 = vld [vmem:[%s300_s0] sm:$0xff]  ;;  %v22_v6 = vld [vmem:[%s300_s0 + $0x8] sm:$0xff] }
   0x3   :  { %204 = vmatpush3.bf16.msra.mxu0 %v225_v1  ;;  %v31_v7 = vpack.c.bf16 %v22_v6, %v21_v5  ;;  %v229_v8 = vld [vmem:[%s301_s3] sm:$0xff]   ;;  %v230_v9 = vld [vmem:[%s301_s3 + $0x8] sm:$0xff]  }
   0x4   :  { %205 = vmatprep.subr.bf16.mxu0 %v231_v0  ;;  %216 = vmatpush3.bf16.msra.mxu1 %v229_v8  ;;  %v185_v10 = vld [vmem:[%s302_s2] ss:$0 sm:$0xff] }
   0x5   :  { %217 = vmatprep.subr.bf16.mxu1 %v231_v0  ;;  %v191_v20 = vld [vmem:[%s303_s4] ss:$0 sm:$0xff] }
   0x7   :  { %206 = vmatpush3.bf16.msra.mxu0 %v226_v2 }
   0x8   :  { %207 = vmatprep.subr.bf16.mxu0 %v231_v0  ;;  %218 = vmatpush3.bf16.msra.mxu1 %v230_v9 }
   0xb   :  { %208 = vmatpush3.bf16.msra.mxu0 %v227_v3 }
   0xc   :  { %209 = vmatprep.subr.bf16.mxu0 %v231_v0 }
   0xf   :  { %210 = vmatpush3.bf16.msra.mxu0 %v228_v4 }
  0x12   :  { %212 = vmatmul.mubr.msk.bf16.vlgmr.msra.gmra.mrb[0].mxu0 %vm63_vm1, %v31_v7 }
  0xe5   :  { %v101_v11 = vpop.f32.mrb[0].mxu0 }
  0xe6   :  { %v102_v12 = vadd.f32 %v185_v10, %v101_v11  ;;  %v213_v13 = vpop.f32.mrb[1].mxu0 }
  0xe7   :  { %v104_v14 = vpop.f32.mrb[2].mxu0 }
  0xe8   :  { %v105_v15 = vadd.f32 %v185_v10, %v104_v14  ;;  %v214_v16 = vpop.f32.mrb[3].mxu0  ;;  %v108_v17 = vmax.f32 %v102_v12, 0.0 }
  0xea   :  { %v109_v18 = vmax.f32 %v105_v15, 0.0 }
  0xec   :  { %v114_v19 = vpack.c.bf16 %v109_v18, %v108_v17 }
  0xee   :  { %220 = vmatmul.mubr.msk.bf16.vlgmr.msra.gmra.mrb[0].mxu1 %vm134_vm2, %v114_v19 }
 0x1c1   :  { %v172_v21 = vpop.f32.mrb[0].mxu1 }
 0x1c2   :  { %v173_v22 = vadd.f32 %v191_v20, %v172_v21  ;;  %v221_v23 = vpop.f32.mrb[1].mxu1 }
 0x1c3   :  { %v175_v24 = vpop.f32.mrb[2].mxu1 }
 0x1c4   :  { %179 = vst.msk [vmem:[%s304_s5] sm:$0xff] %vm134_vm2, %v173_v22  ;;  %v176_v25 = vadd.f32 %v191_v20, %v175_v24  ;;  %v222_v26 = vpop.f32.mrb[3].mxu1 }
 0x1c6   :  { %180 = vst.msk [vmem:[%s304_s5 + $0x8] sm:$0xff] %vm134_vm2, %v176_v25 }

// kernel: _lambda_.17
= control target key start
LH: loop header
LB: loop body
LE: loop exit
PB: predicated region body
PF: predicated region fallthrough
CT: control target
= control target key end

     0   :  { %v348_v0 = vmov 0.0   ;;  %vm349_vm0 = vmmov 0   ;;  %vm63_vm1 = vcmask 261120   ;;  %vm116_vm2 = vcmask 257024   ;;  %s471_s2 = inlined_call_operand.vmem [shape: bf16[32,32], index: 2, kind: input, shape index: {}]   ;;  %s472_s4 = inlined_call_operand.vmem [shape: bf16[32,32], index: 4, kind: input, shape index: {}]   ;;  %s473_s0 = inlined_call_operand.vmem [shape: f32[16,32], index: 0, kind: input, shape index: {}]   ;;  %s474_s1 = inlined_call_operand.vmem [shape: f32[16,32], index: 1, kind: input, shape index: {}]   ;;  %s475_s6 = inlined_call_operand.vmem [shape: bf16[32,32], index: 6, kind: input, shape index: {}]   ;;  %s476_s3 = inlined_call_operand.vmem [shape: f32[1,32], index: 3, kind: input, shape index: {}]   ;;  %s477_s5 = inlined_call_operand.vmem [shape: f32[1,32], index: 5, kind: input, shape index: {}]   ;;  %s478_s8 = inlined_call_operand.vmem [shape: bf16[16,32], index: 8, kind: output, shape index: {0}]   ;;  %s479_s7 = inlined_call_operand.vmem [shape: f32[1,32], index: 7, kind: input, shape index: {}]   ;;  %s480_s9 = inlined_call_operand.vmem [shape: bf16[16,32], index: 9, kind: output, shape index: {1}]   ;;  %s481_s10 = inlined_call_operand.vmem [shape: bf16[16,32], index: 10, kind: output, shape index: {2}]  }
   0x1   :  { %316 = vmatprep.subr.bf16.mxu0 %v348_v0  ;;  %v342_v1 = vld [vmem:[%s471_s2] sm:$0xff]   ;;  %324 = vmatprep.subr.bf16.mxu1 %v348_v0  ;;  %v343_v2 = vld [vmem:[%s471_s2 + $0x8] sm:$0xff]  }
   0x2   :  { %320 = vmatprep.mubr.msk.bf16.mxu0 %vm349_vm0, %v348_v0  ;;  %328 = vmatprep.mubr.msk.bf16.mxu1 %vm349_vm0, %v348_v0  ;;  %v344_v3 = vld [vmem:[%s472_s4] sm:$0xff]   ;;  %v34_v5 = vld [vmem:[%s473_s0 + $0x8] sm:$0xff] }
   0x3   :  { %317 = vmatpush3.bf16.msra.mxu0 %v342_v1  ;;  %v33_v4 = vld [vmem:[%s473_s0] sm:$0xff]  ;;  %325 = vmatpush3.bf16.msra.mxu1 %v344_v3  ;;  %v36_v7 = vld [vmem:[%s474_s1 + $0x8] sm:$0xff] }
   0x4   :  { %318 = vmatprep.subr.bf16.mxu0 %v348_v0  ;;  %v35_v6 = vld [vmem:[%s474_s1] sm:$0xff]  ;;  %v38_v9 = vadd.f32 %v36_v7, %v34_v5  ;;  %326 = vmatprep.subr.bf16.mxu1 %v348_v0  ;;  %v346_v11 = vld [vmem:[%s472_s4 + $0x8] sm:$0xff]   ;;  %v197_v14 = vpack.c.bf16 %v34_v5, %v33_v4 }
   0x5   :  { %v37_v8 = vadd.f32 %v35_v6, %v33_v4  ;;  %v345_v10 = vld [vmem:[%s475_s6] sm:$0xff]   ;;  %v347_v13 = vld [vmem:[%s475_s6 + $0x8] sm:$0xff]  }
   0x6   :  { %v283_v15 = vld [vmem:[%s476_s3] ss:$0 sm:$0xff] }
   0x7   :  { %319 = vmatpush3.bf16.msra.mxu0 %v343_v2  ;;  %v43_v12 = vpack.c.bf16 %v38_v9, %v37_v8  ;;  %327 = vmatpush3.bf16.msra.mxu1 %v346_v11  ;;  %v289_v17 = vld [vmem:[%s477_s5] ss:$0 sm:$0xff] }
   0x8   :  { %332 = vmatprep.subr.bf16.mxu0 %v348_v0  ;;  %v295_v32 = vld [vmem:[%s479_s7] ss:$0 sm:$0xff] }
   0xa   :  { %321 = vmatmul.mubr.msk.bf16.vlgmr.msra.gmra.mrb[0].mxu0 %vm63_vm1, %v43_v12  ;;  %329 = vmatmul.mubr.msk.bf16.vlgmr.msra.gmra.mrb[0].mxu1 %vm63_vm1, %v43_v12 }
   0xb   :  { %333 = vmatpush3.bf16.msra.mxu0 %v345_v10  ;;  %336 = vmatprep.mubr.msk.bf16.mxu0 %vm349_vm0, %v348_v0 }
   0xc   :  { %334 = vmatprep.subr.bf16.mxu0 %v348_v0 }
   0xf   :  { %335 = vmatpush3.bf16.msra.mxu0 %v347_v13 }
  0x12   :  { %337 = vmatmul.mubr.msk.bf16.vlgmr.msra.gmra.mrb[4].mxu0 %vm63_vm1, %v197_v14 }
  0xdd   :  { %v101_v16 = vpop.f32.mrb[0].mxu0  ;;  %v176_v21 = vpop.f32.mrb[0].mxu1 }
  0xde   :  { %v102_v18 = vadd.f32 %v283_v15, %v101_v16  ;;  %v322_v19 = vpop.f32.mrb[1].mxu0  ;;  %v177_v25 = vadd.f32 %v289_v17, %v176_v21  ;;  %v330_v26 = vpop.f32.mrb[1].mxu1 }
  0xdf   :  { %v104_v20 = vpop.f32.mrb[2].mxu0  ;;  %v179_v27 = vpop.f32.mrb[2].mxu1 }
  0xe0   :  { %v301_v22 = vpack.c.bf16 %v102_v18, %v102_v18  ;;  %v105_v23 = vadd.f32 %v283_v15, %v104_v20  ;;  %v323_v24 = vpop.f32.mrb[3].mxu0  ;;  %v303_v29 = vpack.c.bf16 %v177_v25, %v177_v25  ;;  %v180_v30 = vadd.f32 %v289_v17, %v179_v27  ;;  %v331_v31 = vpop.f32.mrb[3].mxu1 }
  0xe2   :  { %117 = vst.msk [vmem:[%s478_s8] sm:$0xf] %vm116_vm2, %v301_v22  ;;  %v302_v28 = vpack.c.bf16 %v105_v23, %v105_v23  ;;  %191 = vst.msk [vmem:[%s480_s9] sm:$0xf] %vm116_vm2, %v303_v29  ;;  %v304_v33 = vpack.c.bf16 %v180_v30, %v180_v30 }
  0xe4   :  { %118 = vst.msk [vmem:[%s478_s8 + $0x4] sm:$0xf] %vm116_vm2, %v302_v28  ;;  %192 = vst.msk [vmem:[%s480_s9 + $0x4] sm:$0xf] %vm116_vm2, %v304_v33 }
  0xe5   :  { %v254_v34 = vpop.f32.mrb[4].mxu0 }
  0xe6   :  { %v255_v35 = vadd.f32 %v295_v32, %v254_v34  ;;  %v338_v36 = vpop.f32.mrb[5].mxu0 }
  0xe7   :  { %v257_v37 = vpop.f32.mrb[6].mxu0 }
  0xe8   :  { %v305_v38 = vpack.c.bf16 %v255_v35, %v255_v35  ;;  %v258_v39 = vadd.f32 %v295_v32, %v257_v37  ;;  %v339_v40 = vpop.f32.mrb[7].mxu0 }
  0xea   :  { %269 = vst.msk [vmem:[%s481_s10] sm:$0xf] %vm116_vm2, %v305_v38  ;;  %v306_v41 = vpack.c.bf16 %v258_v39, %v258_v39 }
  0xec   :  { %270 = vst.msk [vmem:[%s481_s10 + $0x4] sm:$0xf] %vm116_vm2, %v306_v41 }

// kernel: _lambda_.18
= control target key start
LH: loop header
LB: loop body
LE: loop exit
PB: predicated region body
PF: predicated region fallthrough
CT: control target
= control target key end

     0   :  { %s595_s12 = smov 0   ;;  %s597_s13 = smov 0   ;;  %s651_s0 = inlined_call_operand.vmem [shape: bf16[8,8,8], index: 0, kind: input, shape index: {}]   ;;  %s652_s1 = inlined_call_operand.vmem [shape: bf16[8,8,8], index: 1, kind: input, shape index: {}]   ;;  %s653_s2 = inlined_call_operand.vmem [shape: bf16[8,8,8], index: 2, kind: input, shape index: {}]   ;;  %s654_s3 = inlined_call_operand.vmem [shape: bf16[8,8,8], index: 3, kind: output, shape index: {}]  }
   0x1   :  { %s599_s14 = smov 0  }
   0x2 LB: > { %s25_s15 = sadd.s32 1, %s565_s13  ;;  %p486_p0 = scmp.ge.s32.totalorder %s569_s14, 1  ;;  %s569_s14 = sphi %s599_s14, %s13_s14   ;;  %s565_s13 = sphi %s597_s13, %s656_s13   ;;  %s561_s12 = sphi %s595_s12, %s655_s12  }
   0x3   : > { %p27_p1 = scmp.ge.s32.totalorder %s25_s15, 8  ;;  %p176_p2 = scmp.lt.s32.totalorder %s569_s14, 9 }
   0x5   : > { %s658_s15 = smov (%p27_p1, %s25_s15), 0  ;;  %p177_p3 = pnand %p486_p0, %p176_p2 }
   0x6   : > { %p212_p4 = scmp.lt.s32.totalorder (!%p177_p3), %s561_s12, 7  ;;  %vm242_vm0 = vcmask (!%p177_p3), 64512   ;;  %v571_v0 = vmov (!%p177_p3), 0.0   ;;  %vm572_vm1 = vmmov (!%p177_p3), 0   ;;  %vm239_vm2 = vcmask (!%p177_p3), 7168  }
   0x7   : > { %180 = sbr.rel (%p177_p3) target bundleno = 823 (0x337), region = 32  ;;  %499 = vmatprep.subr.bf16.mxu0 (!%p177_p3), %v571_v0  ;;  %243 = vst.msk [vmem:[#allocation4] sm:$0xff] (!%p177_p3), %vm242_vm0, %v571_v0  ;;  %501 = vmatprep.mubr.msk.bf16.mxu0 (!%p177_p3), %vm572_vm1, %v571_v0  ;;  %v573_v4 = vmov (!%p177_p3), -inf   ;;  %v574_v10 = vmov (!%p177_p3), 0   ;;  %vm329_vm3 = vcmask (!%p177_p3), 1043456   ;;  %vm389_vm4 = vcmask (!%p177_p3), 60416  }
   0x8   : > { %505 = vmatprep.subr.bf16.mxu1 (!%p177_p3), %v571_v0  ;;  %507 = vmatprep.mubr.msk.bf16.mxu1 (!%p177_p3), %vm572_vm1, %v571_v0  ;;  %240 = vst.msk [vmem:[#allocation2] sm:$0xff] (!%p177_p3), %vm239_vm2, %v573_v4  ;;  %241 = vst.msk [vmem:[#allocation3] sm:$0xff] (!%p177_p3), %vm239_vm2, %v571_v0 }
   0x9   : > { %539 = vset.pattern.permute.xlu0 (!%p177_p3), %v574_v10  ;;  %540 = vset.pattern.permute.xlu1 (!%p177_p3), %v574_v10 }
   0xe   : > { %s660_s12 = smov (!%p212_p4, %s561_s12), 7  ;;  %v317_v31 = vld [vmem:[#allocation4] sm:$0xff] }
   0xf   : > { %s614_s16 = sshll.u32 %s660_s12, 2  ;;  %v293_v11 = vld [vmem:[#allocation2] sm:$0xff]  ;;  %v309_v25 = vld [vmem:[#allocation3] sm:$0xff] }
  0x10   : > { %s222_s19 = scalar_lea.vmem %s652_s1, %s614_s16  ;;  %s215_s22 = scalar_lea.vmem %s651_s0, %s614_s16 }
  0x11   : > { %v245_v1 = vld [vmem:[%s222_s19] sm:$0xf]  ;;  %s229_s25 = scalar_lea.vmem %s653_s2, %s614_s16  ;;  %s233_s28 = scalar_lea.vmem %s654_s3, %s614_s16 }
  0x12   : > { %v251_v2 = vsel %vm242_vm0, %v245_v1, 0  ;;  %v244_v3 = vld [vmem:[%s215_s22] sm:$0xf] }
  0x13   : > { %500 = vmatpush3.bf16.xpose.msra.mxu0 %v251_v2  ;;  %v325_v15 = vld [vmem:[%s229_s25] sm:$0xf] }
  0x14   : > { %v331_v16 = vsel %vm329_vm3, %v325_v15, 0 }
  0x15   : > { %506 = vmatpush3.bf16.msra.mxu1 %v331_v16 }
  0x1a   : > { %502 = vmatmul.mubr.msk.bf16.vlgmr.msra.gmra.mrb[0].mxu0 %vm242_vm0, %v244_v3 }
  0xed   : > { %v287_v5 = vpop.f32.mrb[0].mxu0 }
  0xee   : > { %v503_v6 = vpop.f32.mrb[1].mxu0  ;;  %v294_v7 = vsel %vm242_vm0, %v287_v5, -inf }
  0xef   : > { %295 = vmax.xlane.f32.xlu0 %v294_v7  ;;  %v290_v8 = vpop.f32.mrb[2].mxu0 }
  0xf0   : > { %v504_v9 = vpop.f32.mrb[3].mxu0 }
 0x17c   : > { %v296_v12 = vpop.xlane.xlu0 %295 }
 0x17d   : > { %v297_v13 = vmax.f32 %v293_v11, %v296_v12 }
 0x17f   : > { %v298_v14 = vsub.f32 %v293_v11, %v297_v13  ;;  %375 = vst.msk [vmem:[#allocation2] sm:$0xff] %vm239_vm2, %v297_v13  ;;  %303 = vperm.xlu0 %539, %v297_v13  }
 0x181   : > { %v299_v23 = vmul.f32 1.442695, %v298_v14 }
 0x1fe   : > { %v304_v17 = vpop.permute.xlu0 %303 }
 0x1ff   : > { %v306_v18 = vsub.f32 %v287_v5, %v304_v17 }
 0x201   : > { %v307_v19 = vmul.f32 1.442695, %v306_v18 }
 0x203   : > { %541 = vpow2.f32 %v307_v19 }
 0x204   : > { %543 = vpow2.f32 %v299_v23 }
 0x20d   : > { %v542_v20 = vpop.eup %541 }
 0x20e   : > { %v311_v21 = vsel %vm242_vm0, %v542_v20, 0.0  ;;  %v324_v22 = vpack.c.bf16 %v542_v20, %v542_v20  ;;  %v544_v24 = vpop.eup %543 }
 0x20f   : > { %312 = vadd.xlane.f32.xlu1 %v311_v21  ;;  %v310_v26 = vmul.f32 %v544_v24, %v309_v25 }
 0x210   : > { %508 = vmatmul.mubr.msk.bf16.vlgmr.msra.gmra.mrb[0].mxu1 %vm242_vm0, %v324_v22 }
 0x220   : > { %320 = vperm.xlu1 %540, %v544_v24  }
 0x29c   : > { %v313_v27 = vpop.xlane.xlu1 %312 }
 0x29d   : > { %v314_v28 = vadd.f32 %v313_v27, %v310_v26 }
 0x29f   : > { %316 = vst.msk [vmem:[#allocation3] sm:$0xff] %vm239_vm2, %v314_v28 }
 0x2a0   : > { %v321_v32 = vpop.permute.xlu1 %320 }
 0x2a1   : > { %v323_v33 = vmul.f32 %v321_v32, %v317_v31 }
 0x2a6   : > { %v380_v29 = vld [vmem:[#allocation3] sm:$0xff] }
 0x2a7   : > { %545 = vrcp.f32 %v380_v29 }
 0x2b1   : > { %v546_v30 = vpop.eup %545 }
 0x2b2   : > { %384 = vperm.xlu1 %540, %v546_v30  }
 0x2e3   : > { %v367_v34 = vpop.f32.mrb[0].mxu1 }
 0x2e4   : > { %v373_v35 = vadd.f32 %v367_v34, %v323_v33  ;;  %v509_v36 = vpop.f32.mrb[1].mxu1 }
 0x2e5   : > { %v370_v37 = vpop.f32.mrb[2].mxu1 }
 0x2e6   : > { %374 = vst.msk [vmem:[#allocation4] sm:$0xff] %vm242_vm0, %v373_v35  ;;  %v510_v38 = vpop.f32.mrb[3].mxu1 }
 0x2ed   : > { %v379_v39 = vld [vmem:[#allocation4] sm:$0xff] }
 0x331   : > { %v385_v40 = vpop.permute.xlu1 %384 }
 0x332   : > { %v387_v41 = vmul.f32 %v385_v40, %v379_v39 }
 0x334   : > { %v388_v42 = vpack.c.bf16 %v387_v41, %v387_v41 }
 0x336   : > { %390 = vst.msk [vmem:[%s233_s28] sm:$0xf] %vm389_vm4, %v388_v42 }
 0x337 PF: > { %s13_s14 = sadd.s32 1, %s569_s14   ;;  %s655_s12 = smov %s565_s13 }
 0x338   : > { %p10_p5 = scmp.ge.s32.totalorder %s13_s14, 10   ;;  %s656_s13 = smov %s658_s15 }
 0x33a   :  { %12 = sbr.rel (!%p10_p5) target bundleno = 2 (0x2), region = 76 }

// kernel: _lambda_.19
= control target key start
LH: loop header
LB: loop body
LE: loop exit
PB: predicated region body
PF: predicated region fallthrough
CT: control target
= control target key end

     0   :  { %v302_v0 = vmov 0.0   ;;  %vm303_vm0 = vmmov 0   ;;  %vm60_vm1 = vcmask 261120   ;;  %vm243_vm2 = vcmask 257024   ;;  %s418_s3 = inlined_call_operand.vmem [shape: bf16[32,32], index: 3, kind: input, shape index: {}]   ;;  %s419_s0 = inlined_call_operand.vmem [shape: bf16[16,32], index: 0, kind: input, shape index: {}]   ;;  %s420_s1 = inlined_call_operand.vmem [shape: f32[16,32], index: 1, kind: input, shape index: {}]   ;;  %s421_s4 = inlined_call_operand.vmem [shape: f32[1,32], index: 4, kind: input, shape index: {}]   ;;  %s422_s7 = inlined_call_operand.vmem [shape: bf16[32,32], index: 7, kind: input, shape index: {}]   ;;  %s423_s5 = inlined_call_operand.vmem [shape: f32[1,32], index: 5, kind: input, shape index: {}]   ;;  %s424_s6 = inlined_call_operand.vmem [shape: f32[1,32], index: 6, kind: input, shape index: {}]   ;;  %s425_s9 = inlined_call_operand.vmem [shape: f32[16,32], index: 9, kind: output, shape index: {0}]   ;;  %s426_s2 = inlined_call_operand.vmem [shape: f32[16,32], index: 2, kind: input, shape index: {}]   ;;  %s427_s8 = inlined_call_operand.vmem [shape: f32[1,32], index: 8, kind: input, shape index: {}]   ;;  %s428_s10 = inlined_call_operand.vmem [shape: bf16[16,32], index: 10, kind: output, shape index: {1}]  }
   0x1   :  { %275 = vmatprep.subr.bf16.mxu0 %v302_v0  ;;  %v293_v1 = vld [vmem:[%s418_s3] sm:$0xff]   ;;  %279 = vmatprep.mubr.msk.bf16.mxu0 %vm303_vm0, %v302_v0  ;;  %v294_v2 = vld [vmem:[%s418_s3 + $0x8] sm:$0xff]  }
   0x2   :  { %283 = vmatprep.subr.bf16.mxu1 %v302_v0  ;;  %287 = vmatprep.mubr.msk.bf16.mxu1 %vm303_vm0, %v302_v0  ;;  %v295_v3 = vld [vmem:[%s419_s0] sm:$0xff]   ;;  %v36_v6 = vld [vmem:[%s420_s1 + $0x8] sm:$0xff] }
   0x3   :  { %276 = vmatpush3.bf16.msra.mxu0 %v293_v1  ;;  %v35_v4 = vld [vmem:[%s420_s1] sm:$0xff]  ;;  %v297_v28 = vld [vmem:[%s422_s7 + $0x8] sm:$0xff]  }
   0x4   :  { %277 = vmatprep.subr.bf16.mxu0 %v302_v0  ;;  %v258_v7 = vld [vmem:[%s421_s4] ss:$0 sm:$0xff]  ;;  %v164_v45 = vld [vmem:[%s426_s2 + $0x8] sm:$0xff] }
   0x5   :  { %v296_v27 = vld [vmem:[%s422_s7] sm:$0xff]  }
   0x6   :  { %284 = vmatpush3.bf16.msra.mxu1 %v296_v27  ;;  %v259_v36 = vld [vmem:[%s423_s5] ss:$0 sm:$0xff] }
   0x7   :  { %278 = vmatpush3.bf16.msra.mxu0 %v294_v2  ;;  %285 = vmatprep.subr.bf16.mxu1 %v302_v0  ;;  %v260_v38 = vld [vmem:[%s424_s6] ss:$0 sm:$0xff] }
   0x8   :  { %v163_v44 = vld [vmem:[%s426_s2] sm:$0xff] }
   0x9   :  { %v261_v50 = vld [vmem:[%s427_s8] ss:$0 sm:$0xff] }
   0xa   :  { %280 = vmatmul.mubr.msk.bf16.vlgmr.msra.gmra.mrb[0].mxu0 %vm60_vm1, %v295_v3  ;;  %286 = vmatpush3.bf16.msra.mxu1 %v297_v28 }
  0xdd   :  { %v98_v5 = vpop.f32.mrb[0].mxu0 }
  0xde   :  { %v105_v8 = vadd.f32 %v98_v5, %v35_v4  ;;  %v281_v9 = vpop.f32.mrb[1].mxu0 }
  0xdf   :  { %v101_v10 = vpop.f32.mrb[2].mxu0 }
  0xe0   :  { %v106_v11 = vadd.f32 %v101_v10, %v36_v6  ;;  %v282_v12 = vpop.f32.mrb[3].mxu0  ;;  %v114_v13 = vadd.f32 %v258_v7, %v105_v8 }
  0xe2   :  { %v118_v14 = vsel %vm60_vm1, %v114_v13, 0.0  ;;  %v115_v15 = vadd.f32 %v258_v7, %v106_v11 }
  0xe3   :  { %119 = vadd.xlane.f32.xlu0 %v118_v14 }
  0xe4   :  { %v121_v16 = vsel %vm60_vm1, %v115_v15, 0.0 }
  0xe7   :  { %122 = vadd.xlane.f32.xlu0 %v121_v16 }
 0x170   :  { %v120_v17 = vpop.xlane.xlu0 %119 }
 0x171   :  { %v125_v18 = vmul.f32 0.03125, %v120_v17 }
 0x173   :  { %v127_v19 = vsub.f32 %v114_v13, %v125_v18 }
 0x174   :  { %v123_v20 = vpop.xlane.xlu0 %122 }
 0x175   :  { %v126_v21 = vmul.f32 0.03125, %v123_v20  ;;  %v129_v22 = vmul.f32 %v127_v19, %v127_v19 }
 0x177   :  { %v128_v23 = vsub.f32 %v115_v15, %v126_v21  ;;  %v131_v24 = vsel %vm60_vm1, %v129_v22, 0.0 }
 0x178   :  { %132 = vadd.xlane.f32.xlu1 %v131_v24 }
 0x179   :  { %v130_v25 = vmul.f32 %v128_v23, %v128_v23 }
 0x17b   :  { %v134_v26 = vsel %vm60_vm1, %v130_v25, 0.0 }
 0x17c   :  { %135 = vadd.xlane.f32.xlu1 %v134_v26 }
 0x205   :  { %v133_v29 = vpop.xlane.xlu1 %132 }
 0x206   :  { %v137_v30 = vmul.f32 0.03125, %v133_v29 }
 0x208   :  { %v139_v31 = vadd.f32 1e-05, %v137_v30 }
 0x209   :  { %v136_v32 = vpop.xlane.xlu1 %135 }
 0x20a   :  { %298 = vrsqrt.f32 %v139_v31  ;;  %v138_v33 = vmul.f32 0.03125, %v136_v32 }
 0x20c   :  { %v140_v34 = vadd.f32 1e-05, %v138_v33 }
 0x20e   :  { %300 = vrsqrt.f32 %v140_v34 }
 0x214   :  { %v299_v35 = vpop.eup %298 }
 0x215   :  { %v143_v37 = vmul.f32 %v299_v35, %v127_v19 }
 0x217   :  { %v151_v39 = vmul.f32 %v259_v36, %v143_v37 }
 0x218   :  { %v301_v40 = vpop.eup %300 }
 0x219   :  { %v144_v41 = vmul.f32 %v301_v40, %v128_v23  ;;  %v159_v42 = vadd.f32 %v260_v38, %v151_v39 }
 0x21b   :  { %v152_v43 = vmul.f32 %v259_v36, %v144_v41  ;;  %161 = vst.msk [vmem:[%s425_s9] sm:$0xff] %vm60_vm1, %v159_v42  ;;  %v165_v47 = vadd.f32 %v163_v44, %v159_v42 }
 0x21d   :  { %v160_v46 = vadd.f32 %v260_v38, %v152_v43 }
 0x21f   :  { %162 = vst.msk [vmem:[%s425_s9 + $0x8] sm:$0xff] %vm60_vm1, %v160_v46  ;;  %v166_v48 = vadd.f32 %v164_v45, %v160_v46 }
 0x221   :  { %v171_v49 = vpack.c.bf16 %v166_v48, %v165_v47 }
 0x223   :  { %288 = vmatmul.mubr.msk.bf16.vlgmr.msra.gmra.mrb[0].mxu1 %vm60_vm1, %v171_v49 }
 0x2f6   :  { %v228_v51 = vpop.f32.mrb[0].mxu1 }
 0x2f7   :  { %v229_v52 = vadd.f32 %v261_v50, %v228_v51  ;;  %v289_v53 = vpop.f32.mrb[1].mxu1 }
 0x2f8   :  { %v231_v54 = vpop.f32.mrb[2].mxu1 }
 0x2f9   :  { %v267_v55 = vpack.c.bf16 %v229_v52, %v229_v52  ;;  %v232_v56 = vadd.f32 %v261_v50, %v231_v54  ;;  %v290_v57 = vpop.f32.mrb[3].mxu1 }
 0x2fb   :  { %244 = vst.msk [vmem:[%s428_s10] sm:$0xf] %vm243_vm2, %v267_v55  ;;  %v268_v58 = vpack.c.bf16 %v232_v56, %v232_v56 }
 0x2fd   :  { %245 = vst.msk [vmem:[%s428_s10 + $0x4] sm:$0xf] %vm243_vm2, %v268_v58 }

// kernel: _lambda_.20
= control target key start
LH: loop header
LB: loop body
LE: loop exit
PB: predicated region body
PF: predicated region fallthrough
CT: control target
= control target key end

     0   :  { %vm63_vm0 = vcmask 261120   ;;  %vm135_vm1 = vcmask 257024   ;;  %s420_s2 = inlined_call_operand.vmem [shape: bf16[32,32], index: 2, kind: input, shape index: {}]   ;;  %s421_s4 = inlined_call_operand.vmem [shape: bf16[32,32], index: 4, kind: input, shape index: {}]   ;;  %s422_s0 = inlined_call_operand.vmem [shape: f32[32,32], index: 0, kind: input, shape index: {}]   ;;  %s423_s1 = inlined_call_operand.vmem [shape: f32[32,32], index: 1, kind: input, shape index: {}]   ;;  %s424_s3 = inlined_call_operand.vmem [shape: f32[1,32], index: 3, kind: input, shape index: {}]   ;;  %s425_s5 = inlined_call_operand.vmem [shape: f32[1,32], index: 5, kind: input, shape index: {}]   ;;  %s426_s6 = inlined_call_operand.vmem [shape: bf16[32,32], index: 6, kind: output, shape index: {0}]   ;;  %s427_s7 = inlined_call_operand.vmem [shape: bf16[32,32], index: 7, kind: output, shape index: {1}]  }
   0x1   :  { %v298_v0 = vld [vmem:[%s420_s2] sm:$0xff]   ;;  %v300_v2 = vld [vmem:[%s420_s2 + $0x8] sm:$0xff]   ;;  %v28_v10 = vld [vmem:[%s422_s0 + $0x10] sm:$0xff] }
   0x2   :  { %v299_v1 = vld [vmem:[%s421_s4] sm:$0xff]   ;;  %282 = vmatprep.subr.bf16.mxu0 %v298_v0  ;;  %v301_v3 = vld [vmem:[%s421_s4 + $0x8] sm:$0xff]   ;;  %v29_v11 = vld [vmem:[%s422_s0 + $0x18] sm:$0xff] }
   0x3   :  { %290 = vmatprep.subr.bf16.mxu1 %v299_v1  ;;  %283 = vmatpush3.bf16.msra.mxu0 %v298_v0  ;;  %v26_v4 = vld [vmem:[%s422_s0] sm:$0xff]  ;;  %v27_v5 = vld [vmem:[%s422_s0 + $0x8] sm:$0xff]  ;;  %v32_v13 = vld [vmem:[%s423_s1 + $0x10] sm:$0xff]  ;;  %v145_v17 = vpack.c.bf16 %v29_v11, %v28_v10 }
   0x4   :  { %291 = vmatpush3.bf16.msra.mxu1 %v299_v1  ;;  %284 = vmatprep.subr.bf16.mxu0 %v300_v2  ;;  %v30_v6 = vld [vmem:[%s423_s1] sm:$0xff]  ;;  %v31_v7 = vld [vmem:[%s423_s1 + $0x8] sm:$0xff]  ;;  %v144_v9 = vpack.c.bf16 %v27_v5, %v26_v4  ;;  %v33_v14 = vld [vmem:[%s423_s1 + $0x18] sm:$0xff]  ;;  %v36_v15 = vadd.f32 %v32_v13, %v28_v10 }
   0x5   :  { %292 = vmatprep.subr.bf16.mxu1 %v301_v3  ;;  %v34_v8 = vadd.f32 %v30_v6, %v26_v4  ;;  %v35_v12 = vadd.f32 %v31_v7, %v27_v5  ;;  %v37_v16 = vadd.f32 %v33_v14, %v29_v11  ;;  %v248_v20 = vld [vmem:[%s424_s3] ss:$0 sm:$0xff] }
   0x6   :  { %294 = vmatprep.mubr.msk.bf16.mxu1 %vm63_vm0, %v144_v9  ;;  %v257_v21 = vld [vmem:[%s425_s5] ss:$0 sm:$0xff] }
   0x7   :  { %285 = vmatpush3.bf16.msra.mxu0 %v300_v2  ;;  %v42_v18 = vpack.c.bf16 %v35_v12, %v34_v8  ;;  %v43_v19 = vpack.c.bf16 %v37_v16, %v36_v15 }
   0x8   :  { %293 = vmatpush3.bf16.msra.mxu1 %v301_v3 }
   0x9   :  { %286 = vmatprep.mubr.msk.bf16.mxu0 %vm63_vm0, %v42_v18 }
   0xa   :  { %287 = vmatmul.mubr.msk.bf16.vlgmr.msra.gmra.mrb[0].mxu0 %vm63_vm0, %v43_v19 }
   0xb   :  { %295 = vmatmul.mubr.msk.bf16.vlgmr.msra.gmra.mrb[0].mxu1 %vm63_vm0, %v145_v17 }
  0xdd   :  { %v288_v22 = vpop.f32.mrb[0].mxu0 }
  0xde   :  { %v296_v23 = vpop.f32.mrb[0].mxu1  ;;  %v113_v24 = vadd.f32 %v288_v22, %v248_v20  ;;  %v104_v26 = vpop.f32.mrb[1].mxu0 }
  0xdf   :  { %v214_v25 = vadd.f32 %v296_v23, %v257_v21  ;;  %v205_v27 = vpop.f32.mrb[1].mxu1  ;;  %v105_v28 = vadd.f32 %v248_v20, %v104_v26  ;;  %v289_v30 = vpop.f32.mrb[2].mxu0 }
  0xe0   :  { %v206_v29 = vadd.f32 %v257_v21, %v205_v27  ;;  %v297_v31 = vpop.f32.mrb[2].mxu1  ;;  %v268_v32 = vpack.c.bf16 %v113_v24, %v113_v24  ;;  %v116_v34 = vadd.f32 %v289_v30, %v248_v20  ;;  %v107_v36 = vpop.f32.mrb[3].mxu0 }
  0xe1   :  { %v272_v33 = vpack.c.bf16 %v214_v25, %v214_v25  ;;  %v217_v35 = vadd.f32 %v297_v31, %v257_v21  ;;  %v208_v37 = vpop.f32.mrb[3].mxu1  ;;  %v266_v38 = vpack.c.bf16 %v105_v28, %v105_v28  ;;  %v108_v40 = vadd.f32 %v248_v20, %v107_v36 }
  0xe2   :  { %v270_v39 = vpack.c.bf16 %v206_v29, %v206_v29  ;;  %v209_v41 = vadd.f32 %v257_v21, %v208_v37  ;;  %138 = vst.msk [vmem:[%s426_s6 + $0x8] sm:$0xf] %vm135_vm1, %v268_v32  ;;  %v269_v42 = vpack.c.bf16 %v116_v34, %v116_v34 }
  0xe3   :  { %238 = vst.msk [vmem:[%s427_s7 + $0x8] sm:$0xf] %vm135_vm1, %v272_v33  ;;  %v273_v43 = vpack.c.bf16 %v217_v35, %v217_v35  ;;  %136 = vst.msk [vmem:[%s426_s6] sm:$0xf] %vm135_vm1, %v266_v38  ;;  %v267_v44 = vpack.c.bf16 %v108_v40, %v108_v40 }
  0xe4   :  { %236 = vst.msk [vmem:[%s427_s7] sm:$0xf] %vm135_vm1, %v270_v39  ;;  %v271_v45 = vpack.c.bf16 %v209_v41, %v209_v41  ;;  %139 = vst.msk [vmem:[%s426_s6 + $0xc] sm:$0xf] %vm135_vm1, %v269_v42 }
  0xe5   :  { %239 = vst.msk [vmem:[%s427_s7 + $0xc] sm:$0xf] %vm135_vm1, %v273_v43  ;;  %137 = vst.msk [vmem:[%s426_s6 + $0x4] sm:$0xf] %vm135_vm1, %v267_v44 }
  0xe6   :  { %237 = vst.msk [vmem:[%s427_s7 + $0x4] sm:$0xf] %vm135_vm1, %v271_v45 }

// kernel: _lambda_.21
= control target key start
LH: loop header
LB: loop body
LE: loop exit
PB: predicated region body
PF: predicated region fallthrough
CT: control target
= control target key end

     0   :  { %s635_s12 = smov 0   ;;  %s637_s13 = smov 0   ;;  %s697_s0 = inlined_call_operand.vmem [shape: bf16[8,8,8], index: 0, kind: input, shape index: {}]   ;;  %s698_s1 = inlined_call_operand.vmem [shape: bf16[8,16,8], index: 1, kind: input, shape index: {}]   ;;  %s699_s2 = inlined_call_operand.vmem [shape: bf16[8,16,8], index: 2, kind: input, shape index: {}]   ;;  %s700_s3 = inlined_call_operand.vmem [shape: bf16[8,8,8], index: 3, kind: output, shape index: {}]  }
   0x1   :  { %s639_s14 = smov 0  }
   0x2 LB: > { %s25_s15 = sadd.s32 1, %s605_s13  ;;  %p518_p0 = scmp.ge.s32.totalorder %s609_s14, 1  ;;  %s609_s14 = sphi %s639_s14, %s13_s14   ;;  %s605_s13 = sphi %s637_s13, %s702_s13   ;;  %s601_s12 = sphi %s635_s12, %s701_s12  }
   0x3   : > { %p27_p1 = scmp.ge.s32.totalorder %s25_s15, 8  ;;  %p182_p2 = scmp.lt.s32.totalorder %s609_s14, 9 }
   0x5   : > { %s704_s15 = smov (%p27_p1, %s25_s15), 0  ;;  %p183_p3 = pnand %p518_p0, %p182_p2 }
   0x6   : > { %p222_p4 = scmp.lt.s32.totalorder (!%p183_p3), %s601_s12, 7  ;;  %vm258_vm0 = vcmask (!%p183_p3), 64512   ;;  %v611_v0 = vmov (!%p183_p3), 0.0   ;;  %vm612_vm1 = vmmov (!%p183_p3), 0   ;;  %vm255_vm2 = vcmask (!%p183_p3), 7168  }
   0x7   : > { %186 = sbr.rel (%p183_p3) target bundleno = 823 (0x337), region = 32  ;;  %537 = vmatprep.subr.bf16.mxu0 (!%p183_p3), %v611_v0  ;;  %259 = vst.msk [vmem:[#allocation4] sm:$0xff] (!%p183_p3), %vm258_vm0, %v611_v0  ;;  %539 = vmatprep.mubr.msk.bf16.mxu0 (!%p183_p3), %vm612_vm1, %v611_v0  ;;  %v613_v4 = vmov (!%p183_p3), -inf   ;;  %vm316_vm3 = vcmask (!%p183_p3), 130048   ;;  %v614_v10 = vmov (!%p183_p3), 0   ;;  %vm415_vm4 = vcmask (!%p183_p3), 60416  }
   0x8   : > { %543 = vmatprep.subr.bf16.mxu1 (!%p183_p3), %v611_v0  ;;  %545 = vmatprep.mubr.msk.bf16.mxu1 (!%p183_p3), %vm612_vm1, %v611_v0  ;;  %256 = vst.msk [vmem:[#allocation2] sm:$0xff] (!%p183_p3), %vm255_vm2, %v613_v4  ;;  %257 = vst.msk [vmem:[#allocation3] sm:$0xff] (!%p183_p3), %vm255_vm2, %v611_v0 }
   0x9   : > { %577 = vset.pattern.permute.xlu0 (!%p183_p3), %v614_v10  ;;  %578 = vset.pattern.permute.xlu1 (!%p183_p3), %v614_v10 }
   0xe   : > { %s706_s12 = smov (!%p222_p4, %s601_s12), 7  ;;  %v340_v30 = vld [vmem:[#allocation4] sm:$0xff] }
   0xf   : > { %s531_s16 = sshll.u32 %s706_s12, 3  ;;  %s519_s20 = sshll.u32 %s706_s12, 2  ;;  %v315_v11 = vld [vmem:[#allocation2] sm:$0xff]  ;;  %v332_v24 = vld [vmem:[#allocation3] sm:$0xff] }
  0x10   : > { %s234_s19 = scalar_lea.vmem %s698_s1, %s531_s16  ;;  %s225_s23 = scalar_lea.vmem %s697_s0, %s519_s20 }
  0x11   : > { %v579_v1 = vld [vmem:[%s234_s19] sm:$0xff]   ;;  %s244_s26 = scalar_lea.vmem %s699_s2, %s531_s16  ;;  %s249_s29 = scalar_lea.vmem %s700_s3, %s519_s20 }
  0x12   : > { %v273_v2 = vsel %vm258_vm0, %v579_v1, 0  ;;  %v260_v3 = vld [vmem:[%s225_s23] sm:$0xf] }
  0x13   : > { %538 = vmatpush3.bf16.xpose.msra.mxu0 %v273_v2  ;;  %v580_v15 = vld [vmem:[%s244_s26] sm:$0xff]  }
  0x14   : > { %544 = vmatpush3.bf16.msra.mxu1 %v580_v15 }
  0x1a   : > { %540 = vmatmul.mubr.msk.bf16.vlgmr.msra.gmra.mrb[0].mxu0 %vm258_vm0, %v260_v3 }
  0xed   : > { %v309_v5 = vpop.f32.mrb[0].mxu0 }
  0xee   : > { %v541_v6 = vpop.f32.mrb[1].mxu0  ;;  %v317_v7 = vsel %vm316_vm3, %v309_v5, -inf }
  0xef   : > { %318 = vmax.xlane.f32.xlu0 %v317_v7  ;;  %v312_v8 = vpop.f32.mrb[2].mxu0 }
  0xf0   : > { %v542_v9 = vpop.f32.mrb[3].mxu0 }
 0x17c   : > { %v319_v12 = vpop.xlane.xlu0 %318 }
 0x17d   : > { %v320_v13 = vmax.f32 %v315_v11, %v319_v12 }
 0x17f   : > { %v321_v14 = vsub.f32 %v315_v11, %v320_v13  ;;  %401 = vst.msk [vmem:[#allocation2] sm:$0xff] %vm255_vm2, %v320_v13  ;;  %326 = vperm.xlu0 %577, %v320_v13  }
 0x181   : > { %v322_v22 = vmul.f32 1.442695, %v321_v14 }
 0x1fe   : > { %v327_v16 = vpop.permute.xlu0 %326 }
 0x1ff   : > { %v329_v17 = vsub.f32 %v309_v5, %v327_v16 }
 0x201   : > { %v330_v18 = vmul.f32 1.442695, %v329_v17 }
 0x203   : > { %581 = vpow2.f32 %v330_v18 }
 0x204   : > { %583 = vpow2.f32 %v322_v22 }
 0x20d   : > { %v582_v19 = vpop.eup %581 }
 0x20e   : > { %v334_v20 = vsel %vm316_vm3, %v582_v19, 0.0  ;;  %v347_v21 = vpack.c.bf16 %v582_v19, %v582_v19  ;;  %v584_v23 = vpop.eup %583 }
 0x20f   : > { %335 = vadd.xlane.f32.xlu1 %v334_v20  ;;  %v333_v25 = vmul.f32 %v584_v23, %v332_v24 }
 0x210   : > { %546 = vmatmul.mubr.msk.bf16.vlgmr.msra.gmra.mrb[0].mxu1 %vm316_vm3, %v347_v21 }
 0x220   : > { %343 = vperm.xlu1 %578, %v584_v23  }
 0x29c   : > { %v336_v26 = vpop.xlane.xlu1 %335 }
 0x29d   : > { %v337_v27 = vadd.f32 %v336_v26, %v333_v25 }
 0x29f   : > { %339 = vst.msk [vmem:[#allocation3] sm:$0xff] %vm255_vm2, %v337_v27 }
 0x2a0   : > { %v344_v31 = vpop.permute.xlu1 %343 }
 0x2a1   : > { %v346_v32 = vmul.f32 %v344_v31, %v340_v30 }
 0x2a6   : > { %v406_v28 = vld [vmem:[#allocation3] sm:$0xff] }
 0x2a7   : > { %585 = vrcp.f32 %v406_v28 }
 0x2b1   : > { %v586_v29 = vpop.eup %585 }
 0x2b2   : > { %410 = vperm.xlu1 %578, %v586_v29  }
 0x2e3   : > { %v393_v33 = vpop.f32.mrb[0].mxu1 }
 0x2e4   : > { %v399_v34 = vadd.f32 %v393_v33, %v346_v32  ;;  %v547_v35 = vpop.f32.mrb[1].mxu1 }
 0x2e5   : > { %v396_v36 = vpop.f32.mrb[2].mxu1 }
 0x2e6   : > { %400 = vst.msk [vmem:[#allocation4] sm:$0xff] %vm258_vm0, %v399_v34  ;;  %v548_v37 = vpop.f32.mrb[3].mxu1 }
 0x2ed   : > { %v405_v38 = vld [vmem:[#allocation4] sm:$0xff] }
 0x331   : > { %v411_v39 = vpop.permute.xlu1 %410 }
 0x332   : > { %v413_v40 = vmul.f32 %v411_v39, %v405_v38 }
 0x334   : > { %v414_v41 = vpack.c.bf16 %v413_v40, %v413_v40 }
 0x336   : > { %416 = vst.msk [vmem:[%s249_s29] sm:$0xf] %vm415_vm4, %v414_v41 }
 0x337 PF: > { %s13_s14 = sadd.s32 1, %s609_s14   ;;  %s701_s12 = smov %s605_s13 }
 0x338   : > { %p10_p5 = scmp.ge.s32.totalorder %s13_s14, 10   ;;  %s702_s13 = smov %s704_s15 }
 0x33a   :  { %12 = sbr.rel (!%p10_p5) target bundleno = 2 (0x2), region = 76 }

// kernel: _lambda_.22
= control target key start
LH: loop header
LB: loop body
LE: loop exit
PB: predicated region body
PF: predicated region fallthrough
CT: control target
= control target key end

     0   :  { %v454_v0 = vmov 0.0   ;;  %vm455_vm0 = vmmov 0   ;;  %vm67_vm1 = vcmask 261120   ;;  %vm271_vm2 = vcmask 523264   ;;  %s604_s2 = inlined_call_operand.vmem [shape: bf16[32,32], index: 2, kind: input, shape index: {}]   ;;  %s605_s0 = inlined_call_operand.vmem [shape: bf16[16,32], index: 0, kind: input, shape index: {}]   ;;  %s606_s1 = inlined_call_operand.vmem [shape: f32[16,32], index: 1, kind: input, shape index: {}]   ;;  %s607_s3 = inlined_call_operand.vmem [shape: f32[1,32], index: 3, kind: input, shape index: {}]   ;;  %s608_s6 = inlined_call_operand.vmem [shape: bf16[32,64], index: 6, kind: input, shape index: {}]   ;;  %s609_s8 = inlined_call_operand.vmem [shape: bf16[64,32], index: 8, kind: input, shape index: {}]   ;;  %s610_s4 = inlined_call_operand.vmem [shape: f32[1,32], index: 4, kind: input, shape index: {}]   ;;  %s611_s5 = inlined_call_operand.vmem [shape: f32[1,32], index: 5, kind: input, shape index: {}]   ;;  %s612_s7 = inlined_call_operand.vmem [shape: f32[1,64], index: 7, kind: input, shape index: {}]   ;;  %s613_s9 = inlined_call_operand.vmem [shape: f32[1,32], index: 9, kind: input, shape index: {}]   ;;  %s614_s10 = inlined_call_operand.vmem [shape: f32[1,32], index: 10, kind: input, shape index: {}]   ;;  %s615_s11 = inlined_call_operand.vmem [shape: f32[1,32], index: 11, kind: input, shape index: {}]   ;;  %s616_s12 = inlined_call_operand.vmem [shape: f32[16,32], index: 12, kind: output, shape index: {}]  }
   0x1   :  { %407 = vmatprep.subr.bf16.mxu1 %v454_v0  ;;  %v437_v1 = vld [vmem:[%s604_s2] sm:$0xff]   ;;  %411 = vmatprep.mubr.msk.bf16.mxu1 %vm455_vm0, %v454_v0  ;;  %v438_v2 = vld [vmem:[%s604_s2 + $0x8] sm:$0xff]   ;;  %v444_v48 = vld [vmem:[%s609_s8 + $0x10] sm:$0xff]  }
   0x2   :  { %423 = vmatprep.subr.bf16.mxu0 %v454_v0  ;;  %431 = vmatprep.mubr.msk.bf16.mxu0 %vm455_vm0, %v454_v0  ;;  %v439_v3 = vld [vmem:[%s605_s0] sm:$0xff]   ;;  %v43_v6 = vld [vmem:[%s606_s1 + $0x8] sm:$0xff]  ;;  %v445_v49 = vld [vmem:[%s609_s8 + $0x18] sm:$0xff]  }
   0x3   :  { %408 = vmatpush3.bf16.msra.mxu1 %v437_v1  ;;  %v42_v4 = vld [vmem:[%s606_s1] sm:$0xff]  ;;  %v441_v28 = vld [vmem:[%s608_s6 + $0x8] sm:$0xff]  }
   0x4   :  { %409 = vmatprep.subr.bf16.mxu1 %v454_v0  ;;  %v381_v7 = vld [vmem:[%s607_s3] ss:$0 sm:$0xff]  ;;  %v443_v30 = vld [vmem:[%s609_s8 + $0x8] sm:$0xff]  }
   0x5   :  { %v440_v27 = vld [vmem:[%s608_s6] sm:$0xff]  }
   0x6   :  { %v442_v29 = vld [vmem:[%s609_s8] sm:$0xff]  }
   0x7   :  { %410 = vmatpush3.bf16.msra.mxu1 %v438_v2  ;;  %424 = vmatpush3.bf16.msra.mxu0 %v442_v29  ;;  %v382_v39 = vld [vmem:[%s610_s4] ss:$0 sm:$0xff] }
   0x8   :  { %415 = vmatprep.subr.bf16.mxu1 %v454_v0  ;;  %425 = vmatprep.subr.bf16.mxu0 %v454_v0  ;;  %v383_v43 = vld [vmem:[%s611_s5] ss:$0 sm:$0xff] }
   0x9   :  { %v384_v50 = vld [vmem:[%s612_s7] ss:$0 sm:$0xff] }
   0xa   :  { %412 = vmatmul.mubr.msk.bf16.vlgmr.msra.gmra.mrb[0].mxu1 %vm67_vm1, %v439_v3  ;;  %v393_v61 = vld [vmem:[%s613_s9] ss:$0 sm:$0xff] }
   0xb   :  { %419 = vmatprep.mubr.msk.bf16.mxu1 %vm455_vm0, %v454_v0  ;;  %416 = vmatpush3.bf16.msra.mxu1 %v440_v27  ;;  %v395_v27 = vld [vmem:[%s615_s11] ss:$0 sm:$0xff] }
   0xc   :  { %417 = vmatprep.subr.bf16.mxu1 %v454_v0  ;;  %426 = vmatpush3.bf16.msra.mxu0 %v443_v30 }
   0xd   :  { %427 = vmatprep.subr.bf16.mxu0 %v454_v0 }
   0xf   :  { %418 = vmatpush3.bf16.msra.mxu1 %v441_v28 }
  0x10   :  { %428 = vmatpush3.bf16.msra.mxu0 %v444_v48 }
  0x11   :  { %429 = vmatprep.subr.bf16.mxu0 %v454_v0 }
  0x14   :  { %430 = vmatpush3.bf16.msra.mxu0 %v445_v49 }
  0xdd   :  { %v105_v5 = vpop.f32.mrb[0].mxu1 }
  0xde   :  { %v112_v8 = vadd.f32 %v105_v5, %v42_v4  ;;  %v413_v9 = vpop.f32.mrb[1].mxu1 }
  0xdf   :  { %v108_v10 = vpop.f32.mrb[2].mxu1 }
  0xe0   :  { %v113_v11 = vadd.f32 %v108_v10, %v43_v6  ;;  %v414_v12 = vpop.f32.mrb[3].mxu1  ;;  %v121_v13 = vadd.f32 %v381_v7, %v112_v8 }
  0xe2   :  { %v125_v14 = vsel %vm67_vm1, %v121_v13, 0.0  ;;  %v122_v15 = vadd.f32 %v381_v7, %v113_v11 }
  0xe3   :  { %126 = vadd.xlane.f32.xlu0 %v125_v14 }
  0xe4   :  { %v128_v16 = vsel %vm67_vm1, %v122_v15, 0.0 }
  0xe7   :  { %129 = vadd.xlane.f32.xlu0 %v128_v16 }
 0x170   :  { %v127_v17 = vpop.xlane.xlu0 %126 }
 0x171   :  { %v132_v18 = vmul.f32 0.03125, %v127_v17 }
 0x173   :  { %v134_v19 = vsub.f32 %v121_v13, %v132_v18 }
 0x174   :  { %v130_v20 = vpop.xlane.xlu0 %129 }
 0x175   :  { %v133_v21 = vmul.f32 0.03125, %v130_v20  ;;  %v136_v22 = vmul.f32 %v134_v19, %v134_v19 }
 0x177   :  { %v135_v23 = vsub.f32 %v122_v15, %v133_v21  ;;  %v138_v24 = vsel %vm67_vm1, %v136_v22, 0.0 }
 0x178   :  { %139 = vadd.xlane.f32.xlu1 %v138_v24  ;;  %v394_v24 = vld [vmem:[%s614_s10] ss:$0 sm:$0xff] }
 0x179   :  { %v137_v25 = vmul.f32 %v135_v23, %v135_v23 }
 0x17b   :  { %v141_v26 = vsel %vm67_vm1, %v137_v25, 0.0 }
 0x17c   :  { %142 = vadd.xlane.f32.xlu1 %v141_v26 }
 0x205   :  { %v140_v31 = vpop.xlane.xlu1 %139 }
 0x206   :  { %v144_v32 = vmul.f32 0.03125, %v140_v31 }
 0x208   :  { %v146_v33 = vadd.f32 1e-05, %v144_v32 }
 0x209   :  { %v143_v34 = vpop.xlane.xlu1 %142 }
 0x20a   :  { %446 = vrsqrt.f32 %v146_v33  ;;  %v145_v35 = vmul.f32 0.03125, %v143_v34 }
 0x20c   :  { %v147_v36 = vadd.f32 1e-05, %v145_v35 }
 0x20e   :  { %448 = vrsqrt.f32 %v147_v36 }
 0x214   :  { %v447_v37 = vpop.eup %446 }
 0x215   :  { %v150_v38 = vmul.f32 %v447_v37, %v134_v19 }
 0x217   :  { %v158_v41 = vmul.f32 %v382_v39, %v150_v38 }
 0x218   :  { %v449_v40 = vpop.eup %448 }
 0x219   :  { %v151_v42 = vmul.f32 %v449_v40, %v135_v23  ;;  %v166_v45 = vadd.f32 %v383_v43, %v158_v41 }
 0x21b   :  { %v159_v44 = vmul.f32 %v382_v39, %v151_v42 }
 0x21d   :  { %v167_v46 = vadd.f32 %v383_v43, %v159_v44 }
 0x21f   :  { %v172_v47 = vpack.c.bf16 %v167_v46, %v166_v45 }
 0x221   :  { %420 = vmatmul.mubr.msk.bf16.vlgmr.msra.gmra.mrb[4].mxu1 %vm67_vm1, %v172_v47 }
 0x2f4   :  { %v229_v51 = vpop.f32.mrb[4].mxu1 }
 0x2f5   :  { %v230_v52 = vadd.f32 %v384_v50, %v229_v51  ;;  %v421_v53 = vpop.f32.mrb[5].mxu1 }
 0x2f6   :  { %v232_v54 = vpop.f32.mrb[6].mxu1 }
 0x2f7   :  { %v233_v55 = vadd.f32 %v384_v50, %v232_v54  ;;  %v422_v56 = vpop.f32.mrb[7].mxu1  ;;  %v236_v57 = vmax.f32 %v230_v52, 0.0 }
 0x2f9   :  { %v237_v58 = vmax.f32 %v233_v55, 0.0 }
 0x2fb   :  { %v246_v59 = vpack.c.bf16 %v237_v58, %v236_v57 }
 0x2fd   :  { %432 = vmatmul.mubr.msk.bf16.vlgmr.msra.gmra.mrb[0].mxu0 %vm271_vm2, %v246_v59 }
 0x3d0   :  { %v309_v60 = vpop.f32.mrb[0].mxu0 }
 0x3d1   :  { %v316_v62 = vadd.f32 %v309_v60, %v166_v45  ;;  %v433_v63 = vpop.f32.mrb[1].mxu0 }
 0x3d2   :  { %v312_v0 = vpop.f32.mrb[2].mxu0 }
 0x3d3   :  { %v317_v1 = vadd.f32 %v312_v0, %v167_v46  ;;  %v434_v2 = vpop.f32.mrb[3].mxu0  ;;  %v325_v3 = vadd.f32 %v393_v61, %v316_v62 }
 0x3d5   :  { %v329_v4 = vsel %vm67_vm1, %v325_v3, 0.0  ;;  %v326_v5 = vadd.f32 %v393_v61, %v317_v1 }
 0x3d6   :  { %330 = vadd.xlane.f32.xlu0 %v329_v4 }
 0x3d7   :  { %v332_v6 = vsel %vm67_vm1, %v326_v5, 0.0 }
 0x3d8   :  { %333 = vadd.xlane.f32.xlu1 %v332_v6 }
 0x463   :  { %v331_v7 = vpop.xlane.xlu0 %330 }
 0x464   :  { %v335_v8 = vmul.f32 0.03125, %v331_v7 }
 0x465   :  { %v334_v9 = vpop.xlane.xlu1 %333 }
 0x466   :  { %v337_v10 = vsub.f32 %v325_v3, %v335_v8  ;;  %v336_v11 = vmul.f32 0.03125, %v334_v9 }
 0x468   :  { %v338_v12 = vsub.f32 %v326_v5, %v336_v11  ;;  %v339_v13 = vmul.f32 %v337_v10, %v337_v10 }
 0x46a   :  { %v341_v14 = vsel %vm67_vm1, %v339_v13, 0.0  ;;  %v340_v15 = vmul.f32 %v338_v12, %v338_v12 }
 0x46b   :  { %342 = vadd.xlane.f32.xlu0 %v341_v14 }
 0x46c   :  { %v344_v16 = vsel %vm67_vm1, %v340_v15, 0.0 }
 0x46d   :  { %345 = vadd.xlane.f32.xlu1 %v344_v16 }
 0x4f8   :  { %v343_v17 = vpop.xlane.xlu0 %342 }
 0x4f9   :  { %v347_v18 = vmul.f32 0.03125, %v343_v17 }
 0x4fa   :  { %v346_v19 = vpop.xlane.xlu1 %345 }
 0x4fb   :  { %v349_v20 = vadd.f32 1e-05, %v347_v18  ;;  %v348_v21 = vmul.f32 0.03125, %v346_v19 }
 0x4fd   :  { %450 = vrsqrt.f32 %v349_v20  ;;  %v350_v22 = vadd.f32 1e-05, %v348_v21 }
 0x4ff   :  { %452 = vrsqrt.f32 %v350_v22 }
 0x507   :  { %v451_v23 = vpop.eup %450 }
 0x508   :  { %v353_v25 = vmul.f32 %v451_v23, %v337_v10 }
 0x509   :  { %v453_v26 = vpop.eup %452 }
 0x50a   :  { %v361_v28 = vmul.f32 %v394_v24, %v353_v25  ;;  %v354_v29 = vmul.f32 %v453_v26, %v338_v12 }
 0x50c   :  { %v369_v30 = vadd.f32 %v395_v27, %v361_v28  ;;  %v362_v31 = vmul.f32 %v394_v24, %v354_v29 }
 0x50e   :  { %371 = vst.msk [vmem:[%s616_s12] sm:$0xff] %vm67_vm1, %v369_v30  ;;  %v370_v32 = vadd.f32 %v395_v27, %v362_v31 }
 0x510   :  { %372 = vst.msk [vmem:[%s616_s12 + $0x8] sm:$0xff] %vm67_vm1, %v370_v32 }

// kernel: _lambda_.23
= control target key start
LH: loop header
LB: loop body
LE: loop exit
PB: predicated region body
PF: predicated region fallthrough
CT: control target
= control target key end

     0   :  { %v1173_v0 = vmov 0.0   ;;  %vm1174_vm0 = vmmov 0   ;;  %vm89_vm1 = vcmask 261120   ;;  %v1175_v26 = vmov 0   ;;  %s1176_s27 = smov 5   ;;  %s1920_s3 = inlined_call_operand.vmem [shape: bf16[32,32], index: 3, kind: input, shape index: {}]   ;;  %s1921_s0 = inlined_call_operand.vmem [shape: f32[16,32], index: 0, kind: input, shape index: {}]   ;;  %s1922_s1 = inlined_call_operand.vmem [shape: f32[16,32], index: 1, kind: input, shape index: {}]   ;;  %s1923_s5 = inlined_call_operand.vmem [shape: bf16[32,32], index: 5, kind: input, shape index: {}]   ;;  %s1924_s4 = inlined_call_operand.vmem [shape: f32[1,32], index: 4, kind: input, shape index: {}]   ;;  %s1925_s7 = inlined_call_operand.vmem [shape: bf16[32,132], index: 7, kind: input, shape index: {}]   ;;  %s1926_s6 = inlined_call_operand.vmem [shape: f32[1,32], index: 6, kind: input, shape index: {}]   ;;  %s1927_s8 = inlined_call_operand.vmem [shape: f32[1,132], index: 8, kind: input, shape index: {}]   ;;  %s1928_s2 = inlined_call_operand.vmem [shape: f32[16,132], index: 2, kind: input, shape index: {}, may-alias: {2,16}]   ;;  %s1929_s16 = inlined_call_operand.vmem [shape: f32[16,132], index: 16, kind: output, shape index: {0}, may-alias: {2,16}]   ;;  %s1930_s12 = inlined_call_operand.vmem [shape: bf16[20,64], index: 12, kind: input, shape index: {}]   ;;  %s1931_s15 = inlined_call_operand.<no memory space> [shape: f32[1,1], index: 15, kind: input, shape index: {}]   ;;  %s1932_s13 = inlined_call_operand.vmem [shape: f32[1,64], index: 13, kind: input, shape index: {}]   ;;  %s1933_s11 = inlined_call_operand.vmem [shape: f32[1,132], index: 11, kind: input, shape index: {}]   ;;  %s1934_s14 = inlined_call_operand.vmem [shape: f32[1,64], index: 14, kind: input, shape index: {}]   ;;  %s1935_s9 = inlined_call_operand.vmem [shape: f32[2,32], index: 9, kind: input, shape index: {}]   ;;  %s1936_s17 = inlined_call_operand.vmem [shape: f32[16,4], index: 17, kind: output, shape index: {1}]   ;;  %s1937_s10 = inlined_call_operand.vmem [shape: f32[1,2], index: 10, kind: input, shape index: {}]   ;;  %s1938_s18 = inlined_call_operand.vmem [shape: f32[16,2], index: 18, kind: output, shape index: {2}]  }
   0x1   :  { %1942 = sst [smem:[#allocation3_spill]] %s1920_s3  ;;  %1064 = vmatprep.subr.bf16.mxu0 %v1173_v0  ;;  %1068 = vmatprep.mubr.msk.bf16.mxu0 %vm1174_vm0, %v1173_v0  ;;  %v1113_v10 = vld [vmem:[%s1923_s5] sm:$0xff]   ;;  %v1114_v11 = vld [vmem:[%s1923_s5 + $0x8] sm:$0xff]   ;;  %v1120_v24 = vld [vmem:[%s1925_s7 + $0x14] ss:$8 sps:$4 sm:$0xff]   ;;  %v213_v37 = vlaneseq  ;;  %vm298_vm8 = vcmask 31744  }
   0x2   :  { %1943 = sst [smem:[#allocation4_spill]] %s1921_s0  ;;  %s1945_s29 = sld [smem:[#allocation3_spill]]  ;;  %1072 = vmatprep.subr.bf16.mxu1 %v1173_v0  ;;  %1076 = vmatprep.mubr.msk.bf16.mxu1 %vm1174_vm0, %v1173_v0  ;;  %v1033_v12 = vld [vmem:[%s1924_s4] ss:$0 sm:$0xff]  ;;  %v1117_v22 = vld [vmem:[%s1925_s7 + $0x4] ss:$8 sps:$4 sm:$0xff]  }
   0x3   :  { %1944 = sst [smem:[#allocation5_spill]] %s1922_s1  ;;  %s1946_s20 = sld [smem:[#allocation4_spill]]  ;;  %1073 = vmatpush3.bf16.msra.mxu1 %v1113_v10  ;;  %v1115_v23 = vld [vmem:[%s1925_s7] ss:$8 sps:$4 sm:$0xff]   ;;  %v1118_v25 = vld [vmem:[%s1925_s7 + $0x10] ss:$8 sps:$4 sm:$0xff]   ;;  %1109 = vset.pattern.permute.xlu1 %v1175_v26 }
   0x4   :  { %s1947_s24 = sld [smem:[#allocation5_spill]]  ;;  %1074 = vmatprep.subr.bf16.mxu1 %v1173_v0  ;;  %1110 = vset.pattern.permute.xlu0 %v1175_v26  ;;  %v1037_v27 = vld [vmem:[%s1926_s6] ss:$0 sm:$0xff]  ;;  %v1330_v38 = vshrl.u32 %v213_v37, 7  ;;  %v304_v41 = vand.u32 127, %v213_v37  ;;  %v290_v50 = vld [vmem:[%s1928_s2 + $0x8] sm:$0xff] }
   0x5   :  { %v211_v40 = vld [vmem:[%s1927_s8] sm:$0x3]  ;;  %v291_v54 = vld [vmem:[%s1928_s2 + $0x10] sm:$0xff]  ;;  %v292_v59 = vld [vmem:[%s1928_s2 + $0x18] sm:$0xff]  ;;  %s1178_s6 = smov 15  }
   0x6   :  { %v215_v39 = vsub.s32 0, %v1330_v38  ;;  %v219_v42 = vsub.s32 1, %v1330_v38  ;;  %vm577_vm2 = vcmp.ge.s32.totalorder %v304_v41, 66  ;;  %vm579_vm3 = vcmp.lt.s32.totalorder %v304_v41, 99  ;;  %v289_v47 = vld [vmem:[%s1928_s2] sm:$0xff] }
   0x7   :  { %1075 = vmatpush3.bf16.msra.mxu1 %v1114_v11  ;;  %vm449_vm4 = vcmp.ge.s32.totalorder %v304_v41, 33  ;;  %vm451_vm5 = vcmp.lt.s32.totalorder %v304_v41, 66  ;;  %v305_v45 = vadd.s32 128, %v304_v41  ;;  %vm1347_vm6 = vmand %vm577_vm2, %vm579_vm3  ;;  %vm705_vm10 = vcmp.ge.s32.totalorder %v304_v41, 99 }
   0x8   :  { %v1111_v1 = vld [vmem:[%s1945_s29] sm:$0xff]   ;;  %v1112_v2 = vld [vmem:[%s1945_s29 + $0x8] sm:$0xff]   ;;  %1080 = vmatprep.subr.bf16.mxu1 %v1173_v0  ;;  %v216_v43 = vrot.slane %v211_v40, %v215_v39  ;;  %v220_v44 = vrot.slane %v211_v40, %v219_v42  ;;  %vm1354_vm7 = vmand %vm449_vm4, %vm451_vm5  ;;  %vm308_vm11 = vcmp.lt.s32.totalorder %v304_v41, 33 }
   0x9   :  { %1065 = vmatpush3.bf16.msra.mxu0 %v1111_v1  ;;  %v59_v3 = vld [vmem:[%s1946_s20] sm:$0xff]  ;;  %v60_v4 = vld [vmem:[%s1946_s20 + $0x8] sm:$0xff]  ;;  %vm708_vm9 = vcmp.lt.s32.totalorder %v305_v45, 132 }
   0xa   :  { %v61_v5 = vld [vmem:[%s1947_s24] sm:$0xff]  ;;  %1066 = vmatprep.subr.bf16.mxu0 %v1173_v0  ;;  %v62_v6 = vld [vmem:[%s1947_s24 + $0x8] sm:$0xff] }
   0xb   :  { %v63_v7 = vadd.f32 %v61_v5, %v59_v3  ;;  %v64_v8 = vadd.f32 %v62_v6, %v60_v4 }
   0xd   :  { %1067 = vmatpush3.bf16.msra.mxu0 %v1112_v2  ;;  %v69_v9 = vpack.c.bf16 %v64_v8, %v63_v7 }
   0xe   :  { %246 = vmatprep.subr.bf16.mxu0 %v1117_v22 }
  0x10   :  { %1069 = vmatmul.mubr.msk.bf16.vlgmr.msra.gmra.mrb[0].mxu0 %vm89_vm1, %v69_v9 }
  0x11   :  { %247 = vmatpush1.bf16.msra.mxu0 %v1115_v23  ;;  %278 = vmatprep.mubr.bf16.mxu0 %v1175_v26 }
  0x12   :  { %248 = vmatprep.subr.bf16.mxu0 %v1120_v24 }
  0x15   :  { %249 = vmatpush1.bf16.msra.mxu0 %v1118_v25 }
  0xe3   :  { %v127_v13 = vpop.f32.mrb[0].mxu0 }
  0xe4   :  { %v128_v14 = vadd.f32 %v1033_v12, %v127_v13  ;;  %v1070_v15 = vpop.f32.mrb[1].mxu0 }
  0xe5   :  { %v130_v16 = vpop.f32.mrb[2].mxu0 }
  0xe6   :  { %v131_v17 = vadd.f32 %v1033_v12, %v130_v16  ;;  %v1071_v18 = vpop.f32.mrb[3].mxu0  ;;  %v134_v19 = vmax.f32 %v128_v14, 0.0 }
  0xe8   :  { %v135_v20 = vmax.f32 %v131_v17, 0.0 }
  0xea   :  { %v140_v21 = vpack.c.bf16 %v135_v20, %v134_v19 }
  0xec   :  { %1077 = vmatmul.mubr.msk.bf16.vlgmr.msra.gmra.mrb[0].mxu1 %vm89_vm1, %v140_v21 }
  0xed   :  { %1084 = vmatprep.mubr.msk.bf16.mxu1 %vm1174_vm0, %v1173_v0 }
 0x1bf   :  { %v197_v28 = vpop.f32.mrb[0].mxu1 }
 0x1c0   :  { %v198_v29 = vadd.f32 %v1037_v27, %v197_v28  ;;  %v1078_v30 = vpop.f32.mrb[1].mxu1 }
 0x1c1   :  { %v200_v31 = vpop.f32.mrb[2].mxu1 }
 0x1c2   :  { %v201_v32 = vadd.f32 %v1037_v27, %v200_v31  ;;  %v1079_v33 = vpop.f32.mrb[3].mxu1  ;;  %v204_v34 = vmax.f32 %v198_v29, 0.0 }
 0x1c4   :  { %v205_v35 = vmax.f32 %v201_v32, 0.0 }
 0x1c6   :  { %v210_v36 = vpack.c.bf16 %v205_v35, %v204_v34 }
 0x1c8   :  { %1045 = vmatmul.mubr.msk.bf16.vlgmr.msra.gmra.mrb[4].mxu0 %vm89_vm1, %v210_v36 }
 0x29b   :  { %v280_v46 = vpop.f32.mrb[4].mxu0 }
 0x29c   :  { %v281_v48 = vadd.f32 %v280_v46, %v216_v43  ;;  %v282_v49 = vpop.f32.mrb[5].mxu0 }
 0x29d   :  { %v283_v52 = vadd.f32 %v282_v49, %v220_v44  ;;  %v284_v53 = vpop.f32.mrb[6].mxu0 }
 0x29e   :  { %v293_v56 = vadd.f32 %v289_v47, %v281_v48  ;;  %v285_v57 = vadd.f32 %v284_v53, %v216_v43  ;;  %v286_v58 = vpop.f32.mrb[7].mxu0 }
 0x29f   :  { %v294_v60 = vadd.f32 %v290_v50, %v283_v52  ;;  %v287_v61 = vadd.f32 %v286_v58, %v220_v44 }
 0x2a0   :  { %297 = vst [vmem:[%s1929_s16] sm:$0xff] %v293_v56  ;;  %v295_v62 = vadd.f32 %v291_v54, %v285_v57  ;;  %v583_v63 = vsel %vm1347_vm6, %v293_v56, -inf  ;;  %v455_v1 = vsel %vm1354_vm7, %v293_v56, -inf  ;;  %v711_v10 = vsel %vm705_vm10, %v293_v56, -inf }
 0x2a1   :  { %299 = vst.msk [vmem:[%s1929_s16 + $0x8] sm:$0xff] %vm298_vm8, %v294_v60  ;;  %v296_v2 = vadd.f32 %v292_v59, %v287_v61  ;;  %589 = vmax.xlane.f32.xlu1 %v583_v63  ;;  %461 = vmax.xlane.f32.xlu0 %v455_v1  ;;  %v712_v3 = vsel %vm708_vm9, %v294_v60, -inf  ;;  %v312_v14 = vsel %vm308_vm11, %v293_v56, -inf }
 0x2a2   :  { %300 = vst [vmem:[%s1929_s16 + $0x10] sm:$0xff] %v295_v62  ;;  %v585_v5 = vsel %vm1347_vm6, %v295_v62, -inf  ;;  %v457_v6 = vsel %vm1354_vm7, %v295_v62, -inf  ;;  %v715_v8 = vsel %vm298_vm8, %v712_v3, -inf  ;;  %v713_v9 = vsel %vm705_vm10, %v295_v62, -inf }
 0x2a3   :  { %301 = vst.msk [vmem:[%s1929_s16 + $0x18] sm:$0xff] %vm298_vm8, %v296_v2  ;;  %v714_v4 = vsel %vm708_vm9, %v296_v2, -inf  ;;  %v716_v12 = vmax.f32 %v711_v10, %v715_v8  ;;  %v314_v13 = vsel %vm308_vm11, %v295_v62, -inf }
 0x2a4   :  { %v719_v7 = vsel %vm298_vm8, %v714_v4, -inf }
 0x2a5   :  { %593 = vmax.xlane.f32.xlu1 %v585_v5  ;;  %465 = vmax.xlane.f32.xlu0 %v457_v6  ;;  %v720_v11 = vmax.f32 %v713_v9, %v719_v7 }
 0x2a9   :  { %721 = vmax.xlane.f32.xlu1 %v720_v11  ;;  %717 = vmax.xlane.f32.xlu0 %v716_v12 }
 0x2ad   :  { %322 = vmax.xlane.f32.xlu1 %v314_v13  ;;  %318 = vmax.xlane.f32.xlu0 %v312_v14 }
 0x32e   :  { %v590_v15 = vpop.xlane.xlu1 %589  ;;  %v462_v16 = vpop.xlane.xlu0 %461 }
 0x32f   :  { %v595_v17 = vsub.f32 %v583_v63, %v590_v15  ;;  %v596_v18 = vsub.f32 -inf, %v590_v15  ;;  %v467_v19 = vsub.f32 %v455_v1, %v462_v16  ;;  %v468_v20 = vsub.f32 -inf, %v462_v16 }
 0x331   :  { %v599_v21 = vmul.f32 1.442695, %v595_v17  ;;  %v601_v22 = vmul.f32 1.442695, %v596_v18  ;;  %v471_v23 = vmul.f32 1.442695, %v467_v19 }
 0x332   :  { %v473_v24 = vmul.f32 1.442695, %v468_v20  ;;  %v594_v25 = vpop.xlane.xlu1 %593  ;;  %v466_v26 = vpop.xlane.xlu0 %465 }
 0x333   :  { %1123 = vpow2.f32 %v599_v21  ;;  %v597_v27 = vsub.f32 %v585_v5, %v594_v25  ;;  %v598_v28 = vsub.f32 -inf, %v594_v25  ;;  %v469_v29 = vsub.f32 %v457_v6, %v466_v26 }
 0x334   :  { %1125 = vpow2.f32 %v601_v22  ;;  %v470_v30 = vsub.f32 -inf, %v466_v26 }
 0x335   :  { %1127 = vpow2.f32 %v471_v23  ;;  %v605_v31 = vmul.f32 1.442695, %v598_v28  ;;  %v475_v32 = vmul.f32 1.442695, %v469_v29  ;;  %v603_v36 = vmul.f32 1.442695, %v597_v27 }
 0x336   :  { %1129 = vpow2.f32 %v473_v24  ;;  %v477_v33 = vmul.f32 1.442695, %v470_v30  ;;  %v722_v34 = vpop.xlane.xlu1 %721  ;;  %v718_v35 = vpop.xlane.xlu0 %717 }
 0x337   :  { %v725_v37 = vsub.f32 %v713_v9, %v722_v34  ;;  %v726_v40 = vsub.f32 %v714_v4, %v722_v34  ;;  %v723_v41 = vsub.f32 %v711_v10, %v718_v35  ;;  %1131 = vpow2.f32 %v605_v31 }
 0x338   :  { %v724_v43 = vsub.f32 %v712_v3, %v718_v35  ;;  %1133 = vpow2.f32 %v475_v32 }
 0x339   :  { %v733_v44 = vmul.f32 1.442695, %v726_v40  ;;  %v727_v45 = vmul.f32 1.442695, %v723_v41  ;;  %1135 = vpow2.f32 %v477_v33  ;;  %v731_v49 = vmul.f32 1.442695, %v725_v37 }
 0x33a   :  { %v729_v46 = vmul.f32 1.442695, %v724_v43  ;;  %v323_v47 = vpop.xlane.xlu1 %322  ;;  %v319_v48 = vpop.xlane.xlu0 %318  ;;  %1137 = vpow2.f32 %v603_v36 }
 0x33b   :  { %v327_v50 = vsub.f32 -inf, %v323_v47  ;;  %v324_v51 = vsub.f32 %v312_v14, %v319_v48  ;;  %1139 = vpow2.f32 %v733_v44  ;;  %v325_v52 = vsub.f32 -inf, %v319_v48 }
 0x33c   :  { %1141 = vpow2.f32 %v727_v45  ;;  %v326_v54 = vsub.f32 %v314_v13, %v323_v47 }
 0x33d   :  { %v1385_v53 = vpop.eup %1123  ;;  %v334_v55 = vmul.f32 1.442695, %v327_v50  ;;  %v328_v56 = vmul.f32 1.442695, %v324_v51  ;;  %1143 = vpow2.f32 %v729_v46  ;;  %v330_v58 = vmul.f32 1.442695, %v325_v52 }
 0x33e   :  { %v1387_v57 = vpop.eup %1125  ;;  %1145 = vpow2.f32 %v731_v49  ;;  %v332_v61 = vmul.f32 1.442695, %v326_v54 }
 0x33f   :  { %v1128_v59 = vpop.eup %1127  ;;  %1147 = vpow2.f32 %v334_v55  ;;  %v607_v3 = vsel %vm298_vm8, %v1387_v57, 0.0 }
 0x340   :  { %v1130_v60 = vpop.eup %1129  ;;  %1149 = vpow2.f32 %v328_v56  ;;  %v608_v9 = vadd.f32 %v1385_v53, %v607_v3 }
 0x341   :  { %v479_v62 = vsel %vm298_vm8, %v1130_v60, 0.0  ;;  %v1390_v63 = vpop.eup %1131  ;;  %1151 = vpow2.f32 %v330_v58 }
 0x342   :  { %v480_v1 = vadd.f32 %v1128_v59, %v479_v62  ;;  %v1134_v2 = vpop.eup %1133  ;;  %1153 = vpow2.f32 %v332_v61  ;;  %v611_v11 = vsel %vm298_vm8, %v1390_v63, 0.0 }
 0x343   :  { %v1136_v4 = vpop.eup %1135 }
 0x344   :  { %481 = vadd.xlane.f32.xlu0 %v480_v1  ;;  %v1394_v5 = vpop.eup %1137  ;;  %v483_v6 = vsel %vm298_vm8, %v1136_v4, 0.0 }
 0x345   :  { %v1397_v7 = vpop.eup %1139  ;;  %v484_v8 = vadd.f32 %v1134_v2, %v483_v6  ;;  %v612_v16 = vadd.f32 %v1394_v5, %v611_v11 }
 0x346   :  { %v1142_v10 = vpop.eup %1141  ;;  %v739_v19 = vsel %vm298_vm8, %v1397_v7, 0.0 }
 0x347   :  { %v1144_v12 = vpop.eup %1143  ;;  %485 = vadd.xlane.f32.xlu1 %v484_v8 }
 0x348   :  { %609 = vadd.xlane.f32.xlu0 %v608_v9  ;;  %v1402_v13 = vpop.eup %1145  ;;  %v735_v14 = vsel %vm298_vm8, %v1144_v12, 0.0 }
 0x349   :  { %v1405_v15 = vpop.eup %1147  ;;  %v736_v17 = vadd.f32 %v1142_v10, %v735_v14  ;;  %v740_v22 = vadd.f32 %v1402_v13, %v739_v19 }
 0x34a   :  { %v1408_v18 = vpop.eup %1149  ;;  %v340_v25 = vsel %vm298_vm8, %v1405_v15, 0.0 }
 0x34b   :  { %v1152_v20 = vpop.eup %1151  ;;  %613 = vadd.xlane.f32.xlu1 %v612_v16 }
 0x34c   :  { %737 = vadd.xlane.f32.xlu0 %v736_v17  ;;  %v336_v21 = vsel %vm298_vm8, %v1152_v20, 0.0  ;;  %v1415_v24 = vpop.eup %1153 }
 0x34d   :  { %v337_v23 = vadd.f32 %v1408_v18, %v336_v21  ;;  %v341_v26 = vadd.f32 %v1415_v24, %v340_v25 }
 0x34f   :  { %741 = vadd.xlane.f32.xlu1 %v740_v22 }
 0x350   :  { %338 = vadd.xlane.f32.xlu0 %v337_v23 }
 0x353   :  { %342 = vadd.xlane.f32.xlu1 %v341_v26 }
 0x3d1   :  { %v482_v27 = vpop.xlane.xlu0 %481 }
 0x3d2   :  { %1155 = vrcp.f32 %v482_v27 }
 0x3d4   :  { %v486_v28 = vpop.xlane.xlu1 %485 }
 0x3d5   :  { %v610_v29 = vpop.xlane.xlu0 %609  ;;  %1157 = vrcp.f32 %v486_v28 }
 0x3d6   :  { %1159 = vrcp.f32 %v610_v29 }
 0x3d8   :  { %v614_v30 = vpop.xlane.xlu1 %613 }
 0x3d9   :  { %v738_v31 = vpop.xlane.xlu0 %737  ;;  %1161 = vrcp.f32 %v614_v30 }
 0x3da   :  { %1163 = vrcp.f32 %v738_v31 }
 0x3dc   :  { %v1156_v32 = vpop.eup %1155  ;;  %v742_v33 = vpop.xlane.xlu1 %741 }
 0x3dd   :  { %v339_v34 = vpop.xlane.xlu0 %338  ;;  %v1420_v35 = vmul.f32 %v1156_v32, %v1128_v59  ;;  %v1422_v36 = vmul.f32 %v1156_v32, %v1130_v60  ;;  %1165 = vrcp.f32 %v742_v33 }
 0x3de   :  { %1167 = vrcp.f32 %v339_v34 }
 0x3df   :  { %v505_v37 = vsel %vm298_vm8, %v1422_v36, -inf  ;;  %v1158_v40 = vpop.eup %1157 }
 0x3e0   :  { %v506_v41 = vmax.f32 %v1420_v35, %v505_v37  ;;  %v1160_v43 = vpop.eup %1159  ;;  %v343_v44 = vpop.xlane.xlu1 %342  ;;  %v1427_v45 = vmul.f32 %v1158_v40, %v1134_v2  ;;  %v1429_v46 = vmul.f32 %v1158_v40, %v1136_v4 }
 0x3e1   :  { %1169 = vrcp.f32 %v343_v44  ;;  %v1432_v47 = vmul.f32 %v1160_v43, %v1385_v53  ;;  %v1435_v48 = vmul.f32 %v1160_v43, %v1387_v57 }
 0x3e2   :  { %507 = vmax.xlane.f32.xlu0 %v506_v41  ;;  %v509_v49 = vsel %vm298_vm8, %v1429_v46, -inf }
 0x3e3   :  { %v1162_v50 = vpop.eup %1161  ;;  %v510_v51 = vmax.f32 %v1427_v45, %v509_v49  ;;  %v633_v52 = vsel %vm298_vm8, %v1435_v48, -inf }
 0x3e4   :  { %v1164_v54 = vpop.eup %1163  ;;  %v634_v55 = vmax.f32 %v1432_v47, %v633_v52  ;;  %v1444_v56 = vmul.f32 %v1162_v50, %v1394_v5  ;;  %v1447_v53 = vmul.f32 %v1162_v50, %v1390_v63 }
 0x3e5   :  { %511 = vmax.xlane.f32.xlu1 %v510_v51  ;;  %v1449_v57 = vmul.f32 %v1164_v54, %v1142_v10  ;;  %v1451_v58 = vmul.f32 %v1164_v54, %v1144_v12 }
 0x3e6   :  { %635 = vmax.xlane.f32.xlu0 %v634_v55  ;;  %v637_v59 = vsel %vm298_vm8, %v1447_v53, -inf }
 0x3e7   :  { %v1166_v60 = vpop.eup %1165  ;;  %v638_v61 = vmax.f32 %v1444_v56, %v637_v59  ;;  %v761_v62 = vsel %vm298_vm8, %v1451_v58, -inf }
 0x3e8   :  { %v1168_v1 = vpop.eup %1167  ;;  %v762_v2 = vmax.f32 %v1449_v57, %v761_v62  ;;  %v1460_v63 = vmul.f32 %v1166_v60, %v1402_v13  ;;  %v1463_v3 = vmul.f32 %v1166_v60, %v1397_v7 }
 0x3e9   :  { %639 = vmax.xlane.f32.xlu1 %v638_v61  ;;  %v1466_v4 = vmul.f32 %v1168_v1, %v1408_v18  ;;  %v1468_v5 = vmul.f32 %v1168_v1, %v1152_v20 }
 0x3ea   :  { %763 = vmax.xlane.f32.xlu0 %v762_v2  ;;  %v765_v6 = vsel %vm298_vm8, %v1463_v3, -inf }
 0x3eb   :  { %v1170_v8 = vpop.eup %1169  ;;  %v766_v9 = vmax.f32 %v1460_v63, %v765_v6  ;;  %v373_v10 = vsel %vm298_vm8, %v1468_v5, -inf }
 0x3ec   :  { %v374_v11 = vmax.f32 %v1466_v4, %v373_v10  ;;  %v1477_v7 = vmul.f32 %v1170_v8, %v1415_v24  ;;  %v1480_v12 = vmul.f32 %v1170_v8, %v1405_v15 }
 0x3ed   :  { %767 = vmax.xlane.f32.xlu1 %v766_v9 }
 0x3ee   :  { %375 = vmax.xlane.f32.xlu0 %v374_v11  ;;  %v377_v13 = vsel %vm298_vm8, %v1480_v12, -inf }
 0x3ef   :  { %v378_v14 = vmax.f32 %v1477_v7, %v377_v13 }
 0x3f1   :  { %379 = vmax.xlane.f32.xlu1 %v378_v14 }
 0x46f   :  { %v1485_v16 = vpop.xlane.xlu0 %507 }
 0x470   :  { %vm513_vm12 = vcmp.ge.f32.partialorder %v1420_v35, %v1485_v16  ;;  %vm514_vm13 = vcmp.ge.f32.partialorder %v1422_v36, %v1485_v16 }
 0x471   :  { %v1492_v17 = vsel %vm514_vm13, -inf, %v1422_v36  ;;  %v1495_v15 = vsel %vm513_vm12, -inf, %v1420_v35 }
 0x472   :  { %v521_v18 = vsel %vm298_vm8, %v1492_v17, -inf  ;;  %v1499_v19 = vpop.xlane.xlu1 %511 }
 0x473   :  { %v522_v20 = vmax.f32 %v1495_v15, %v521_v18  ;;  %vm515_vm14 = vcmp.ge.f32.partialorder %v1427_v45, %v1499_v19  ;;  %vm516_vm15 = vcmp.ge.f32.partialorder %v1429_v46, %v1499_v19  ;;  %v1506_v21 = vpop.xlane.xlu0 %635 }
 0x474   :  { %v1509_v22 = vsel %vm516_vm15, -inf, %v1429_v46  ;;  %vm641_vm0 = vcmp.ge.f32.partialorder %v1432_v47, %v1506_v21  ;;  %vm642_vm2 = vcmp.ge.f32.partialorder %v1435_v48, %v1506_v21  ;;  %v1516_v23 = vsel %vm515_vm14, -inf, %v1427_v45 }
 0x475   :  { %523 = vmax.xlane.f32.xlu0 %v522_v20  ;;  %v1519_v24 = vsel %vm642_vm2, -inf, %v1435_v48  ;;  %v525_v25 = vsel %vm298_vm8, %v1509_v22, -inf  ;;  %v1524_v26 = vsel %vm641_vm0, -inf, %v1432_v47 }
 0x476   :  { %v1526_v27 = vpop.xlane.xlu1 %639  ;;  %v526_v28 = vmax.f32 %v1516_v23, %v525_v25  ;;  %v649_v29 = vsel %vm298_vm8, %v1519_v24, -inf }
 0x477   :  { %vm643_vm3 = vcmp.ge.f32.partialorder %v1444_v56, %v1526_v27  ;;  %vm644_vm4 = vcmp.ge.f32.partialorder %v1447_v53, %v1526_v27  ;;  %v1535_v30 = vpop.xlane.xlu0 %763  ;;  %v650_v31 = vmax.f32 %v1524_v26, %v649_v29 }
 0x478   :  { %v1539_v32 = vsel %vm644_vm4, -inf, %v1447_v53  ;;  %vm769_vm5 = vcmp.ge.f32.partialorder %v1449_v57, %v1535_v30  ;;  %vm770_vm6 = vcmp.ge.f32.partialorder %v1451_v58, %v1535_v30  ;;  %527 = vmax.xlane.f32.xlu1 %v526_v28  ;;  %v1546_v33 = vsel %vm643_vm3, -inf, %v1444_v56 }
 0x479   :  { %v1549_v34 = vsel %vm770_vm6, -inf, %v1451_v58  ;;  %651 = vmax.xlane.f32.xlu0 %v650_v31  ;;  %v653_v37 = vsel %vm298_vm8, %v1539_v32, -inf  ;;  %v1554_v40 = vsel %vm769_vm5, -inf, %v1449_v57 }
 0x47a   :  { %v1556_v41 = vpop.xlane.xlu1 %767  ;;  %v654_v43 = vmax.f32 %v1546_v33, %v653_v37  ;;  %v777_v44 = vsel %vm298_vm8, %v1549_v34, -inf }
 0x47b   :  { %vm771_vm7 = vcmp.ge.f32.partialorder %v1460_v63, %v1556_v41  ;;  %vm772_vm9 = vcmp.ge.f32.partialorder %v1463_v3, %v1556_v41  ;;  %v1565_v49 = vpop.xlane.xlu0 %375  ;;  %v778_v50 = vmax.f32 %v1554_v40, %v777_v44 }
 0x47c   :  { %v1569_v51 = vsel %vm772_vm9, -inf, %v1463_v3  ;;  %vm381_vm10 = vcmp.ge.f32.partialorder %v1466_v4, %v1565_v49  ;;  %vm382_vm11 = vcmp.ge.f32.partialorder %v1468_v5, %v1565_v49  ;;  %655 = vmax.xlane.f32.xlu1 %v654_v43  ;;  %v1576_v52 = vsel %vm771_vm7, -inf, %v1460_v63 }
 0x47d   :  { %v1579_v54 = vsel %vm382_vm11, -inf, %v1468_v5  ;;  %779 = vmax.xlane.f32.xlu0 %v778_v50  ;;  %v781_v55 = vsel %vm298_vm8, %v1569_v51, -inf  ;;  %v1584_v59 = vsel %vm381_vm10, -inf, %v1466_v4 }
 0x47e   :  { %v1586_v60 = vpop.xlane.xlu1 %379  ;;  %v782_v61 = vmax.f32 %v1576_v52, %v781_v55  ;;  %v389_v62 = vsel %vm298_vm8, %v1579_v54, -inf }
 0x47f   :  { %vm383_vm12 = vcmp.ge.f32.partialorder %v1477_v7, %v1586_v60  ;;  %vm384_vm13 = vcmp.ge.f32.partialorder %v1480_v12, %v1586_v60  ;;  %v390_v1 = vmax.f32 %v1584_v59, %v389_v62 }
 0x480   :  { %v1597_v2 = vsel %vm384_vm13, -inf, %v1480_v12  ;;  %783 = vmax.xlane.f32.xlu1 %v782_v61  ;;  %v1600_v6 = vsel %vm383_vm12, -inf, %v1477_v7 }
 0x481   :  { %391 = vmax.xlane.f32.xlu0 %v390_v1  ;;  %v393_v8 = vsel %vm298_vm8, %v1597_v2, -inf }
 0x482   :  { %v394_v9 = vmax.f32 %v1600_v6, %v393_v8 }
 0x484   :  { %395 = vmax.xlane.f32.xlu1 %v394_v9 }
 0x502   :  { %v1605_v10 = vpop.xlane.xlu0 %523 }
 0x503   :  { %vm529_vm14 = vcmp.ge.f32.partialorder %v1495_v15, %v1605_v10  ;;  %vm530_vm15 = vcmp.ge.f32.partialorder %v1492_v17, %v1605_v10 }
 0x504   :  { %v1612_v11 = vsel %vm530_vm15, -inf, %v1492_v17  ;;  %v1615_v13 = vsel %vm529_vm14, -inf, %v1495_v15 }
 0x505   :  { %v537_v14 = vsel %vm298_vm8, %v1612_v11, -inf  ;;  %v1619_v18 = vpop.xlane.xlu1 %527 }
 0x506   :  { %v538_v20 = vmax.f32 %v1615_v13, %v537_v14  ;;  %vm531_vm0 = vcmp.ge.f32.partialorder %v1516_v23, %v1619_v18  ;;  %vm532_vm2 = vcmp.ge.f32.partialorder %v1509_v22, %v1619_v18  ;;  %v1626_v25 = vpop.xlane.xlu0 %651 }
 0x507   :  { %v1629_v17 = vsel %vm532_vm2, -inf, %v1509_v22  ;;  %vm657_vm3 = vcmp.ge.f32.partialorder %v1524_v26, %v1626_v25  ;;  %vm658_vm4 = vcmp.ge.f32.partialorder %v1519_v24, %v1626_v25  ;;  %v1639_v28 = vsel %vm531_vm0, -inf, %v1516_v23 }
 0x508   :  { %539 = vmax.xlane.f32.xlu0 %v538_v20  ;;  %v1636_v15 = vsel %vm658_vm4, -inf, %v1519_v24  ;;  %v541_v29 = vsel %vm298_vm8, %v1629_v17, -inf  ;;  %v1644_v31 = vsel %vm657_vm3, -inf, %v1524_v26  ;;  %vm429_vm0 = vcmask 7168  }
 0x509   :  { %v1646_v22 = vpop.xlane.xlu1 %655  ;;  %v542_v37 = vmax.f32 %v1639_v28, %v541_v29  ;;  %v665_v43 = vsel %vm298_vm8, %v1636_v15, -inf  ;;  %vm432_vm2 = vcmask 15360  }
 0x50a   :  { %vm659_vm5 = vcmp.ge.f32.partialorder %v1546_v33, %v1646_v22  ;;  %vm660_vm6 = vcmp.ge.f32.partialorder %v1539_v32, %v1646_v22  ;;  %v1655_v23 = vpop.xlane.xlu0 %779  ;;  %v666_v24 = vmax.f32 %v1644_v31, %v665_v43 }
 0x50b   :  { %v1659_v26 = vsel %vm660_vm6, -inf, %v1539_v32  ;;  %vm785_vm7 = vcmp.ge.f32.partialorder %v1554_v40, %v1655_v23  ;;  %vm786_vm9 = vcmp.ge.f32.partialorder %v1549_v34, %v1655_v23  ;;  %543 = vmax.xlane.f32.xlu1 %v542_v37  ;;  %v1669_v50 = vsel %vm659_vm5, -inf, %v1546_v33 }
 0x50c   :  { %v1666_v44 = vsel %vm786_vm9, -inf, %v1549_v34  ;;  %667 = vmax.xlane.f32.xlu0 %v666_v24  ;;  %v669_v55 = vsel %vm298_vm8, %v1659_v26, -inf  ;;  %v1674_v32 = vsel %vm785_vm7, -inf, %v1554_v40 }
 0x50d   :  { %v1676_v61 = vpop.xlane.xlu1 %783  ;;  %v670_v62 = vmax.f32 %v1669_v50, %v669_v55  ;;  %v793_v1 = vsel %vm298_vm8, %v1666_v44, -inf  ;;  %v561_v55 = vsel %vm429_vm0, %v1485_v16, %v1605_v10  ;;  %v689_v10 = vsel %vm429_vm0, %v1506_v21, %v1626_v25 }
 0x50e   :  { %vm787_vm10 = vcmp.ge.f32.partialorder %v1576_v52, %v1676_v61  ;;  %vm788_vm11 = vcmp.ge.f32.partialorder %v1569_v51, %v1676_v61  ;;  %v1685_v33 = vpop.xlane.xlu0 %391  ;;  %v794_v34 = vmax.f32 %v1674_v32, %v793_v1  ;;  %v690_v21 = vsel %vm429_vm0, %v1526_v27, %v1646_v22 }
 0x50f   :  { %v1689_v40 = vsel %vm788_vm11, -inf, %v1569_v51  ;;  %vm397_vm12 = vcmp.ge.f32.partialorder %v1584_v59, %v1685_v33  ;;  %vm398_vm13 = vcmp.ge.f32.partialorder %v1579_v54, %v1685_v33  ;;  %671 = vmax.xlane.f32.xlu1 %v670_v62  ;;  %v1699_v9 = vsel %vm787_vm10, -inf, %v1576_v52 }
 0x510   :  { %v1696_v8 = vsel %vm398_vm13, -inf, %v1579_v54  ;;  %795 = vmax.xlane.f32.xlu0 %v794_v34  ;;  %v797_v14 = vsel %vm298_vm8, %v1689_v40, -inf  ;;  %v1704_v51 = vsel %vm397_vm12, -inf, %v1584_v59 }
 0x511   :  { %v1706_v20 = vpop.xlane.xlu1 %395  ;;  %v798_v29 = vmax.f32 %v1699_v9, %v797_v14  ;;  %v405_v37 = vsel %vm298_vm8, %v1696_v8, -inf  ;;  %v562_v14 = vsel %vm429_vm0, %v1499_v19, %v1619_v18 }
 0x512   :  { %vm399_vm14 = vcmp.ge.f32.partialorder %v1600_v6, %v1706_v20  ;;  %vm400_vm15 = vcmp.ge.f32.partialorder %v1597_v2, %v1706_v20  ;;  %v406_v52 = vmax.f32 %v1704_v51, %v405_v37 }
 0x513   :  { %v1717_v54 = vsel %vm400_vm15, -inf, %v1597_v2  ;;  %799 = vmax.xlane.f32.xlu1 %v798_v29  ;;  %v1720_v59 = vsel %vm399_vm14, -inf, %v1600_v6 }
 0x514   :  { %407 = vmax.xlane.f32.xlu0 %v406_v52  ;;  %v409_v43 = vsel %vm298_vm8, %v1717_v54, -inf }
 0x515   :  { %v410_v24 = vmax.f32 %v1720_v59, %v409_v43  ;;  %v817_v43 = vsel %vm429_vm0, %v1535_v30, %v1655_v23 }
 0x517   :  { %411 = vmax.xlane.f32.xlu1 %v410_v24 }
 0x595   :  { %v540_v62 = vpop.xlane.xlu0 %539 }
 0x596   :  { %vm546_vm3 = vcmp.ge.f32.partialorder %v1612_v11, %v540_v62  ;;  %v1730_v2 = vsel %vm432_vm2, %v561_v55, %v540_v62  ;;  %vm545_vm4 = vcmp.ge.f32.partialorder %v1615_v13, %v540_v62 }
 0x597   :  { %v549_v6 = vsel %vm545_vm4, -inf, %v1615_v13  ;;  %v550_v1 = vsel %vm546_vm3, -inf, %v1612_v11 }
 0x598   :  { %v553_v34 = vsel %vm298_vm8, %v550_v1, -inf  ;;  %v544_v29 = vpop.xlane.xlu1 %543  ;;  %v818_v1 = vsel %vm429_vm0, %v1556_v41, %v1676_v61 }
 0x599   :  { %v554_v16 = vmax.f32 %v549_v6, %v553_v34  ;;  %vm548_vm5 = vcmp.ge.f32.partialorder %v1629_v17, %v544_v29  ;;  %v1744_v37 = vsel %vm432_vm2, %v562_v14, %v544_v29  ;;  %v668_v13 = vpop.xlane.xlu0 %667  ;;  %vm547_vm6 = vcmp.ge.f32.partialorder %v1639_v28, %v544_v29 }
 0x59a   :  { %vm674_vm7 = vcmp.ge.f32.partialorder %v1636_v15, %v668_v13  ;;  %v1749_v11 = vsel %vm432_vm2, %v689_v10, %v668_v13  ;;  %v551_v19 = vsel %vm547_vm6, -inf, %v1639_v28  ;;  %v552_v18 = vsel %vm548_vm5, -inf, %v1629_v17 }
 0x59b   :  { %555 = vmax.xlane.f32.xlu0 %v554_v16  ;;  %v557_v25 = vsel %vm298_vm8, %v552_v18, -inf  ;;  %vm673_vm9 = vcmp.ge.f32.partialorder %v1644_v31, %v668_v13  ;;  %v678_v52 = vsel %vm674_vm7, -inf, %v1636_v15  ;;  %vm435_vm7 = vcmask 23552  }
 0x59c   :  { %v672_v24 = vpop.xlane.xlu1 %671  ;;  %v558_v55 = vmax.f32 %v551_v19, %v557_v25  ;;  %v677_v28 = vsel %vm673_vm9, -inf, %v1644_v31  ;;  %v681_v17 = vsel %vm298_vm8, %v678_v52, -inf  ;;  %vm898_vm9 = vcmask 1041408  }
 0x59d   :  { %vm676_vm10 = vcmp.ge.f32.partialorder %v1659_v26, %v672_v24  ;;  %v692_v27 = vsel %vm432_vm2, %v690_v21, %v672_v24  ;;  %v796_v22 = vpop.xlane.xlu0 %795  ;;  %v682_v62 = vmax.f32 %v677_v28, %v681_v17  ;;  %vm675_vm11 = vcmp.ge.f32.partialorder %v1669_v50, %v672_v24 }
 0x59e   :  { %vm802_vm12 = vcmp.ge.f32.partialorder %v1666_v44, %v796_v22  ;;  %v819_v15 = vsel %vm432_vm2, %v817_v43, %v796_v22  ;;  %559 = vmax.xlane.f32.xlu1 %v558_v55  ;;  %v679_v30 = vsel %vm675_vm11, -inf, %v1669_v50  ;;  %v680_v23 = vsel %vm676_vm10, -inf, %v1659_v26 }
 0x59f   :  { %683 = vmax.xlane.f32.xlu0 %v682_v62  ;;  %v685_v31 = vsel %vm298_vm8, %v680_v23, -inf  ;;  %vm801_vm13 = vcmp.ge.f32.partialorder %v1674_v32, %v796_v22  ;;  %v806_v6 = vsel %vm802_vm12, -inf, %v1666_v44  ;;  %vm865_vm10 = vcmask 39936  }
 0x5a0   :  { %v800_v34 = vpop.xlane.xlu1 %799  ;;  %v686_v14 = vmax.f32 %v679_v30, %v685_v31  ;;  %v805_v29 = vsel %vm801_vm13, -inf, %v1674_v32  ;;  %v809_v16 = vsel %vm298_vm8, %v806_v6, -inf  ;;  %v430_v6 = vsel %vm429_vm0, %v1565_v49, %v1685_v33 }
 0x5a1   :  { %vm804_vm14 = vcmp.ge.f32.partialorder %v1689_v40, %v800_v34  ;;  %v820_v26 = vsel %vm432_vm2, %v818_v1, %v800_v34  ;;  %v408_v50 = vpop.xlane.xlu0 %407  ;;  %v810_v10 = vmax.f32 %v805_v29, %v809_v16  ;;  %vm803_vm15 = vcmp.ge.f32.partialorder %v1699_v9, %v800_v34 }
 0x5a2   :  { %vm414_vm3 = vcmp.ge.f32.partialorder %v1696_v8, %v408_v50  ;;  %687 = vmax.xlane.f32.xlu1 %v686_v14  ;;  %v807_v44 = vsel %vm803_vm15, -inf, %v1699_v9  ;;  %v808_v41 = vsel %vm804_vm14, -inf, %v1689_v40  ;;  %vm413_vm4 = vcmp.ge.f32.partialorder %v1704_v51, %v408_v50 }
 0x5a3   :  { %811 = vmax.xlane.f32.xlu0 %v810_v10  ;;  %v813_v32 = vsel %vm298_vm8, %v808_v41, -inf  ;;  %v418_v61 = vsel %vm414_vm3, -inf, %v1696_v8  ;;  %v417_v18 = vsel %vm413_vm4, -inf, %v1704_v51  ;;  %v433_v1 = vsel %vm432_vm2, %v430_v6, %v408_v50  ;;  %v1121_v41 = vld [vmem:[%s1930_s12] sm:$0xff]  }
 0x5a4   :  { %v412_v13 = vpop.xlane.xlu1 %411  ;;  %v814_v19 = vmax.f32 %v807_v44, %v813_v32  ;;  %v421_v21 = vsel %vm298_vm8, %v418_v61, -inf  ;;  %1081 = vmatpush3.bf16.msra.mxu1 %v1121_v41  ;;  %v1122_v61 = vld [vmem:[%s1930_s12 + $0x8] ss:$0 sps:$4 sm:$0x33]   ;;  %s1177_s12 = smov 10   ;;  %vm868_vm11 = vcmask 80896  }
 0x5a5   :  { %vm416_vm5 = vcmp.ge.f32.partialorder %v1717_v54, %v412_v13  ;;  %v422_v25 = vmax.f32 %v417_v18, %v421_v21  ;;  %vm415_vm6 = vcmp.ge.f32.partialorder %v1720_v59, %v412_v13  ;;  %1082 = vmatprep.subr.bf16.mxu1 %v1173_v0  ;;  %vm871_vm12 = vcmask 121856  }
 0x5a6   :  { %815 = vmax.xlane.f32.xlu1 %v814_v19  ;;  %v419_v40 = vsel %vm415_vm6, -inf, %v1720_v59  ;;  %v420_v9 = vsel %vm416_vm5, -inf, %v1717_v54  ;;  %vm894_vm13 = vcmask 162816   ;;  %vm954_vm14 = vcmask 523264  }
 0x5a7   :  { %423 = vmax.xlane.f32.xlu0 %v422_v25  ;;  %v425_v52 = vsel %vm298_vm8, %v420_v9, -inf }
 0x5a8   :  { %v426_v8 = vmax.f32 %v419_v40, %v425_v52  ;;  %v900_v40 = vsel %vm898_vm9, %v1122_v61, 0 }
 0x5a9   :  { %1083 = vmatpush3.bf16.msra.mxu1 %v900_v40 }
 0x5aa   :  { %427 = vmax.xlane.f32.xlu1 %v426_v8 }
 0x628   :  { %v556_v43 = vpop.xlane.xlu0 %555 }
 0x629   :  { %v565_v51 = vsel %vm435_vm7, %v1730_v2, %v556_v43 }
 0x62a   :  { %v567_v24 = vsel %vm298_vm8, %v565_v51, 0.0 }
 0x62b   :  { %568 = vadd.xlane.f32.xlu0 %v567_v24  ;;  %v560_v55 = vpop.xlane.xlu1 %559 }
 0x62c   :  { %v684_v28 = vpop.xlane.xlu0 %683  ;;  %v566_v59 = vsel %vm435_vm7, %v1744_v37, %v560_v55 }
 0x62d   :  { %v570_v54 = vsel %vm298_vm8, %v566_v59, 0.0  ;;  %v693_v17 = vsel %vm435_vm7, %v1749_v11, %v684_v28 }
 0x62e   :  { %571 = vadd.xlane.f32.xlu1 %v570_v54  ;;  %v695_v22 = vsel %vm298_vm8, %v693_v17, 0.0 }
 0x62f   :  { %696 = vadd.xlane.f32.xlu0 %v695_v22  ;;  %v688_v62 = vpop.xlane.xlu1 %687 }
 0x630   :  { %v812_v30 = vpop.xlane.xlu0 %811  ;;  %v694_v2 = vsel %vm435_vm7, %v692_v27, %v688_v62 }
 0x631   :  { %v698_v23 = vsel %vm298_vm8, %v694_v2, 0.0  ;;  %v821_v31 = vsel %vm435_vm7, %v819_v15, %v812_v30  ;;  %v431_v15 = vsel %vm429_vm0, %v1586_v60, %v1706_v20 }
 0x632   :  { %699 = vadd.xlane.f32.xlu1 %v698_v23  ;;  %v823_v37 = vsel %vm298_vm8, %v821_v31, 0.0  ;;  %v434_v49 = vsel %vm432_vm2, %v431_v15, %v412_v13 }
 0x633   :  { %824 = vadd.xlane.f32.xlu0 %v823_v37  ;;  %v816_v11 = vpop.xlane.xlu1 %815 }
 0x634   :  { %v424_v34 = vpop.xlane.xlu0 %423  ;;  %v822_v14 = vsel %vm435_vm7, %v820_v26, %v816_v11 }
 0x635   :  { %v826_v27 = vsel %vm298_vm8, %v822_v14, 0.0  ;;  %v436_v29 = vsel %vm435_vm7, %v433_v1, %v424_v34 }
 0x636   :  { %827 = vadd.xlane.f32.xlu1 %v826_v27  ;;  %v438_v16 = vsel %vm298_vm8, %v436_v29, 0.0 }
 0x637   :  { %439 = vadd.xlane.f32.xlu0 %v438_v16  ;;  %v428_v33 = vpop.xlane.xlu1 %427 }
 0x638   :  { %v437_v50 = vsel %vm435_vm7, %v434_v49, %v428_v33 }
 0x639   :  { %v441_v10 = vsel %vm298_vm8, %v437_v50, 0.0 }
 0x63a   :  { %442 = vadd.xlane.f32.xlu1 %v441_v10 }
 0x6b8   :  { %v569_v26 = vpop.xlane.xlu0 %568 }
 0x6b9   :  { %v573_v44 = vmul.f32 0.25, %v569_v26 }
 0x6bb   :  { %v572_v32 = vpop.xlane.xlu1 %571  ;;  %v575_v19 = vsel %vm298_vm8, %v565_v51, %v573_v44 }
 0x6bc   :  { %v574_v60 = vmul.f32 0.25, %v572_v32  ;;  %v697_v20 = vpop.xlane.xlu0 %696  ;;  %v24_v32 = vstv %s1931_s15 }
 0x6bd   :  { %v701_v13 = vmul.f32 0.25, %v697_v20  ;;  %25 = vst [vmem:[#allocation2] sm:$0x1] %v24_v32 }
 0x6be   :  { %v576_v18 = vsel %vm298_vm8, %v566_v59, %v574_v60  ;;  %v302_v60 = vld [vmem:[%s1933_s11] sm:$0x3] }
 0x6bf   :  { %v700_v21 = vpop.xlane.xlu1 %699  ;;  %v1094_v25 = vpack.i.bf16 %v576_v18, %v575_v19  ;;  %v703_v0 = vsel %vm298_vm8, %v693_v17, %v701_v13  ;;  %v1050_v19 = vld [vmem:[%s1934_s14] ss:$0 sm:$0xff]  ;;  %v1053_v18 = vld [vmem:[%s1935_s9 + $0x1] ss:$0 sm:$0xff] }
 0x6c0   :  { %v702_v9 = vmul.f32 0.25, %v700_v21  ;;  %v825_v52 = vpop.xlane.xlu0 %824 }
 0x6c1   :  { %1095 = vrot.lane.b32.xlu0 %v1094_v25, %s1176_s27  ;;  %v829_v8 = vmul.f32 0.25, %v825_v52  ;;  %v358_v52 = vrot.slane %v302_v60, %v219_v42 }
 0x6c2   :  { %v704_v43 = vsel %vm298_vm8, %v694_v2, %v702_v9  ;;  %v1052_v9 = vld [vmem:[%s1935_s9] ss:$0 sm:$0xff] }
 0x6c3   :  { %v828_v24 = vpop.xlane.xlu1 %827  ;;  %v1099_v55 = vpack.i.bf16 %v704_v43, %v703_v0  ;;  %v831_v51 = vsel %vm298_vm8, %v821_v31, %v829_v8  ;;  %v1171_v43 = vld [vmem:[%s1946_s20] sm:$0xff] }
 0x6c4   :  { %v830_v28 = vmul.f32 0.25, %v828_v24  ;;  %v440_v22 = vpop.xlane.xlu0 %439  ;;  %v988_v24 = vmul.f32 %v1171_v43, %v1053_v18 }
 0x6c5   :  { %1100 = vrot.lane.b32.xlu1 %v1099_v55, %s1177_s12  ;;  %v445_v23 = vmul.f32 0.25, %v440_v22 }
 0x6c6   :  { %v832_v59 = vsel %vm298_vm8, %v822_v14, %v830_v28 }
 0x6c7   :  { %v1104_v54 = vpack.i.bf16 %v832_v59, %v831_v51  ;;  %v443_v62 = vpop.xlane.xlu1 %442  ;;  %v447_v34 = vsel %vm298_vm8, %v436_v29, %v445_v23  ;;  %v1046_v29 = vld [vmem:[%s1932_s13] ss:$0 sm:$0xff]  ;;  %v975_v51 = vmul.f32 %v1171_v43, %v1052_v9  ;;  %v362_v59 = vmul.f32 %v358_v52, %v1468_v5 }
 0x6c8   :  { %v446_v37 = vmul.f32 0.25, %v443_v62  ;;  %v990_v62 = vsel %vm89_vm1, %v988_v24, 0.0  ;;  %v494_v5 = vmul.f32 %v1422_v36, %v358_v52 }
 0x6c9   :  { %1105 = vrot.lane.b32.xlu1 %v1104_v54, %s1178_s6  ;;  %v354_v54 = vrot.slane %v302_v60, %v215_v39  ;;  %v365_v23 = vsel %vm298_vm8, %v362_v59, 0.0 }
 0x6ca   :  { %v448_v31 = vsel %vm298_vm8, %v437_v50, %v446_v37  ;;  %v1172_v37 = vld [vmem:[%s1946_s20 + $0x8] sm:$0xff] }
 0x6cb   :  { %v361_v42 = vmul.f32 %v354_v54, %v1466_v4  ;;  %v493_v39 = vmul.f32 %v1420_v35, %v354_v54  ;;  %v497_v4 = vsel %vm298_vm8, %v494_v5, 0.0  ;;  %v750_v35 = vmul.f32 %v1451_v58, %v358_v52 }
 0x6cc   :  { %v624_v58 = vmul.f32 %v1447_v53, %v358_v52  ;;  %v751_v32 = vmul.f32 %v1460_v63, %v354_v54  ;;  %v1051_v53 = vld [vmem:[#allocation2] ss:$0 sm:$0xff] }
 0x6cd   :  { %v366_v38 = vadd.f32 %v365_v23, %v361_v42 }
 0x733   :  { %v1096_v30 = vpop.permute.xlu0 %1095 }
 0x734   :  { %v1098_v6 = vunpack.i.h.bf16 %v1096_v30  ;;  %v1097_v2 = vunpack.i.l.bf16 %v1096_v30  ;;  %v977_v30 = vsel %vm89_vm1, %v975_v51, 0.0 }
 0x736   :  { %v867_v27 = vsel %vm865_vm10, %v448_v31, %v1098_v6  ;;  %v866_v15 = vsel %vm865_vm10, %v447_v34, %v1097_v2  ;;  %v989_v2 = vmul.f32 %v1172_v37, %v1053_v18  ;;  %v498_v34 = vadd.f32 %v497_v4, %v493_v39 }
 0x737   :  { %v1101_v17 = vpop.permute.xlu1 %1100  ;;  %v621_v31 = vmul.f32 %v1432_v47, %v354_v54 }
 0x738   :  { %v1103_v11 = vunpack.i.h.bf16 %v1101_v17  ;;  %v1102_v1 = vunpack.i.l.bf16 %v1101_v17  ;;  %v976_v17 = vmul.f32 %v1172_v37, %v1052_v9  ;;  %v993_v36 = vsel %vm89_vm1, %v989_v2, 0.0 }
 0x73a   :  { %v869_v33 = vsel %vm868_vm11, %v866_v15, %v1102_v1  ;;  %v870_v10 = vsel %vm868_vm11, %v867_v27, %v1103_v11  ;;  %v980_v6 = vsel %vm89_vm1, %v976_v17, 0.0  ;;  %v622_v11 = vmul.f32 %v1435_v48, %v358_v52 }
 0x73b   :  { %v1106_v14 = vpop.permute.xlu1 %1105  ;;  %v364_v1 = vmul.f32 %v358_v52, %v1480_v12  ;;  %v363_v27 = vmul.f32 %v354_v54, %v1477_v7  ;;  %v496_v48 = vmul.f32 %v1429_v46, %v358_v52  ;;  %v749_v12 = vmul.f32 %v1449_v57, %v354_v54 }
 0x73c   :  { %v1108_v16 = vunpack.i.h.bf16 %v1106_v14  ;;  %v1107_v49 = vunpack.i.l.bf16 %v1106_v14  ;;  %v625_v14 = vsel %vm298_vm8, %v622_v11, 0.0  ;;  %v623_v46 = vmul.f32 %v1444_v56, %v354_v54 }
 0x73d   :  { %v369_v15 = vsel %vm298_vm8, %v364_v1, 0.0  ;;  %v752_v57 = vmul.f32 %v1463_v3, %v358_v52 }
 0x73e   :  { %v872_v26 = vsel %vm871_vm12, %v869_v33, %v1107_v49  ;;  %v873_v44 = vsel %vm871_vm12, %v870_v10, %v1108_v16  ;;  %v626_v16 = vadd.f32 %v625_v14, %v621_v31  ;;  %v753_v49 = vsel %vm298_vm8, %v750_v35, 0.0 }
 0x73f   :  { %v877_v41 = vpack.c.bf16 %v873_v44, %v872_v26  ;;  %v370_v47 = vadd.f32 %v369_v15, %v363_v27  ;;  %v495_v33 = vmul.f32 %v1427_v45, %v354_v54  ;;  %v501_v10 = vsel %vm298_vm8, %v496_v48, 0.0 }
 0x740   :  { %v754_v7 = vadd.f32 %v753_v49, %v749_v12  ;;  %v629_v44 = vsel %vm298_vm8, %v624_v58, 0.0  ;;  %v757_v45 = vsel %vm298_vm8, %v752_v57, 0.0 }
 0x741   :  { %1085 = vmatmul.mubr.msk.bf16.vlgmr.msra.gmra.mrb[4].mxu1 %vm894_vm13, %v877_v41  ;;  %v502_v26 = vadd.f32 %v501_v10, %v495_v33  ;;  %v630_v41 = vadd.f32 %v629_v44, %v623_v46 }
 0x814   :  { %v936_v50 = vpop.f32.mrb[4].mxu1 }
 0x815   :  { %v937_v20 = vadd.f32 %v1046_v29, %v936_v50  ;;  %v1086_v61 = vpop.f32.mrb[5].mxu1 }
 0x816   :  { %v939_v13 = vpop.f32.mrb[6].mxu1 }
 0x817   :  { %v943_v21 = vmax.f32 %v937_v20, 0.0  ;;  %v940_v25 = vadd.f32 %v1046_v29, %v939_v13  ;;  %v1087_v40 = vpop.f32.mrb[7].mxu1  ;;  %v758_v29 = vadd.f32 %v757_v45, %v751_v32 }
 0x819   :  { %v944_v8 = vmax.f32 %v940_v25, 0.0  ;;  %v952_v0 = vmul.f32 %v1050_v19, %v943_v21 }
 0x81b   :  { %v955_v55 = vsel %vm954_vm14, %v952_v0, 0.0  ;;  %v953_v28 = vmul.f32 %v1050_v19, %v944_v8 }
 0x81c   :  { %956 = vadd.xlane.f32.xlu1 %v955_v55 }
 0x81d   :  { %v958_v22 = vsel %vm954_vm14, %v953_v28, 0.0 }
 0x81e   :  { %959 = vadd.xlane.f32.xlu0 %v958_v22  ;;  %v1054_v22 = vld [vmem:[%s1937_s10] ss:$0 sm:$0xff] }
 0x820   :  { %991 = vadd.xlane.f32.xlu1 %v990_v62 }
 0x822   :  { %978 = vadd.xlane.f32.xlu0 %v977_v30 }
 0x824   :  { %367 = vadd.xlane.f32.xlu1 %v366_v38 }
 0x826   :  { %981 = vadd.xlane.f32.xlu0 %v980_v6 }
 0x828   :  { %499 = vadd.xlane.f32.xlu1 %v498_v34 }
 0x82a   :  { %994 = vadd.xlane.f32.xlu0 %v993_v36 }
 0x82c   :  { %627 = vadd.xlane.f32.xlu1 %v626_v16 }
 0x82e   :  { %371 = vadd.xlane.f32.xlu0 %v370_v47 }
 0x830   :  { %755 = vadd.xlane.f32.xlu1 %v754_v7 }
 0x832   :  { %503 = vadd.xlane.f32.xlu0 %v502_v26 }
 0x836   :  { %631 = vadd.xlane.f32.xlu0 %v630_v41 }
 0x83a   :  { %759 = vadd.xlane.f32.xlu0 %v758_v29 }
 0x8a9   :  { %v957_v50 = vpop.xlane.xlu1 %956 }
 0x8aa   :  { %v968_v60 = vadd.f32 %v1051_v53, %v957_v50 }
 0x8ab   :  { %v960_v20 = vpop.xlane.xlu0 %959 }
 0x8ac   :  { %v969_v61 = vadd.f32 %v1051_v53, %v960_v20  ;;  %1009 = vperm.xlu1 %1109, %v968_v60  }
 0x8ad   :  { %v992_v56 = vpop.xlane.xlu1 %991 }
 0x8ae   :  { %1014 = vperm.xlu0 %1110, %v969_v61  }
 0x8af   :  { %v979_v13 = vpop.xlane.xlu0 %978 }
 0x8b0   :  { %v996_v3 = vsel %vm429_vm0, %v979_v13, %v992_v56 }
 0x8b1   :  { %v368_v19 = vpop.xlane.xlu1 %367  ;;  %v1005_v62 = vadd.f32 %v1054_v22, %v996_v3 }
 0x8b3   :  { %v982_v18 = vpop.xlane.xlu0 %981 }
 0x8b5   :  { %v500_v21 = vpop.xlane.xlu1 %499 }
 0x8b6   :  { %v833_v52 = vsel %vm429_vm0, %v368_v19, %v500_v21 }
 0x8b7   :  { %v995_v63 = vpop.xlane.xlu0 %994 }
 0x8b8   :  { %v997_v25 = vsel %vm429_vm0, %v982_v18, %v995_v63 }
 0x8b9   :  { %v628_v40 = vpop.xlane.xlu1 %627  ;;  %v1006_v23 = vadd.f32 %v1054_v22, %v997_v25 }
 0x8ba   :  { %v835_v8 = vsel %vm432_vm2, %v833_v52, %v628_v40 }
 0x8bb   :  { %v372_v9 = vpop.xlane.xlu0 %371 }
 0x8bd   :  { %v756_v0 = vpop.xlane.xlu1 %755 }
 0x8be   :  { %v837_v43 = vsel %vm435_vm7, %v835_v8, %v756_v0 }
 0x8bf   :  { %839 = vst.msk [vmem:[%s1936_s17] sm:$0xff] %vm298_vm8, %v837_v43  ;;  %v504_v24 = vpop.xlane.xlu0 %503 }
 0x8c0   :  { %v834_v28 = vsel %vm429_vm0, %v372_v9, %v504_v24 }
 0x8c3   :  { %v632_v55 = vpop.xlane.xlu0 %631 }
 0x8c4   :  { %v836_v51 = vsel %vm432_vm2, %v834_v28, %v632_v55 }
 0x8c7   :  { %v760_v59 = vpop.xlane.xlu0 %759 }
 0x8c8   :  { %v838_v54 = vsel %vm435_vm7, %v836_v51, %v760_v59 }
 0x8c9   :  { %840 = vst.msk [vmem:[%s1936_s17 + $0x8] sm:$0xff] %vm298_vm8, %v838_v54 }
 0x92b   :  { %v1010_v42 = vpop.permute.xlu1 %1009 }
 0x92c   :  { %v1017_v30 = vadd.f32 %v1010_v42, %v1005_v62 }
 0x92d   :  { %v1015_v37 = vpop.permute.xlu0 %1014 }
 0x92e   :  { %1019 = vst.msk [vmem:[%s1938_s18] sm:$0xff] %vm432_vm2, %v1017_v30  ;;  %v1018_v17 = vadd.f32 %v1015_v37, %v1006_v23 }
 0x930   :  { %1020 = vst.msk [vmem:[%s1938_s18 + $0x8] sm:$0xff] %vm432_vm2, %v1018_v17 }

</bundles_post_ra>
